<compile_context>
chip_gen: v5e
topology: v5e:2x2
jax: 0.10.0
libtpu: 0.0.40
codegen_flags: <defaults>
</compile_context>

<pallas_src>
import jax
import jax.numpy as jnp
from jax.experimental import pallas as pl
from jax.experimental.pallas import tpu as pltpu


def _round_up(x, m):
    return -(-x // m) * m


# ---------------------------------------------------------------------------
# Per-generation VMEM budgets (review items 6/7): explicit vmem_limit_bytes,
# smaller working set on v7x (64 MiB physical VMEM) than v5e/v6e (128 MiB).
# ---------------------------------------------------------------------------
def _vmem_capacity_bytes():
    try:
        return int(pltpu.get_tpu_info().vmem_capacity_bytes)
    except Exception:
        return 64 * 1024 * 1024          # conservative fallback (v7x per-core)


_VMEM_CAP = _vmem_capacity_bytes()
_VMEM_LIMIT = int(min(max(_VMEM_CAP // 2, 32 * 2**20), 48 * 2**20))
_WS_BUDGET = _VMEM_LIMIT // 3            # target working set (covers 2x buffers)

_COMPILER_PARAMS_1D = pltpu.CompilerParams(
    dimension_semantics=("parallel",), vmem_limit_bytes=_VMEM_LIMIT)


# ---------------------------------------------------------------------------
# Kernel 1: fused 3x3 grouped conv + bias + ReLU, NHWC, stride 1, pad 1.
#   Input  x_flat : (B, Tpad, Cin)   flattened zero-padded image rows
#   Weight w_taps : (9, Cin, Cout)   block-diagonal per tap (all groups)
#   Output        : (B, Ho*Wp, Cout) "wide rows" (junk columns wo>=Wo sliced
#                                     off by the caller's free reshape+slice)
# ---------------------------------------------------------------------------
def _make_conv3_kernel(wp, n_rows):
    def kernel(x_ref, w_ref, b_ref, o_ref):
        cout = o_ref.shape[-1]
        acc = jnp.zeros((n_rows, cout), jnp.float32)
        for t in range(9):                       # 9-tap accumulation in-kernel
            ki, kj = divmod(t, 3)
            dr = ki * wp + kj                    # static flattened row offset
            xs = x_ref[0, pl.ds(dr, n_rows), :].astype(jnp.bfloat16)
            acc = acc + jnp.dot(xs, w_ref[t], preferred_element_type=jnp.float32)
        acc = acc + b_ref[...]                   # fused bias
        o_ref[0] = jnp.maximum(acc, 0.0).astype(o_ref.dtype)   # fused ReLU
    return kernel


def conv3x3_bias_relu(x_nhwc, w_taps, bias, out_dtype=jnp.bfloat16):
    """Grouped 3x3 conv (stride 1, pad 1) + bias + ReLU. x_nhwc: (B,H,W,Cin)."""
    B, Hs, Ws, Cin = x_nhwc.shape
    Cout = w_taps.shape[-1]
    Ho, Wo = Hs, Ws
    Hp, Wp = Hs + 2, Ws + 2
    # TODO(synk): for large images tile the image into row strips; one whole
    # image per grid step is fine at these sizes and keeps every load aligned
    # to a single block.
    xp = jnp.pad(x_nhwc, ((0, 0), (1, 1), (1, 1), (0, 0)))
    xf = xp.reshape(B, Hp * Wp, Cin)                       # free reshape
    n_rows = Ho * Wp                                       # "wide row" count
    need = n_rows + 2 * Wp + 2                             # max tap read extent
    tot = _round_up(max(Hp * Wp, need), 8)
    if tot > Hp * Wp:
        xf = jnp.pad(xf, ((0, 0), (0, tot - Hp * Wp), (0, 0)))

    cost = pl.CostEstimate(
        flops=int(2 * B * n_rows * Cin * Cout * 9),
        transcendentals=0,
        bytes_accessed=int(xf.size * 4 + w_taps.size * 2 + B * n_rows * Cout * 2))

    out = pl.pallas_call(
        _make_conv3_kernel(Wp, n_rows),
        out_shape=jax.ShapeDtypeStruct((B, n_rows, Cout), out_dtype),
        grid=(B,),
        in_specs=[
            pl.BlockSpec((1, tot, Cin), lambda b: (b, 0, 0)),
            pl.BlockSpec((9, Cin, Cout), lambda b: (0, 0, 0)),
            pl.BlockSpec((1, Cout), lambda b: (0, 0)),
        ],
        out_specs=pl.BlockSpec((1, n_rows, Cout), lambda b: (b, 0, 0)),
        compiler_params=_COMPILER_PARAMS_1D,
        cost_estimate=cost,
    )(xf, w_taps.astype(jnp.bfloat16), bias.reshape(1, Cout).astype(jnp.float32))

    # Trim the Wo..Wp-1 junk columns (fuses into the following rearrange).
    return out.reshape(B, Ho, Wp, Cout)[:, :, :Wo, :]


# ---------------------------------------------------------------------------
# Kernel 2: fused 1x1 grouped conv (block-diagonal weight) + per-channel PReLU.
#   x: (R, Cin)   w: (Cin, Cout) block-diag   alpha: (1, Cout)
# ---------------------------------------------------------------------------
def _pw_kernel(x_ref, w_ref, a_ref, o_ref):
    y = jnp.dot(x_ref[...], w_ref[...], preferred_element_type=jnp.float32)
    y = jnp.where(y >= 0.0, y, y * a_ref[...])            # fused PReLU
    o_ref[...] = y.astype(o_ref.dtype)


def _pick_row_tile(r, bytes_per_row):
    cap = max(8, (_WS_BUDGET // max(bytes_per_row, 1)) // 8 * 8)
    if r <= 16:
        return _round_up(r, 8)
    rt = min(cap, _round_up((r + 1) // 2, 8))   # >=2 grid steps (v7x megacore)
    if rt >= 1024:
        rt = (rt // 512) * 512                  # large R: multiples of 512
    return max(8, rt)


def pointwise_conv_prelu(x_nhwc, w_bd, alpha, out_dtype=jnp.bfloat16):
    B, H, W, Cin = x_nhwc.shape
    Cout = w_bd.shape[1]
    R = B * H * W
    xr = x_nhwc.reshape(R, Cin).astype(jnp.bfloat16)
    bytes_per_row = (Cin * 2 + Cout * 2) * 2 + Cout * 4
    RT = _pick_row_tile(R, bytes_per_row)
    Rp = _round_up(R, RT)
    if Rp != R:
        xr = jnp.pad(xr, ((0, Rp - R), (0, 0)))

    cost = pl.CostEstimate(
        flops=int(2 * Rp * Cin * Cout),
        transcendentals=0,
        bytes_accessed=int(Rp * Cin * 2 + Cin * Cout * 2 +
                           Rp * Cout * jnp.dtype(out_dtype).itemsize))

    out = pl.pallas_call(
        _pw_kernel,
        out_shape=jax.ShapeDtypeStruct((Rp, Cout), out_dtype),
        grid=(Rp // RT,),
        in_specs=[
            pl.BlockSpec((RT, Cin), lambda r: (r, 0)),
            pl.BlockSpec((Cin, Cout), lambda r: (0, 0)),
            pl.BlockSpec((1, Cout), lambda r: (0, 0)),
        ],
        out_specs=pl.BlockSpec((RT, Cout), lambda r: (r, 0)),
        compiler_params=_COMPILER_PARAMS_1D,
        cost_estimate=cost,
    )(xr, w_bd.astype(jnp.bfloat16), alpha.reshape(1, Cout).astype(jnp.float32))
    return out[:R].reshape(B, H, W, Cout)


# ---------------------------------------------------------------------------
# Kernel 3: fused attention core.
#   S = Q K^T * p^-0.5 ; A = softmax(S) ; O = A @ (Q+K)/2
# ---------------------------------------------------------------------------
def _attn_kernel(q_ref, k_ref, o_ref):
    q = q_ref[...]                                        # (Hb, p, d) bf16
    k = k_ref[...]
    p = q.shape[1]
    s = jnp.einsum('hqd,hkd->hqk', q, k, preferred_element_type=jnp.float32)
    s = s * (float(p) ** -0.5)                            # reference scales by sqrt(p)
    # TODO(synk): softmax lane-packing (carry Hb*p in the lane dim) when p<128;
    # the masked-vreg softmax below is small relative to the matmuls here.
    s = s - jnp.max(s, axis=-1, keepdims=True)            # f32 softmax (v5e-safe)
    e = jnp.exp(s)
    denom = jnp.sum(e, axis=-1, keepdims=True)
    attn = (e * pl.reciprocal(denom, approx=True)).astype(jnp.bfloat16)
    v = (q + k) * 0.5                                     # bf16 VALU (v6e/v7x)
    o_ref[...] = jnp.einsum('hqk,hkd->hqd', attn, v,
                            preferred_element_type=jnp.float32).astype(o_ref.dtype)


def _pick_head_block(bh, p, d):
    # q/k/out blocks double-buffered (bf16) + f32 s/e + bf16 v + f32 acc.
    per_head = (3 * p * d * 2) * 2 + 2 * p * p * 4 + p * d * 2 + p * d * 4
    cap = min(bh, max(1, _WS_BUDGET // max(per_head, 1)))
    if bh >= 2:
        cap = min(cap, bh // 2)          # >=2 grid steps so both v7x TCs work
    for c in range(int(cap), 0, -1):
        if bh % c == 0:
            return c
    return 1


def attention_core(q, k):
    """q, k: (BH, p, d) -> softmax(q k^T / sqrt(p)) @ ((q+k)/2), bf16 out."""
    BH, p, d = q.shape
    qb = q.astype(jnp.bfloat16)
    kb = k.astype(jnp.bfloat16)
    Hb = _pick_head_block(BH, p, d)
    # TODO(synk): if a single head block ever exceeds the VMEM budget, tile p/d.
    cost = pl.CostEstimate(flops=int(4 * BH * p * p * d),
                           transcendentals=int(BH * p * p),
                           bytes_accessed=int(3 * BH * p * d * 2))
    return pl.pallas_call(
        _attn_kernel,
        out_shape=jax.ShapeDtypeStruct((BH, p, d), jnp.bfloat16),
        grid=(BH // Hb,),
        in_specs=[
            pl.BlockSpec((Hb, p, d), lambda i: (i, 0, 0)),
            pl.BlockSpec((Hb, p, d), lambda i: (i, 0, 0)),
        ],
        out_specs=pl.BlockSpec((Hb, p, d), lambda i: (i, 0, 0)),
        compiler_params=_COMPILER_PARAMS_1D,
        cost_estimate=cost,
    )(qb, kb)


# ---------------------------------------------------------------------------
# Plain-JAX glue (NHWC, lane-dense on channels): GroupNorm / AvgPool.
# ---------------------------------------------------------------------------
def group_norm_nhwc(x, num_groups, gamma, beta, eps=1e-5):
    B, H, W, C = x.shape
    xg = x.reshape(B, H, W, num_groups, C // num_groups)
    mean = xg.mean(axis=(1, 2, 4), keepdims=True)
    var = xg.var(axis=(1, 2, 4), keepdims=True)
    xg = (xg - mean) * jax.lax.rsqrt(var + eps)
    x = xg.reshape(B, H, W, C)
    return x * gamma[None, None, None, :] + beta[None, None, None, :]


def avg_pool3_nhwc(x):                       # AvgPool2d(3, 1, 1), include_pad
    B, H, W, C = x.shape
    xp = jnp.pad(x, ((0, 0), (1, 1), (1, 1), (0, 0)))
    acc = jnp.zeros_like(x)
    for i in range(3):
        for j in range(3):
            acc = acc + xp[:, i:i + H, j:j + W, :]
    return acc / 9.0


# ---------------------------------------------------------------------------
# Block-diagonal weight builders (done once at init, outside the hot path).
# ---------------------------------------------------------------------------
def _block_diag_1x1(w, groups):
    """w: (Cout, Cin_g, 1, 1) -> (Cin, Cout) block-diagonal."""
    cout, cin_g = w.shape[0], w.shape[1]
    cout_g, cin = cout // groups, cin_g * groups
    w2 = w.reshape(cout, cin_g)
    wb = jnp.zeros((cin, cout), jnp.float32)
    for g in range(groups):
        blk = jnp.transpose(w2[g * cout_g:(g + 1) * cout_g, :])
        wb = wb.at[g * cin_g:(g + 1) * cin_g, g * cout_g:(g + 1) * cout_g].set(blk)
    return wb


def _block_diag_3x3_taps(w, groups):
    """w: (Cout, Cin_g, 3, 3) -> (9, Cin, Cout), one block-diag matrix per tap."""
    cout, cin_g, kh, kw = w.shape
    cout_g, cin = cout // groups, cin_g * groups
    wt = jnp.zeros((kh * kw, cin, cout), jnp.float32)
    for ki in range(kh):
        for kj in range(kw):
            t = ki * kw + kj
            for g in range(groups):
                blk = jnp.transpose(w[g * cout_g:(g + 1) * cout_g, :, ki, kj])
                wt = wt.at[t, g * cin_g:(g + 1) * cin_g,
                           g * cout_g:(g + 1) * cout_g].set(blk)
    return wt


# ---------------------------------------------------------------------------
# Parameters (deterministic synthetic init)
# ---------------------------------------------------------------------------
class PG:
    def __init__(self, seed=0):
        self.key = jax.random.PRNGKey(seed)

    def normal(self, shape, scale):
        self.key, sub = jax.random.split(self.key)
        return scale * jax.random.normal(sub, shape, dtype=jnp.float32)


# ---------------------------------------------------------------------------
# GSA module (matches the PyTorch reference forward pass, inference mode)
# ---------------------------------------------------------------------------
class GSA:
    def __init__(self, pg, ch_in, head, ps, dropout):
        self.c, self.H, self.ph, self.pw = ch_in, head, int(ps), int(ps)
        C, Hd = ch_in, head
        # to_qkv: Conv2d(C, C*Hd*2, 3, pad=1, groups=4, bias=True) + ReLU + GN(2)
        cc = C * Hd * 2
        w_qkv = pg.normal((cc, C // 4, 3, 3), (C // 4 * 9) ** -0.5)
        self.qkv_w_taps = _block_diag_3x3_taps(w_qkv, 4)          # (9, C, cc)
        self.qkv_b = pg.normal((cc,), 0.02)
        self.qkv_gn_g = jnp.ones((cc,), jnp.float32)
        self.qkv_gn_b = jnp.zeros((cc,), jnp.float32)
        # to_out: Conv1x1(C*Hd->C, groups=4) + PReLU + GN(1) + AvgPool3 +
        #         Conv1x1(C->C, groups=4) + PReLU
        w1 = pg.normal((C, (C * Hd) // 4, 1, 1), ((C * Hd) // 4) ** -0.5)
        self.o1_w = _block_diag_1x1(w1, 4)                        # (C*Hd, C)
        self.o1_alpha = jnp.full((C,), 0.01, jnp.float32)
        self.gn_g = jnp.ones((C,), jnp.float32)
        self.gn_b = jnp.zeros((C,), jnp.float32)
        w2 = pg.normal((C, C // 4, 1, 1), (C // 4) ** -0.5)
        self.o2_w = _block_diag_1x1(w2, 4)                        # (C, C)
        self.o2_alpha = jnp.full((C,), 0.01, jnp.float32)
        # TODO(synk): nn.Dropout on the attention weights is omitted
        # (inference-mode identity).

    def __call__(self, x):                                  # x: NCHW f32
        B, C, Hs, Ws = x.shape
        Hd, ph, pw = self.H, self.ph, self.pw
        hh, ww = Hs // ph, Ws // pw

        xn = jnp.transpose(x, (0, 2, 3, 1))                 # NHWC once
        # to_qkv (conv + bias + ReLU fused in kernel, bf16 out), GN in f32 math.
        qkv = conv3x3_bias_relu(xn, self.qkv_w_taps, self.qkv_b)   # (B,Hs,Ws,cc)
        qkv = group_norm_nhwc(qkv.astype(jnp.float32), 2,
                              self.qkv_gn_g, self.qkv_gn_b).astype(jnp.bfloat16)

        # 'b (c a H) h w' channel order -> patched q/k: (B*Hd, ph*pw, C*hh*ww)
        # TODO(synk): folding these rearranges into the attention BlockSpecs
        # (gathering (ph,pw,C,hh,ww) sub-blocks) would remove two HBM relayouts.
        t = qkv.reshape(B, ph, hh, pw, ww, C, 2, Hd)
        q = t[:, :, :, :, :, :, 0, :]
        k = t[:, :, :, :, :, :, 1, :]

        def patch(u):                                       # (B,ph,hh,pw,ww,C,Hd)
            u = jnp.transpose(u, (0, 6, 1, 3, 5, 2, 4))     # B,Hd,ph,pw,C,hh,ww
            return u.reshape(B * Hd, ph * pw, C * hh * ww)

        o = attention_core(patch(q), patch(k))              # (B*Hd, p, C*hh*ww) bf16

        # 'b H p (c d) -> b (c H) (ph h) (pw w)' but kept NHWC: (B,Hs,Ws,C*Hd)
        o = o.reshape(B, Hd, ph, pw, C, hh, ww)
        o = jnp.transpose(o, (0, 2, 5, 3, 6, 4, 1)).reshape(B, Hs, Ws, C * Hd)

        # to_out: conv1x1+PReLU fused, GN(1), AvgPool3, conv1x1+PReLU fused.
        y = pointwise_conv_prelu(o, self.o1_w, self.o1_alpha,
                                 out_dtype=jnp.bfloat16)     # (B,Hs,Ws,C)
        y = group_norm_nhwc(y.astype(jnp.float32), 1, self.gn_g, self.gn_b)
        y = avg_pool3_nhwc(y)
        y = pointwise_conv_prelu(y, self.o2_w, self.o2_alpha,
                                 out_dtype=jnp.float32)      # (B,Hs,Ws,C)
        return jnp.transpose(y, (0, 3, 1, 2))                # back to NCHW


# ---------------------------------------------------------------------------
if __name__ == "__main__":
    B, ch_in, head, ps = 2, 16, 4, 4      # small shapes; group / patch divisible
    Hs = Ws = 16

    pg = PG(seed=0)
    model = GSA(pg, ch_in, head, ps, dropout=0.1)

    x = jax.random.normal(jax.random.PRNGKey(0), (B, ch_in, Hs, Ws),
                          dtype=jnp.float32)

    fwd = jax.jit(model.__call__)
    out = jax.block_until_ready(fwd(x))

    assert out.shape == (B, ch_in, Hs, Ws), out.shape
    assert bool(jnp.all(jnp.isfinite(out)))
    print("KERNEL_OK")
</pallas_src>

<mosaic_0001>
module attributes {stable_mosaic.version = 11 : i64} {
  func.func @kernel(%arg0: i32, %arg1: memref<1x328x16xf32, #tpu.memory_space<vmem>>, %arg2: memref<9x16x128xbf16, #tpu.memory_space<vmem>>, %arg3: memref<1x128xf32, #tpu.memory_space<vmem>>, %arg4: memref<1x288x128xbf16, #tpu.memory_space<vmem>>) attributes {dimension_semantics = [#tpu.dimension_semantics<parallel>], iteration_bounds = array<i64: 2>, scalar_prefetch = 0 : i64, scratch_operands = 0 : i64, tpu.core_type = #tpu.core_type<tc>, window_params = [{transform_indices = @transform_0, window_bounds = array<i64: 1, 328, 16>}, {pipeline_mode = #tpu.pipeline_mode<synchronous>, transform_indices = @transform_1, window_bounds = array<i64: 9, 16, 128>}, {pipeline_mode = #tpu.pipeline_mode<synchronous>, transform_indices = @transform_2, window_bounds = array<i64: 1, 128>}, {transform_indices = @transform_3, window_bounds = array<i64: 1, 288, 128>}]} {
    %cst = arith.constant 0.000000e+00 : f32
    %0 = vector.broadcast %cst : f32 to vector<288x128xf32>
    %c0 = arith.constant 0 : index
    %c0_0 = arith.constant 0 : index
    %c0_1 = arith.constant 0 : index
    %1 = vector.load %arg1[%c0, %c0_0, %c0_1] : memref<1x328x16xf32, #tpu.memory_space<vmem>>, vector<1x288x16xf32>
    %2 = vector.shape_cast %1 : vector<1x288x16xf32> to vector<288x16xf32>
    %3 = arith.truncf %2 : vector<288x16xf32> to vector<288x16xbf16>
    %c0_2 = arith.constant 0 : index
    %c0_3 = arith.constant 0 : index
    %c0_4 = arith.constant 0 : index
    %4 = vector.load %arg2[%c0_2, %c0_3, %c0_4] : memref<9x16x128xbf16, #tpu.memory_space<vmem>>, vector<1x16x128xbf16>
    %5 = vector.shape_cast %4 : vector<1x16x128xbf16> to vector<16x128xbf16>
    %cst_5 = arith.constant dense<0.000000e+00> : vector<288x128xf32>
    %6 = tpu.matmul %3, %5, %cst_5 {dimension_numbers = #tpu.dot_dimension_numbers<[1], [0], [0], [1], [0, 0, 1, 1], [], []>} : vector<288x16xbf16>, vector<16x128xbf16>, vector<288x128xf32> -> vector<288x128xf32>
    %7 = arith.addf %0, %6 : vector<288x128xf32>
    %c0_6 = arith.constant 0 : index
    %c1 = arith.constant 1 : index
    %c0_7 = arith.constant 0 : index
    %8 = vector.load %arg1[%c0_6, %c1, %c0_7] : memref<1x328x16xf32, #tpu.memory_space<vmem>>, vector<1x288x16xf32>
    %9 = vector.shape_cast %8 : vector<1x288x16xf32> to vector<288x16xf32>
    %10 = arith.truncf %9 : vector<288x16xf32> to vector<288x16xbf16>
    %c1_8 = arith.constant 1 : index
    %c0_9 = arith.constant 0 : index
    %c0_10 = arith.constant 0 : index
    %11 = vector.load %arg2[%c1_8, %c0_9, %c0_10] : memref<9x16x128xbf16, #tpu.memory_space<vmem>>, vector<1x16x128xbf16>
    %12 = vector.shape_cast %11 : vector<1x16x128xbf16> to vector<16x128xbf16>
    %cst_11 = arith.constant dense<0.000000e+00> : vector<288x128xf32>
    %13 = tpu.matmul %10, %12, %cst_11 {dimension_numbers = #tpu.dot_dimension_numbers<[1], [0], [0], [1], [0, 0, 1, 1], [], []>} : vector<288x16xbf16>, vector<16x128xbf16>, vector<288x128xf32> -> vector<288x128xf32>
    %14 = arith.addf %7, %13 : vector<288x128xf32>
    %c0_12 = arith.constant 0 : index
    %c2 = arith.constant 2 : index
    %c0_13 = arith.constant 0 : index
    %15 = vector.load %arg1[%c0_12, %c2, %c0_13] : memref<1x328x16xf32, #tpu.memory_space<vmem>>, vector<1x288x16xf32>
    %16 = vector.shape_cast %15 : vector<1x288x16xf32> to vector<288x16xf32>
    %17 = arith.truncf %16 : vector<288x16xf32> to vector<288x16xbf16>
    %c2_14 = arith.constant 2 : index
    %c0_15 = arith.constant 0 : index
    %c0_16 = arith.constant 0 : index
    %18 = vector.load %arg2[%c2_14, %c0_15, %c0_16] : memref<9x16x128xbf16, #tpu.memory_space<vmem>>, vector<1x16x128xbf16>
    %19 = vector.shape_cast %18 : vector<1x16x128xbf16> to vector<16x128xbf16>
    %cst_17 = arith.constant dense<0.000000e+00> : vector<288x128xf32>
    %20 = tpu.matmul %17, %19, %cst_17 {dimension_numbers = #tpu.dot_dimension_numbers<[1], [0], [0], [1], [0, 0, 1, 1], [], []>} : vector<288x16xbf16>, vector<16x128xbf16>, vector<288x128xf32> -> vector<288x128xf32>
    %21 = arith.addf %14, %20 : vector<288x128xf32>
    %c0_18 = arith.constant 0 : index
    %c18 = arith.constant 18 : index
    %c0_19 = arith.constant 0 : index
    %22 = vector.load %arg1[%c0_18, %c18, %c0_19] : memref<1x328x16xf32, #tpu.memory_space<vmem>>, vector<1x288x16xf32>
    %23 = vector.shape_cast %22 : vector<1x288x16xf32> to vector<288x16xf32>
    %24 = arith.truncf %23 : vector<288x16xf32> to vector<288x16xbf16>
    %c3 = arith.constant 3 : index
    %c0_20 = arith.constant 0 : index
    %c0_21 = arith.constant 0 : index
    %25 = vector.load %arg2[%c3, %c0_20, %c0_21] : memref<9x16x128xbf16, #tpu.memory_space<vmem>>, vector<1x16x128xbf16>
    %26 = vector.shape_cast %25 : vector<1x16x128xbf16> to vector<16x128xbf16>
    %cst_22 = arith.constant dense<0.000000e+00> : vector<288x128xf32>
    %27 = tpu.matmul %24, %26, %cst_22 {dimension_numbers = #tpu.dot_dimension_numbers<[1], [0], [0], [1], [0, 0, 1, 1], [], []>} : vector<288x16xbf16>, vector<16x128xbf16>, vector<288x128xf32> -> vector<288x128xf32>
    %28 = arith.addf %21, %27 : vector<288x128xf32>
    %c0_23 = arith.constant 0 : index
    %c19 = arith.constant 19 : index
    %c0_24 = arith.constant 0 : index
    %29 = vector.load %arg1[%c0_23, %c19, %c0_24] : memref<1x328x16xf32, #tpu.memory_space<vmem>>, vector<1x288x16xf32>
    %30 = vector.shape_cast %29 : vector<1x288x16xf32> to vector<288x16xf32>
    %31 = arith.truncf %30 : vector<288x16xf32> to vector<288x16xbf16>
    %c4 = arith.constant 4 : index
    %c0_25 = arith.constant 0 : index
    %c0_26 = arith.constant 0 : index
    %32 = vector.load %arg2[%c4, %c0_25, %c0_26] : memref<9x16x128xbf16, #tpu.memory_space<vmem>>, vector<1x16x128xbf16>
    %33 = vector.shape_cast %32 : vector<1x16x128xbf16> to vector<16x128xbf16>
    %cst_27 = arith.constant dense<0.000000e+00> : vector<288x128xf32>
    %34 = tpu.matmul %31, %33, %cst_27 {dimension_numbers = #tpu.dot_dimension_numbers<[1], [0], [0], [1], [0, 0, 1, 1], [], []>} : vector<288x16xbf16>, vector<16x128xbf16>, vector<288x128xf32> -> vector<288x128xf32>
    %35 = arith.addf %28, %34 : vector<288x128xf32>
    %c0_28 = arith.constant 0 : index
    %c20 = arith.constant 20 : index
    %c0_29 = arith.constant 0 : index
    %36 = vector.load %arg1[%c0_28, %c20, %c0_29] : memref<1x328x16xf32, #tpu.memory_space<vmem>>, vector<1x288x16xf32>
    %37 = vector.shape_cast %36 : vector<1x288x16xf32> to vector<288x16xf32>
    %38 = arith.truncf %37 : vector<288x16xf32> to vector<288x16xbf16>
    %c5 = arith.constant 5 : index
    %c0_30 = arith.constant 0 : index
    %c0_31 = arith.constant 0 : index
    %39 = vector.load %arg2[%c5, %c0_30, %c0_31] : memref<9x16x128xbf16, #tpu.memory_space<vmem>>, vector<1x16x128xbf16>
    %40 = vector.shape_cast %39 : vector<1x16x128xbf16> to vector<16x128xbf16>
    %cst_32 = arith.constant dense<0.000000e+00> : vector<288x128xf32>
    %41 = tpu.matmul %38, %40, %cst_32 {dimension_numbers = #tpu.dot_dimension_numbers<[1], [0], [0], [1], [0, 0, 1, 1], [], []>} : vector<288x16xbf16>, vector<16x128xbf16>, vector<288x128xf32> -> vector<288x128xf32>
    %42 = arith.addf %35, %41 : vector<288x128xf32>
    %c0_33 = arith.constant 0 : index
    %c36 = arith.constant 36 : index
    %c0_34 = arith.constant 0 : index
    %43 = vector.load %arg1[%c0_33, %c36, %c0_34] : memref<1x328x16xf32, #tpu.memory_space<vmem>>, vector<1x288x16xf32>
    %44 = vector.shape_cast %43 : vector<1x288x16xf32> to vector<288x16xf32>
    %45 = arith.truncf %44 : vector<288x16xf32> to vector<288x16xbf16>
    %c6 = arith.constant 6 : index
    %c0_35 = arith.constant 0 : index
    %c0_36 = arith.constant 0 : index
    %46 = vector.load %arg2[%c6, %c0_35, %c0_36] : memref<9x16x128xbf16, #tpu.memory_space<vmem>>, vector<1x16x128xbf16>
    %47 = vector.shape_cast %46 : vector<1x16x128xbf16> to vector<16x128xbf16>
    %cst_37 = arith.constant dense<0.000000e+00> : vector<288x128xf32>
    %48 = tpu.matmul %45, %47, %cst_37 {dimension_numbers = #tpu.dot_dimension_numbers<[1], [0], [0], [1], [0, 0, 1, 1], [], []>} : vector<288x16xbf16>, vector<16x128xbf16>, vector<288x128xf32> -> vector<288x128xf32>
    %49 = arith.addf %42, %48 : vector<288x128xf32>
    %c0_38 = arith.constant 0 : index
    %c37 = arith.constant 37 : index
    %c0_39 = arith.constant 0 : index
    %50 = vector.load %arg1[%c0_38, %c37, %c0_39] : memref<1x328x16xf32, #tpu.memory_space<vmem>>, vector<1x288x16xf32>
    %51 = vector.shape_cast %50 : vector<1x288x16xf32> to vector<288x16xf32>
    %52 = arith.truncf %51 : vector<288x16xf32> to vector<288x16xbf16>
    %c7 = arith.constant 7 : index
    %c0_40 = arith.constant 0 : index
    %c0_41 = arith.constant 0 : index
    %53 = vector.load %arg2[%c7, %c0_40, %c0_41] : memref<9x16x128xbf16, #tpu.memory_space<vmem>>, vector<1x16x128xbf16>
    %54 = vector.shape_cast %53 : vector<1x16x128xbf16> to vector<16x128xbf16>
    %cst_42 = arith.constant dense<0.000000e+00> : vector<288x128xf32>
    %55 = tpu.matmul %52, %54, %cst_42 {dimension_numbers = #tpu.dot_dimension_numbers<[1], [0], [0], [1], [0, 0, 1, 1], [], []>} : vector<288x16xbf16>, vector<16x128xbf16>, vector<288x128xf32> -> vector<288x128xf32>
    %56 = arith.addf %49, %55 : vector<288x128xf32>
    %c0_43 = arith.constant 0 : index
    %c38 = arith.constant 38 : index
    %c0_44 = arith.constant 0 : index
    %57 = vector.load %arg1[%c0_43, %c38, %c0_44] : memref<1x328x16xf32, #tpu.memory_space<vmem>>, vector<1x288x16xf32>
    %58 = vector.shape_cast %57 : vector<1x288x16xf32> to vector<288x16xf32>
    %59 = arith.truncf %58 : vector<288x16xf32> to vector<288x16xbf16>
    %c8 = arith.constant 8 : index
    %c0_45 = arith.constant 0 : index
    %c0_46 = arith.constant 0 : index
    %60 = vector.load %arg2[%c8, %c0_45, %c0_46] : memref<9x16x128xbf16, #tpu.memory_space<vmem>>, vector<1x16x128xbf16>
    %61 = vector.shape_cast %60 : vector<1x16x128xbf16> to vector<16x128xbf16>
    %cst_47 = arith.constant dense<0.000000e+00> : vector<288x128xf32>
    %62 = tpu.matmul %59, %61, %cst_47 {dimension_numbers = #tpu.dot_dimension_numbers<[1], [0], [0], [1], [0, 0, 1, 1], [], []>} : vector<288x16xbf16>, vector<16x128xbf16>, vector<288x128xf32> -> vector<288x128xf32>
    %63 = arith.addf %56, %62 : vector<288x128xf32>
    %c0_48 = arith.constant 0 : index
    %c0_49 = arith.constant 0 : index
    %64 = vector.load %arg3[%c0_48, %c0_49] : memref<1x128xf32, #tpu.memory_space<vmem>>, vector<1x128xf32>
    %65 = vector.broadcast %64 : vector<1x128xf32> to vector<288x128xf32>
    %66 = arith.addf %63, %65 : vector<288x128xf32>
    %cst_50 = arith.constant 0.000000e+00 : f32
    %67 = vector.broadcast %cst_50 : f32 to vector<288x128xf32>
    %68 = arith.maximumf %66, %67 : vector<288x128xf32>
    %69 = arith.truncf %68 : vector<288x128xf32> to vector<288x128xbf16>
    %c0_51 = arith.constant 0 : index
    %c0_52 = arith.constant 0 : index
    %c0_53 = arith.constant 0 : index
    %70 = vector.load %arg4[%c0_51, %c0_52, %c0_53] : memref<1x288x128xbf16, #tpu.memory_space<vmem>>, vector<1x288x128xbf16>
    %71 = vector.shape_cast %70 : vector<1x288x128xbf16> to vector<288x128xbf16>
    %72 = vector.shape_cast %69 : vector<288x128xbf16> to vector<1x288x128xbf16>
    tpu.vector_store %arg4[%c0_51, %c0_52, %c0_53], %72 {strides = array<i32>} : memref<1x288x128xbf16, #tpu.memory_space<vmem>>, vector<1x288x128xbf16>,
    return
  }
  func.func @transform_0(%arg0: i32) -> (i32, i32, i32) {
    %c0_i32 = arith.constant 0 : i32
    %c0_i32_0 = arith.constant 0 : i32
    %c0_i32_1 = arith.constant 0 : i32
    return %arg0, %c0_i32, %c0_i32_0 : i32, i32, i32
  }
  func.func @transform_1(%arg0: i32) -> (i32, i32, i32) {
    %c0_i32 = arith.constant 0 : i32
    %c0_i32_0 = arith.constant 0 : i32
    %c0_i32_1 = arith.constant 0 : i32
    %c0_i32_2 = arith.constant 0 : i32
    return %c0_i32, %c0_i32_0, %c0_i32_1 : i32, i32, i32
  }
  func.func @transform_2(%arg0: i32) -> (i32, i32) {
    %c0_i32 = arith.constant 0 : i32
    %c0_i32_0 = arith.constant 0 : i32
    %c0_i32_1 = arith.constant 0 : i32
    return %c0_i32, %c0_i32_0 : i32, i32
  }
  func.func @transform_3(%arg0: i32) -> (i32, i32, i32) {
    %c0_i32 = arith.constant 0 : i32
    %c0_i32_0 = arith.constant 0 : i32
    %c0_i32_1 = arith.constant 0 : i32
    return %arg0, %c0_i32, %c0_i32_0 : i32, i32, i32
  }
}

module attributes {stable_mosaic.version = 11 : i64} {
  func.func @_attn_kernel(%arg0: i32, %arg1: memref<4x16x256xbf16, #tpu.memory_space<vmem>>, %arg2: memref<4x16x256xbf16, #tpu.memory_space<vmem>>, %arg3: memref<4x16x256xbf16, #tpu.memory_space<vmem>>) attributes {dimension_semantics = [#tpu.dimension_semantics<parallel>], iteration_bounds = array<i64: 2>, scalar_prefetch = 0 : i64, scratch_operands = 0 : i64, tpu.core_type = #tpu.core_type<tc>, window_params = [{transform_indices = @transform_0, window_bounds = array<i64: 4, 16, 256>}, {transform_indices = @transform_1, window_bounds = array<i64: 4, 16, 256>}, {transform_indices = @transform_2, window_bounds = array<i64: 4, 16, 256>}]} {
    %c0 = arith.constant 0 : index
    %c0_0 = arith.constant 0 : index
    %c0_1 = arith.constant 0 : index
    %0 = vector.load %arg1[%c0, %c0_0, %c0_1] : memref<4x16x256xbf16, #tpu.memory_space<vmem>>, vector<4x16x256xbf16>
    %c0_2 = arith.constant 0 : index
    %c0_3 = arith.constant 0 : index
    %c0_4 = arith.constant 0 : index
    %1 = vector.load %arg2[%c0_2, %c0_3, %c0_4] : memref<4x16x256xbf16, #tpu.memory_space<vmem>>, vector<4x16x256xbf16>
    "tpu.trace_start"() <{level = 10 : i32, message = "hqd,hkd->hqk"}> : () -> ()
    %cst = arith.constant dense<0.000000e+00> : vector<4x16x16xf32>
    %2 = tpu.matmul %0, %1, %cst {dimension_numbers = #tpu.dot_dimension_numbers<[2], [2], [1], [1], [0, 0, 0, 1, 1, 1], [0], [0]>} : vector<4x16x256xbf16>, vector<4x16x256xbf16>, vector<4x16x16xf32> -> vector<4x16x16xf32>
    "tpu.trace_stop"() : () -> ()
    %cst_5 = arith.constant 2.500000e-01 : f32
    %3 = vector.broadcast %cst_5 : f32 to vector<4x16x16xf32>
    %4 = arith.mulf %2, %3 : vector<4x16x16xf32>
    %cst_6 = arith.constant dense<0xFF800000> : vector<4x16xf32>
    %5 = vector.multi_reduction <maximumf>, %4, %cst_6 [2] : vector<4x16x16xf32> to vector<4x16xf32>
    %6 = vector.shape_cast %5 : vector<4x16xf32> to vector<4x16x1xf32>
    %7 = vector.broadcast %6 : vector<4x16x1xf32> to vector<4x16x16xf32>
    %8 = arith.subf %4, %7 : vector<4x16x16xf32>
    %9 = math.exp %8 : vector<4x16x16xf32>
    %cst_7 = arith.constant dense<0.000000e+00> : vector<4x16xf32>
    %10 = vector.multi_reduction <add>, %9, %cst_7 [2] : vector<4x16x16xf32> to vector<4x16xf32>
    %11 = vector.shape_cast %10 : vector<4x16xf32> to vector<4x16x1xf32>
    %12 = tpu.reciprocal %11 {approx = true} : vector<4x16x1xf32> -> vector<4x16x1xf32>
    %13 = vector.broadcast %12 : vector<4x16x1xf32> to vector<4x16x16xf32>
    %14 = arith.mulf %9, %13 : vector<4x16x16xf32>
    %15 = arith.truncf %14 : vector<4x16x16xf32> to vector<4x16x16xbf16>
    %16 = arith.addf %0, %1 : vector<4x16x256xbf16>
    %cst_8 = arith.constant 5.000000e-01 : bf16
    %17 = vector.broadcast %cst_8 : bf16 to vector<4x16x256xbf16>
    %18 = arith.mulf %16, %17 : vector<4x16x256xbf16>
    "tpu.trace_start"() <{level = 10 : i32, message = "hqk,hkd->hqd"}> : () -> ()
    %cst_9 = arith.constant dense<0.000000e+00> : vector<4x16x256xf32>
    %19 = tpu.matmul %15, %18, %cst_9 {dimension_numbers = #tpu.dot_dimension_numbers<[2], [1], [1], [2], [0, 0, 0, 1, 1, 2], [0], [0]>} : vector<4x16x16xbf16>, vector<4x16x256xbf16>, vector<4x16x256xf32> -> vector<4x16x256xf32>
    "tpu.trace_stop"() : () -> ()
    %20 = arith.truncf %19 : vector<4x16x256xf32> to vector<4x16x256xbf16>
    %c0_10 = arith.constant 0 : index
    %c0_11 = arith.constant 0 : index
    %c0_12 = arith.constant 0 : index
    %21 = vector.load %arg3[%c0_10, %c0_11, %c0_12] : memref<4x16x256xbf16, #tpu.memory_space<vmem>>, vector<4x16x256xbf16>
    tpu.vector_store %arg3[%c0_10, %c0_11, %c0_12], %20 {strides = array<i32>} : memref<4x16x256xbf16, #tpu.memory_space<vmem>>, vector<4x16x256xbf16>,
    return
  }
  func.func @transform_0(%arg0: i32) -> (i32, i32, i32) {
    %c0_i32 = arith.constant 0 : i32
    %c0_i32_0 = arith.constant 0 : i32
    %c0_i32_1 = arith.constant 0 : i32
    return %arg0, %c0_i32, %c0_i32_0 : i32, i32, i32
  }
  func.func @transform_1(%arg0: i32) -> (i32, i32, i32) {
    %c0_i32 = arith.constant 0 : i32
    %c0_i32_0 = arith.constant 0 : i32
    %c0_i32_1 = arith.constant 0 : i32
    return %arg0, %c0_i32, %c0_i32_0 : i32, i32, i32
  }
  func.func @transform_2(%arg0: i32) -> (i32, i32, i32) {
    %c0_i32 = arith.constant 0 : i32
    %c0_i32_0 = arith.constant 0 : i32
    %c0_i32_1 = arith.constant 0 : i32
    return %arg0, %c0_i32, %c0_i32_0 : i32, i32, i32
  }
}

module attributes {stable_mosaic.version = 11 : i64} {
  func.func @_pw_kernel(%arg0: i32, %arg1: memref<256x64xbf16, #tpu.memory_space<vmem>>, %arg2: memref<64x16xbf16, #tpu.memory_space<vmem>>, %arg3: memref<1x16xf32, #tpu.memory_space<vmem>>, %arg4: memref<256x16xbf16, #tpu.memory_space<vmem>>) attributes {dimension_semantics = [#tpu.dimension_semantics<parallel>], iteration_bounds = array<i64: 2>, scalar_prefetch = 0 : i64, scratch_operands = 0 : i64, tpu.core_type = #tpu.core_type<tc>, window_params = [{transform_indices = @transform_0, window_bounds = array<i64: 256, 64>}, {pipeline_mode = #tpu.pipeline_mode<synchronous>, transform_indices = @transform_1, window_bounds = array<i64: 64, 16>}, {pipeline_mode = #tpu.pipeline_mode<synchronous>, transform_indices = @transform_2, window_bounds = array<i64: 1, 16>}, {transform_indices = @transform_3, window_bounds = array<i64: 256, 16>}]} {
    %c0 = arith.constant 0 : index
    %c0_0 = arith.constant 0 : index
    %0 = vector.load %arg1[%c0, %c0_0] : memref<256x64xbf16, #tpu.memory_space<vmem>>, vector<256x64xbf16>
    %c0_1 = arith.constant 0 : index
    %c0_2 = arith.constant 0 : index
    %1 = vector.load %arg2[%c0_1, %c0_2] : memref<64x16xbf16, #tpu.memory_space<vmem>>, vector<64x16xbf16>
    %cst = arith.constant dense<0.000000e+00> : vector<256x16xf32>
    %2 = tpu.matmul %0, %1, %cst {dimension_numbers = #tpu.dot_dimension_numbers<[1], [0], [0], [1], [0, 0, 1, 1], [], []>} : vector<256x64xbf16>, vector<64x16xbf16>, vector<256x16xf32> -> vector<256x16xf32>
    %cst_3 = arith.constant 0.000000e+00 : f32
    %3 = vector.broadcast %cst_3 : f32 to vector<256x16xf32>
    %4 = arith.cmpf oge, %2, %3 : vector<256x16xf32>
    %c0_4 = arith.constant 0 : index
    %c0_5 = arith.constant 0 : index
    %5 = vector.load %arg3[%c0_4, %c0_5] : memref<1x16xf32, #tpu.memory_space<vmem>>, vector<1x16xf32>
    %6 = vector.broadcast %5 : vector<1x16xf32> to vector<256x16xf32>
    %7 = arith.mulf %2, %6 : vector<256x16xf32>
    %8 = arith.select %4, %2, %7 : vector<256x16xi1>, vector<256x16xf32>
    %9 = arith.truncf %8 : vector<256x16xf32> to vector<256x16xbf16>
    %c0_6 = arith.constant 0 : index
    %c0_7 = arith.constant 0 : index
    %10 = vector.load %arg4[%c0_6, %c0_7] : memref<256x16xbf16, #tpu.memory_space<vmem>>, vector<256x16xbf16>
    tpu.vector_store %arg4[%c0_6, %c0_7], %9 {strides = array<i32>} : memref<256x16xbf16, #tpu.memory_space<vmem>>, vector<256x16xbf16>,
    return
  }
  func.func @transform_0(%arg0: i32) -> (i32, i32) {
    %c0_i32 = arith.constant 0 : i32
    %c0_i32_0 = arith.constant 0 : i32
    return %arg0, %c0_i32 : i32, i32
  }
  func.func @transform_1(%arg0: i32) -> (i32, i32) {
    %c0_i32 = arith.constant 0 : i32
    %c0_i32_0 = arith.constant 0 : i32
    %c0_i32_1 = arith.constant 0 : i32
    return %c0_i32, %c0_i32_0 : i32, i32
  }
  func.func @transform_2(%arg0: i32) -> (i32, i32) {
    %c0_i32 = arith.constant 0 : i32
    %c0_i32_0 = arith.constant 0 : i32
    %c0_i32_1 = arith.constant 0 : i32
    return %c0_i32, %c0_i32_0 : i32, i32
  }
  func.func @transform_3(%arg0: i32) -> (i32, i32) {
    %c0_i32 = arith.constant 0 : i32
    %c0_i32_0 = arith.constant 0 : i32
    return %arg0, %c0_i32 : i32, i32
  }
}

module attributes {stable_mosaic.version = 11 : i64} {
  func.func @_pw_kernel(%arg0: i32, %arg1: memref<256x16xbf16, #tpu.memory_space<vmem>>, %arg2: memref<16x16xbf16, #tpu.memory_space<vmem>>, %arg3: memref<1x16xf32, #tpu.memory_space<vmem>>, %arg4: memref<256x16xf32, #tpu.memory_space<vmem>>) attributes {dimension_semantics = [#tpu.dimension_semantics<parallel>], iteration_bounds = array<i64: 2>, scalar_prefetch = 0 : i64, scratch_operands = 0 : i64, tpu.core_type = #tpu.core_type<tc>, window_params = [{transform_indices = @transform_0, window_bounds = array<i64: 256, 16>}, {pipeline_mode = #tpu.pipeline_mode<synchronous>, transform_indices = @transform_1, window_bounds = array<i64: 16, 16>}, {pipeline_mode = #tpu.pipeline_mode<synchronous>, transform_indices = @transform_2, window_bounds = array<i64: 1, 16>}, {transform_indices = @transform_3, window_bounds = array<i64: 256, 16>}]} {
    %c0 = arith.constant 0 : index
    %c0_0 = arith.constant 0 : index
    %0 = vector.load %arg1[%c0, %c0_0] : memref<256x16xbf16, #tpu.memory_space<vmem>>, vector<256x16xbf16>
    %c0_1 = arith.constant 0 : index
    %c0_2 = arith.constant 0 : index
    %1 = vector.load %arg2[%c0_1, %c0_2] : memref<16x16xbf16, #tpu.memory_space<vmem>>, vector<16x16xbf16>
    %cst = arith.constant dense<0.000000e+00> : vector<256x16xf32>
    %2 = tpu.matmul %0, %1, %cst {dimension_numbers = #tpu.dot_dimension_numbers<[1], [0], [0], [1], [0, 0, 1, 1], [], []>} : vector<256x16xbf16>, vector<16x16xbf16>, vector<256x16xf32> -> vector<256x16xf32>
    %cst_3 = arith.constant 0.000000e+00 : f32
    %3 = vector.broadcast %cst_3 : f32 to vector<256x16xf32>
    %4 = arith.cmpf oge, %2, %3 : vector<256x16xf32>
    %c0_4 = arith.constant 0 : index
    %c0_5 = arith.constant 0 : index
    %5 = vector.load %arg3[%c0_4, %c0_5] : memref<1x16xf32, #tpu.memory_space<vmem>>, vector<1x16xf32>
    %6 = vector.broadcast %5 : vector<1x16xf32> to vector<256x16xf32>
    %7 = arith.mulf %2, %6 : vector<256x16xf32>
    %8 = arith.select %4, %2, %7 : vector<256x16xi1>, vector<256x16xf32>
    %c0_6 = arith.constant 0 : index
    %c0_7 = arith.constant 0 : index
    %9 = vector.load %arg4[%c0_6, %c0_7] : memref<256x16xf32, #tpu.memory_space<vmem>>, vector<256x16xf32>
    tpu.vector_store %arg4[%c0_6, %c0_7], %8 {strides = array<i32>} : memref<256x16xf32, #tpu.memory_space<vmem>>, vector<256x16xf32>,
    return
  }
  func.func @transform_0(%arg0: i32) -> (i32, i32) {
    %c0_i32 = arith.constant 0 : i32
    %c0_i32_0 = arith.constant 0 : i32
    return %arg0, %c0_i32 : i32, i32
  }
  func.func @transform_1(%arg0: i32) -> (i32, i32) {
    %c0_i32 = arith.constant 0 : i32
    %c0_i32_0 = arith.constant 0 : i32
    %c0_i32_1 = arith.constant 0 : i32
    return %c0_i32, %c0_i32_0 : i32, i32
  }
  func.func @transform_2(%arg0: i32) -> (i32, i32) {
    %c0_i32 = arith.constant 0 : i32
    %c0_i32_0 = arith.constant 0 : i32
    %c0_i32_1 = arith.constant 0 : i32
    return %c0_i32, %c0_i32_0 : i32, i32
  }
  func.func @transform_3(%arg0: i32) -> (i32, i32) {
    %c0_i32 = arith.constant 0 : i32
    %c0_i32_0 = arith.constant 0 : i32
    return %arg0, %c0_i32 : i32, i32
  }
}

</mosaic_0001>

<bundles_post_ra>
// kernel: a_call__.4
= control target key start
LH: loop header
LB: loop body
LE: loop exit
PB: predicated region body
PF: predicated region fallthrough
CT: control target
= control target key end

     0   :  { %8 = vsyncpa [#allocation3], 0  ;;  %s3919_s0 = inlined_call_operand.vmem [shape: f32[2,328,16], index: 0, kind: input, shape index: {}]   ;;  %s3920_s1 = inlined_call_operand.hbm [shape: bf16[9,16,128], index: 1, kind: input, shape index: {}]   ;;  %s3921_s2 = inlined_call_operand.hbm [shape: f32[1,128], index: 2, kind: input, shape index: {}]   ;;  %s3922_s3 = inlined_call_operand.vmem [shape: bf16[2,288,128], index: 3, kind: output, shape index: {}]  }
   0x1   :  { %9 = vsyncpa [#allocation5], 0  ;;  %s3089_s12 = smov 0  }
   0x2 LB: > { %s125_s15 = sshll.u32 %s3920_s1, 4  ;;  %s2625_s16 = sadd.s32 4294967295, %s3063_s12   ;;  %s3063_s12 = sphi %s3089_s12, %s15_s12   ;;  %s126_s15 = int_to_ptr.hbm [resolvable:$true] %s125_s15 }
   0x3   : > { %p2627_p0 = scmp.ge.s32.totalorder %s3063_s12, 1  ;;  %p114_p1 = scmp.lt.s32.totalorder %s3063_s12, 3 }
   0x4   : > { %p2972_p2 = scmp.eq.s32.totalorder %s2625_s16, 0  ;;  %s3065_s18 = smov [#allocation2]  }
   0x5   : > { %p3100_p3 = pnand %p2627_p0, %p114_p1  ;;  %s127_s19 = sshll.u32 %s3065_s18, 4  ;;  %s128_s19 = int_to_ptr.vmem [resolvable:$true] %s127_s19 }
   0x6   : > { %s140_s22 = sshll.u32 %s3921_s2, 4  ;;  %s3066_s23 = smov [#allocation4]   ;;  %s141_s22 = int_to_ptr.hbm [resolvable:$true] %s140_s22 }
   0x7   : > { %p2965_p4 = pneg %p3100_p3  ;;  %s142_s24 = sshll.u32 %s3066_s23, 4  ;;  %s143_s24 = int_to_ptr.vmem [resolvable:$true] %s142_s24 }
   0x8   : > { %s3067_s25 = smov 64   ;;  %s3068_s26 = smov 4  }
   0x9   : > { %p2966_p5 = pnand %p2972_p2, %p2965_p4  ;;  %163 = sbr.rel (%p3100_p3) target bundleno = 820 (0x334), region = 32 }
   0xb   : > { %2968 = dma.hbm_to_vmem [thread:$0]  (!%p2966_p5), %s126_s15, 1152, %s128_s19, [#allocation3], %s3067_s25, %s3067_s25, %s3068_s26  }
   0xc   : > { %2971 = dma.hbm_to_vmem [thread:$0]  (!%p2966_p5), %s141_s22, 16, %s143_s24, [#allocation5]  }
   0xe   : > { %3054 = dma.done.wait (%p2972_p2), [#allocation3], 1152  }
   0xf   : > { %3056 = vsyncadd (%p2972_p2), [#allocation3], 4294966144 }
  0x10   : > { %3058 = dma.done.wait (%p2972_p2), [#allocation5], 16  }
  0x11   : > { %3060 = vsyncadd (%p2972_p2), [#allocation5], 4294967280  ;;  %p193_p6 = scmp.lt.s32.totalorder %s2625_s16, 1  ;;  %v2837_v0 = vld [vmem:[#allocation2 + $0x8] sm:$0xff]  ;;  %v2838_v6 = vld [vmem:[#allocation2 + $0x10] sm:$0xff]  ;;  %vm323_vm0 = vcmask 130048  }
  0x12   : > { %2952 = vmatpush.bf16.msra.mxu1 %v2837_v0  ;;  %2953 = vmatpush.bf16.msra.mxu2 %v2837_v0  ;;  %v2836_v10 = vld [vmem:[#allocation2] sm:$0xff]  ;;  %v2839_v16 = vld [vmem:[#allocation2 + $0x18] sm:$0xff]  ;;  %v2842_v53 = vld [vmem:[#allocation2 + $0x30] sm:$0xff] }
  0x13   : > { %s3925_s16 = smov (!%p193_p6, %s2625_s16), 1  ;;  %385 = vmatpush.bf16.msra.mxu0 %v2837_v0  ;;  %v2840_v12 = vld [vmem:[#allocation2 + $0x20] sm:$0xff]  ;;  %2954 = vmatpush.bf16.msra.mxu3 %v2837_v0  ;;  %v2843_v54 = vld [vmem:[#allocation2 + $0x38] sm:$0xff]  ;;  %v2841_v55 = vld [vmem:[#allocation2 + $0x28] sm:$0xff] }
  0x14   : > { %s2955_s27 = smul.u32 328, %s3925_s16  ;;  %v2844_v56 = vld [vmem:[#allocation2 + $0x40] sm:$0xff] }
  0x15   : > { %s2956_s4 = smul.u32 144, %s3925_s16 }
  0x16   : > { %s3122_s30 = scalar_lea.vmem %s3919_s0, %s2955_s27  ;;  %760 = vmatpush.bf16.msrb.mxu2 %v2838_v6  ;;  %544 = vmatpush.bf16.msrb.mxu1 %v2836_v10 }
  0x17   : > { %v270_v1 = vld [vmem:[%s3122_s30 + $0x51] sm:$0xff]  ;;  %v271_v2 = vld [vmem:[%s3122_s30 + $0x59] sm:$0xff]  ;;  %v280_v4 = vld [vmem:[%s3122_s30 + $0xa1] sm:$0xff]  ;;  %1264 = vmatpush.bf16.msrb.mxu0 %v2840_v12  ;;  %1012 = vmatpush.bf16.msrb.mxu3 %v2839_v16  ;;  %s3715_s7 = scalar_lea.vmem %s3922_s3, %s2956_s4 }
  0x18   : > { %v301_v3 = vpack.c.bf16 %v271_v2, %v270_v1  ;;  %v281_v5 = vld [vmem:[%s3122_s30 + $0xa9] sm:$0xff]  ;;  %v260_v8 = vld [vmem:[%s3122_s30 + $0x1] sm:$0xff]  ;;  %v290_v13 = vld [vmem:[%s3122_s30 + $0xf1] sm:$0xff] }
  0x19   : > { %v306_v7 = vpack.c.bf16 %v281_v5, %v280_v4  ;;  %v261_v9 = vld [vmem:[%s3122_s30 + $0x9] sm:$0xff]  ;;  %v291_v14 = vld [vmem:[%s3122_s30 + $0xf9] sm:$0xff]  ;;  %v272_v17 = vld [vmem:[%s3122_s30 + $0x61] sm:$0xff] }
  0x1a   : > { %v296_v11 = vpack.c.bf16 %v261_v9, %v260_v8  ;;  %2645 = vmatmul.msk.bf16.vlgmr.msra.gmra.mxu1 %vm323_vm0, %v301_v3  ;;  %v311_v15 = vpack.c.bf16 %v291_v14, %v290_v13  ;;  %v273_v18 = vld [vmem:[%s3122_s30 + $0x69] sm:$0xff]  ;;  %v282_v19 = vld [vmem:[%s3122_s30 + $0xb1] sm:$0xff]  ;;  %v283_v20 = vld [vmem:[%s3122_s30 + $0xb9] sm:$0xff] }
  0x1b   : > { %2650 = vmatmul.msk.bf16.vlgmr.msra.gmra.mxu2 %vm323_vm0, %v306_v7  ;;  %v262_v21 = vld [vmem:[%s3122_s30 + $0x11] sm:$0xff]  ;;  %v263_v22 = vld [vmem:[%s3122_s30 + $0x19] sm:$0xff]  ;;  %v302_v23 = vpack.c.bf16 %v273_v18, %v272_v17  ;;  %v307_v24 = vpack.c.bf16 %v283_v20, %v282_v19  ;;  %v292_v25 = vld [vmem:[%s3122_s30 + $0x101] sm:$0xff]  ;;  %1516 = vmatpush.bf16.msra.mxu1 %v2841_v55 }
  0x1c   : > { %2640 = vmatmul.msk.bf16.vlgmr.msra.gmra.mxu0 %vm323_vm0, %v296_v11  ;;  %2655 = vmatmul.msk.bf16.vlgmr.msra.gmra.mxu3 %vm323_vm0, %v311_v15  ;;  %v293_v26 = vld [vmem:[%s3122_s30 + $0x109] sm:$0xff]  ;;  %v297_v27 = vpack.c.bf16 %v263_v22, %v262_v21  ;;  %v274_v29 = vld [vmem:[%s3122_s30 + $0x71] sm:$0xff]  ;;  %v275_v30 = vld [vmem:[%s3122_s30 + $0x79] sm:$0xff] }
  0x1d   : > { %v312_v28 = vpack.c.bf16 %v293_v26, %v292_v25  ;;  %v284_v31 = vld [vmem:[%s3122_s30 + $0xc1] sm:$0xff]  ;;  %v285_v32 = vld [vmem:[%s3122_s30 + $0xc9] sm:$0xff]  ;;  %v303_v35 = vpack.c.bf16 %v275_v30, %v274_v29  ;;  %v294_v37 = vld [vmem:[%s3122_s30 + $0x111] sm:$0xff]  ;;  %1768 = vmatpush.bf16.msra.mxu2 %v2842_v53  ;;  %2020 = vmatpush.bf16.msra.mxu3 %v2843_v54 }
  0x1e   : > { %v264_v33 = vld [vmem:[%s3122_s30 + $0x21] sm:$0xff]  ;;  %v265_v34 = vld [vmem:[%s3122_s30 + $0x29] sm:$0xff]  ;;  %v308_v36 = vpack.c.bf16 %v285_v32, %v284_v31  ;;  %v295_v38 = vld [vmem:[%s3122_s30 + $0x119] sm:$0xff]  ;;  %2272 = vmatpush.bf16.msra.mxu0 %v2844_v56 }
  0x1f   : > { %v298_v39 = vpack.c.bf16 %v265_v34, %v264_v33  ;;  %v313_v40 = vpack.c.bf16 %v295_v38, %v294_v37  ;;  %v276_v41 = vld [vmem:[%s3122_s30 + $0x81] sm:$0xff]  ;;  %v277_v42 = vld [vmem:[%s3122_s30 + $0x89] sm:$0xff]  ;;  %v286_v43 = vld [vmem:[%s3122_s30 + $0xd1] sm:$0xff] }
  0x20   : > { %v287_v44 = vld [vmem:[%s3122_s30 + $0xd9] sm:$0xff]  ;;  %v266_v45 = vld [vmem:[%s3122_s30 + $0x31] sm:$0xff]  ;;  %v304_v47 = vpack.c.bf16 %v277_v42, %v276_v41  ;;  %v288_v59 = vld [vmem:[%s3122_s30 + $0xe1] sm:$0xff] }
  0x21   : > { %v267_v46 = vld [vmem:[%s3122_s30 + $0x39] sm:$0xff]  ;;  %v309_v48 = vpack.c.bf16 %v287_v44, %v286_v43  ;;  %v278_v57 = vld [vmem:[%s3122_s30 + $0x91] sm:$0xff]  ;;  %v289_v60 = vld [vmem:[%s3122_s30 + $0xe9] sm:$0xff] }
  0x22   : > { %v888_v49 = vld [vmem:[%s3122_s30 + $0x12] sm:$0xff]  ;;  %v889_v50 = vld [vmem:[%s3122_s30 + $0x1a] sm:$0xff]  ;;  %v299_v51 = vpack.c.bf16 %v267_v46, %v266_v45  ;;  %v269_v62 = vld [vmem:[%s3122_s30 + $0x49] sm:$0xff]  ;;  %v310_v0 = vpack.c.bf16 %v289_v60, %v288_v59 }
  0x23   : > { %v924_v52 = vpack.c.bf16 %v889_v50, %v888_v49  ;;  %v279_v58 = vld [vmem:[%s3122_s30 + $0x99] sm:$0xff]  ;;  %v268_v61 = vld [vmem:[%s3122_s30 + $0x41] sm:$0xff]  ;;  %v891_v2 = vld [vmem:[%s3122_s30 + $0x2a] sm:$0xff] }
  0x24   : > { %v305_v63 = vpack.c.bf16 %v279_v58, %v278_v57  ;;  %v890_v1 = vld [vmem:[%s3122_s30 + $0x22] sm:$0xff]  ;;  %v300_v3 = vpack.c.bf16 %v269_v62, %v268_v61  ;;  %v637_v8 = vld [vmem:[%s3122_s30 + $0xa] sm:$0xff]  ;;  %v1140_v9 = vld [vmem:[%s3122_s30 + $0x13] sm:$0xff] }
  0x25   : > { %v925_v4 = vpack.c.bf16 %v891_v2, %v890_v1  ;;  %v204_v5 = vld [vmem:[%s3122_s30] sm:$0xff]  ;;  %v205_v6 = vld [vmem:[%s3122_s30 + $0x8] sm:$0xff]  ;;  %v892_v13 = vld [vmem:[%s3122_s30 + $0x32] sm:$0xff] }
  0x26   : > { %v636_v7 = vld [vmem:[%s3122_s30 + $0x2] sm:$0xff]  ;;  %v240_v11 = vpack.c.bf16 %v205_v6, %v204_v5  ;;  %v893_v14 = vld [vmem:[%s3122_s30 + $0x3a] sm:$0xff]  ;;  %v206_v17 = vld [vmem:[%s3122_s30 + $0x10] sm:$0xff] }
  0x27   : > { %v1141_v10 = vld [vmem:[%s3122_s30 + $0x1b] sm:$0xff]  ;;  %v672_v12 = vpack.c.bf16 %v637_v8, %v636_v7  ;;  %v926_v16 = vpack.c.bf16 %v893_v14, %v892_v13  ;;  %v1142_v19 = vld [vmem:[%s3122_s30 + $0x23] sm:$0xff]  ;;  %v1143_v20 = vld [vmem:[%s3122_s30 + $0x2b] sm:$0xff] }
  0x28   : > { %v1176_v15 = vpack.c.bf16 %v1141_v10, %v1140_v9  ;;  %v207_v18 = vld [vmem:[%s3122_s30 + $0x18] sm:$0xff]  ;;  %v894_v22 = vld [vmem:[%s3122_s30 + $0x42] sm:$0xff]  ;;  %v1147_v38 = vld [vmem:[%s3122_s30 + $0x4b] sm:$0xff] }
  0x29   : > { %v241_v21 = vpack.c.bf16 %v207_v18, %v206_v17  ;;  %v208_v26 = vld [vmem:[%s3122_s30 + $0x20] sm:$0xff]  ;;  %v896_v31 = vld [vmem:[%s3122_s30 + $0x52] sm:$0xff]  ;;  %v899_v41 = vld [vmem:[%s3122_s30 + $0x6a] sm:$0xff] }
  0x2a   : > { %2646 = vmatmul.msk.bf16.gmra.mxu1 %vm323_vm0, %v302_v23  ;;  %v895_v23 = vld [vmem:[%s3122_s30 + $0x4a] sm:$0xff]  ;;  %v1145_v29 = vld [vmem:[%s3122_s30 + $0x3b] sm:$0xff]  ;;  %v900_v56 = vld [vmem:[%s3122_s30 + $0x72] sm:$0xff] }
  0x2b   : > { %2651 = vmatmul.msk.bf16.gmra.mxu2 %vm323_vm0, %v307_v24  ;;  %v1177_v24 = vpack.c.bf16 %v1143_v20, %v1142_v19  ;;  %v927_v25 = vpack.c.bf16 %v895_v23, %v894_v22  ;;  %v897_v32 = vld [vmem:[%s3122_s30 + $0x5a] sm:$0xff]  ;;  %v1146_v37 = vld [vmem:[%s3122_s30 + $0x43] sm:$0xff]  ;;  %v1151_v6 = vld [vmem:[%s3122_s30 + $0x6b] sm:$0xff] }
  0x2c   : > { %2641 = vmatmul.msk.bf16.gmra.mxu0 %vm323_vm0, %v297_v27  ;;  %2656 = vmatmul.msk.bf16.gmra.mxu3 %vm323_vm0, %v312_v28  ;;  %v209_v27 = vld [vmem:[%s3122_s30 + $0x28] sm:$0xff]  ;;  %v1144_v28 = vld [vmem:[%s3122_s30 + $0x33] sm:$0xff]  ;;  %v928_v34 = vpack.c.bf16 %v897_v32, %v896_v31  ;;  %v1179_v43 = vpack.c.bf16 %v1147_v38, %v1146_v37  ;;  %v212_v50 = vld [vmem:[%s3122_s30 + $0x40] sm:$0xff] }
  0x2d   : > { %v242_v30 = vpack.c.bf16 %v209_v27, %v208_v26  ;;  %v1178_v33 = vpack.c.bf16 %v1145_v29, %v1144_v28  ;;  %v1149_v53 = vld [vmem:[%s3122_s30 + $0x5b] sm:$0xff]  ;;  %v1150_v5 = vld [vmem:[%s3122_s30 + $0x63] sm:$0xff]  ;;  %v1152_v22 = vld [vmem:[%s3122_s30 + $0x73] sm:$0xff] }
  0x2e   : > { %v901_v57 = vld [vmem:[%s3122_s30 + $0x7a] sm:$0xff]  ;;  %v902_v9 = vld [vmem:[%s3122_s30 + $0x82] sm:$0xff]  ;;  %v903_v10 = vld [vmem:[%s3122_s30 + $0x8a] sm:$0xff] }
  0x2f   : > { %v3255_v62 = vpack.c.bf16 %v901_v57, %v900_v56  ;;  %v216_v20 = vld [vmem:[%s3122_s30 + $0x60] sm:$0xff]  ;;  %v904_v26 = vld [vmem:[%s3122_s30 + $0x92] sm:$0xff] }
  0x30   : > { %v1153_v23 = vld [vmem:[%s3122_s30 + $0x7b] sm:$0xff]  ;;  %v218_v37 = vld [vmem:[%s3122_s30 + $0x70] sm:$0xff] }
  0x31   : > { %v905_v27 = vld [vmem:[%s3122_s30 + $0x9a] sm:$0xff]  ;;  %v1182_v29 = vpack.c.bf16 %v1153_v23, %v1152_v22 }
  0x32   : > { %v3313_v32 = vpack.c.bf16 %v905_v27, %v904_v26  ;;  %v219_v38 = vld [vmem:[%s3122_s30 + $0x78] sm:$0xff] }
  0x3a   : > { %2647 = vmatmul.msk.bf16.gmra.mxu1 %vm323_vm0, %v303_v35  ;;  %v210_v35 = vld [vmem:[%s3122_s30 + $0x30] sm:$0xff] }
  0x3b   : > { %2652 = vmatmul.msk.bf16.gmra.mxu2 %vm323_vm0, %v308_v36  ;;  %v211_v36 = vld [vmem:[%s3122_s30 + $0x38] sm:$0xff] }
  0x3c   : > { %2642 = vmatmul.msk.bf16.gmra.mxu0 %vm323_vm0, %v298_v39  ;;  %2657 = vmatmul.msk.bf16.gmra.mxu3 %vm323_vm0, %v313_v40  ;;  %v243_v39 = vpack.c.bf16 %v211_v36, %v210_v35  ;;  %v898_v40 = vld [vmem:[%s3122_s30 + $0x62] sm:$0xff] }
  0x3d   : > { %v3226_v45 = vpack.c.bf16 %v899_v41, %v898_v40  ;;  %v1155_v40 = vld [vmem:[%s3122_s30 + $0x8b] sm:$0xff] }
  0x4a   : > { %2648 = vmatmul.msk.bf16.gmra.mxu1 %vm323_vm0, %v304_v47 }
  0x4b   : > { %2653 = vmatmul.msk.bf16.gmra.mxu2 %vm323_vm0, %v309_v48 }
  0x4c   : > { %2643 = vmatmul.msk.bf16.gmra.mxu0 %vm323_vm0, %v299_v51  ;;  %2706 = vmatmul.msk.bf16.vlgmr.msrb.gmra.mxu3 %vm323_vm0, %v924_v52  ;;  %v213_v51 = vld [vmem:[%s3122_s30 + $0x48] sm:$0xff] }
  0x4d   : > { %v244_v55 = vpack.c.bf16 %v213_v51, %v212_v50  ;;  %v907_v50 = vld [vmem:[%s3122_s30 + $0xaa] sm:$0xff] }
  0x5a   : > { %2649 = vmatmul.msk.bf16.gmra.mxu1 %vm323_vm0, %v305_v63 }
  0x5b   : > { %2654 = vmatmul.msk.bf16.gmra.mxu2 %vm323_vm0, %v310_v0 }
  0x5c   : > { %2644 = vmatmul.msk.bf16.gmra.mxu0 %vm323_vm0, %v300_v3  ;;  %2707 = vmatmul.msk.bf16.gmra.mxu3 %vm323_vm0, %v925_v4  ;;  %v214_v3 = vld [vmem:[%s3122_s30 + $0x50] sm:$0xff] }
  0x6a   : > { %2662 = vmatmul.msk.bf16.vlgmr.msrb.gmra.mxu1 %vm323_vm0, %v240_v11 }
  0x6b   : > { %2684 = vmatmul.msk.bf16.vlgmr.msrb.gmra.mxu2 %vm323_vm0, %v672_v12  ;;  %v1181_v12 = vpack.c.bf16 %v1151_v6, %v1150_v5  ;;  %v220_v5 = vld [vmem:[%s3122_s30 + $0x80] sm:$0xff]  ;;  %v221_v6 = vld [vmem:[%s3122_s30 + $0x88] sm:$0xff] }
  0x6c   : > { %2728 = vmatmul.msk.bf16.vlgmr.msrb.gmra.mxu0 %vm323_vm0, %v1176_v15  ;;  %2708 = vmatmul.msk.bf16.gmra.mxu3 %vm323_vm0, %v926_v16  ;;  %v3284_v15 = vpack.c.bf16 %v903_v10, %v902_v9  ;;  %v1157_v9 = vld [vmem:[%s3122_s30 + $0x9b] sm:$0xff] }
  0x7a   : > { %2663 = vmatmul.msk.bf16.gmra.mxu1 %vm323_vm0, %v241_v21  ;;  %v217_v21 = vld [vmem:[%s3122_s30 + $0x68] sm:$0xff] }
  0x7b   : > { %2685 = vmatmul.msk.bf16.gmra.mxu2 %vm323_vm0, %v924_v52  ;;  %v1148_v52 = vld [vmem:[%s3122_s30 + $0x53] sm:$0xff] }
  0x7c   : > { %2729 = vmatmul.msk.bf16.gmra.mxu0 %vm323_vm0, %v1177_v24  ;;  %2709 = vmatmul.msk.bf16.gmra.mxu3 %vm323_vm0, %v927_v25  ;;  %v1180_v59 = vpack.c.bf16 %v1149_v53, %v1148_v52 }
  0x8a   : > { %2664 = vmatmul.msk.bf16.gmra.mxu1 %vm323_vm0, %v242_v30 }
  0x8b   : > { %2686 = vmatmul.msk.bf16.gmra.mxu2 %vm323_vm0, %v925_v4  ;;  %v215_v4 = vld [vmem:[%s3122_s30 + $0x58] sm:$0xff] }
  0x8c   : > { %2730 = vmatmul.msk.bf16.gmra.mxu0 %vm323_vm0, %v1178_v33  ;;  %2710 = vmatmul.msk.bf16.gmra.mxu3 %vm323_vm0, %v928_v34  ;;  %v245_v8 = vpack.c.bf16 %v215_v4, %v214_v3 }
  0x97   : > { %v3222_v42 = vpop.f32.mrf.mxu1 }
  0x99   : > { %v3224_v44 = vpop.f32.mrf.mxu0 }
  0x9a   : > { %2665 = vmatmul.msk.bf16.gmra.mxu1 %vm323_vm0, %v243_v39  ;;  %v1154_v39 = vld [vmem:[%s3122_s30 + $0x83] sm:$0xff] }
  0x9b   : > { %2687 = vmatmul.msk.bf16.gmra.mxu2 %vm323_vm0, %v926_v16  ;;  %v1183_v52 = vpack.c.bf16 %v1155_v40, %v1154_v39 }
  0x9c   : > { %2731 = vmatmul.msk.bf16.gmra.mxu0 %vm323_vm0, %v1179_v43  ;;  %2711 = vmatmul.msk.bf16.gmra.mxu3 %vm323_vm0, %v3226_v45  ;;  %v247_v43 = vpack.c.bf16 %v219_v38, %v218_v37 }
  0x9e   : > { %v3231_v46 = vpop.f32.mrf.mxu2 }
  0x9f   : > { %v3235_v47 = vpop.f32.mrf.mxu1  ;;  %v3239_v49 = vpop.f32.mrf.mxu3 }
  0xa1   : > { %v3237_v48 = vpop.f32.mrf.mxu0 }
  0xa6   : > { %v3245_v54 = vpop.f32.mrf.mxu2 }
  0xa7   : > { %v3249_v58 = vpop.f32.mrf.mxu1  ;;  %v3253_v61 = vpop.f32.mrf.mxu3 }
  0xa9   : > { %v3251_v60 = vpop.f32.mrf.mxu0 }
  0xaa   : > { %2666 = vmatmul.msk.bf16.gmra.mxu1 %vm323_vm0, %v244_v55 }
  0xab   : > { %2688 = vmatmul.msk.bf16.gmra.mxu2 %vm323_vm0, %v927_v25  ;;  %v246_v25 = vpack.c.bf16 %v217_v21, %v216_v20  ;;  %v909_v20 = vld [vmem:[%s3122_s30 + $0xba] sm:$0xff] }
  0xac   : > { %2732 = vmatmul.msk.bf16.gmra.mxu0 %vm323_vm0, %v1180_v59  ;;  %2712 = vmatmul.msk.bf16.gmra.mxu3 %vm323_vm0, %v3255_v62 }
  0xae   : > { %v3260_v63 = vpop.f32.mrf.mxu2 }
  0xaf   : > { %v3264_v0 = vpop.f32.mrf.mxu1  ;;  %v3268_v2 = vpop.f32.mrf.mxu3 }
  0xb1   : > { %v3266_v1 = vpop.f32.mrf.mxu0 }
  0xb6   : > { %v3274_v7 = vpop.f32.mrf.mxu2 }
  0xb7   : > { %v3278_v11 = vpop.f32.mrf.mxu1  ;;  %v3282_v14 = vpop.f32.mrf.mxu3 }
  0xb9   : > { %v3280_v13 = vpop.f32.mrf.mxu0 }
  0xba   : > { %2667 = vmatmul.msk.bf16.gmra.mxu1 %vm323_vm0, %v245_v8  ;;  %v1156_v8 = vld [vmem:[%s3122_s30 + $0x93] sm:$0xff] }
  0xbb   : > { %2689 = vmatmul.msk.bf16.gmra.mxu2 %vm323_vm0, %v928_v34  ;;  %v1184_v22 = vpack.c.bf16 %v1157_v9, %v1156_v8 }
  0xbc   : > { %2733 = vmatmul.msk.bf16.gmra.mxu0 %vm323_vm0, %v1181_v12  ;;  %2713 = vmatmul.msk.bf16.gmra.mxu3 %vm323_vm0, %v3284_v15  ;;  %v248_v12 = vpack.c.bf16 %v221_v6, %v220_v5  ;;  %v1158_v5 = vld [vmem:[%s3122_s30 + $0xa3] sm:$0xff]  ;;  %v1159_v6 = vld [vmem:[%s3122_s30 + $0xab] sm:$0xff] }
  0xbe   : > { %v3289_v16 = vpop.f32.mrf.mxu2 }
  0xbf   : > { %v3293_v17 = vpop.f32.mrf.mxu1  ;;  %v3297_v19 = vpop.f32.mrf.mxu3 }
  0xc1   : > { %v3295_v18 = vpop.f32.mrf.mxu0 }
  0xc6   : > { %v3303_v24 = vpop.f32.mrf.mxu2 }
  0xc7   : > { %v3307_v28 = vpop.f32.mrf.mxu1  ;;  %v3311_v31 = vpop.f32.mrf.mxu3 }
  0xc9   : > { %v3309_v30 = vpop.f32.mrf.mxu0 }
  0xca   : > { %2668 = vmatmul.msk.bf16.gmra.mxu1 %vm323_vm0, %v246_v25 }
  0xcb   : > { %2690 = vmatmul.msk.bf16.gmra.mxu2 %vm323_vm0, %v3226_v45  ;;  %v906_v45 = vld [vmem:[%s3122_s30 + $0xa2] sm:$0xff] }
  0xcc   : > { %2734 = vmatmul.msk.bf16.gmra.mxu0 %vm323_vm0, %v1182_v29  ;;  %2714 = vmatmul.msk.bf16.gmra.mxu3 %vm323_vm0, %v3313_v32  ;;  %v3339_v56 = vpack.c.bf16 %v907_v50, %v906_v45  ;;  %v222_v50 = vld [vmem:[%s3122_s30 + $0x90] sm:$0xff] }
  0xce   : > { %v3319_v33 = vpop.f32.mrf.mxu2 }
  0xcf   : > { %v3323_v34 = vpop.f32.mrf.mxu1  ;;  %v1014_v36 = vpop.f32.mrf.mxu3 }
  0xd1   : > { %v3325_v35 = vpop.f32.mrf.mxu0 }
  0xd6   : > { %v3331_v41 = vpop.f32.mrf.mxu2 }
  0xd7   : > { %v3335_v51 = vpop.f32.mrf.mxu1  ;;  %v1016_v55 = vpop.f32.mrf.mxu3 }
  0xd9   : > { %v3337_v53 = vpop.f32.mrf.mxu0 }
  0xda   : > { %2669 = vmatmul.msk.bf16.gmra.mxu1 %vm323_vm0, %v247_v43 }
  0xdb   : > { %2691 = vmatmul.msk.bf16.gmra.mxu2 %vm323_vm0, %v3255_v62  ;;  %v908_v62 = vld [vmem:[%s3122_s30 + $0xb2] sm:$0xff] }
  0xdc   : > { %2735 = vmatmul.msk.bf16.gmra.mxu0 %vm323_vm0, %v1183_v52  ;;  %2715 = vmatmul.msk.bf16.gmra.mxu3 %vm323_vm0, %v3339_v56  ;;  %v3361_v26 = vpack.c.bf16 %v909_v20, %v908_v62  ;;  %v223_v52 = vld [vmem:[%s3122_s30 + $0x98] sm:$0xff]  ;;  %v911_v62 = vld [vmem:[%s3122_s30 + $0xca] sm:$0xff] }
  0xdd   : > { %v249_v9 = vpack.c.bf16 %v223_v52, %v222_v50 }
  0xde   : > { %v3345_v57 = vpop.f32.mrf.mxu2 }
  0xdf   : > { %v3349_v59 = vpop.f32.mrf.mxu1  ;;  %v1019_v4 = vpop.f32.mrf.mxu3 }
  0xe1   : > { %v3351_v3 = vpop.f32.mrf.mxu0 }
  0xe6   : > { %v3357_v10 = vpop.f32.mrf.mxu2 }
  0xe7   : > { %v546_v21 = vpop.f32.mrf.mxu1  ;;  %v1021_v25 = vpop.f32.mrf.mxu3 }
  0xe8   : > { %v547_v27 = vadd.f32 %v546_v21, %v3224_v44  ;;  %v1185_v21 = vpack.c.bf16 %v1159_v6, %v1158_v5  ;;  %v1160_v6 = vld [vmem:[%s3122_s30 + $0xb3] sm:$0xff] }
  0xe9   : > { %v1266_v23 = vpop.f32.mrf.mxu0 }
  0xea   : > { %2670 = vmatmul.msk.bf16.gmra.mxu1 %vm323_vm0, %v248_v12  ;;  %v910_v12 = vld [vmem:[%s3122_s30 + $0xc2] sm:$0xff] }
  0xeb   : > { %2692 = vmatmul.msk.bf16.gmra.mxu2 %vm323_vm0, %v3284_v15 }
  0xec   : > { %2736 = vmatmul.msk.bf16.gmra.mxu0 %vm323_vm0, %v1184_v22  ;;  %2716 = vmatmul.msk.bf16.gmra.mxu3 %vm323_vm0, %v3361_v26 }
  0xee   : > { %v762_v29 = vpop.f32.mrf.mxu2 }
  0xef   : > { %v852_v37 = vadd.f32 %v762_v29, %v547_v27  ;;  %v548_v38 = vpop.f32.mrf.mxu1  ;;  %v1024_v43 = vpop.f32.mrf.mxu3 }
  0xf0   : > { %v549_v15 = vadd.f32 %v548_v38, %v3237_v48 }
  0xf1   : > { %v1104_v39 = vadd.f32 %v1014_v36, %v852_v37  ;;  %v1268_v40 = vpop.f32.mrf.mxu0 }
  0xf3   : > { %v3370_v45 = vadd.f32 %v1266_v23, %v1104_v39  ;;  %v3379_v23 = vpack.c.bf16 %v911_v62, %v910_v12  ;;  %v912_v12 = vld [vmem:[%s3122_s30 + $0xd2] sm:$0xff]  ;;  %v913_v62 = vld [vmem:[%s3122_s30 + $0xda] sm:$0xff] }
  0xf6   : > { %v764_v44 = vpop.f32.mrf.mxu2 }
  0xf7   : > { %v853_v8 = vadd.f32 %v764_v44, %v549_v15  ;;  %v551_v20 = vpop.f32.mrf.mxu1  ;;  %v1026_v36 = vpop.f32.mrf.mxu3  ;;  %v1161_v44 = vld [vmem:[%s3122_s30 + $0xbb] sm:$0xff] }
  0xf8   : > { %v552_v29 = vadd.f32 %v551_v20, %v3251_v60 }
  0xf9   : > { %v1105_v22 = vadd.f32 %v1016_v55, %v853_v8  ;;  %v1271_v27 = vpop.f32.mrf.mxu0 }
  0xfa   : > { %2671 = vmatmul.msk.bf16.gmra.mxu1 %vm323_vm0, %v249_v9 }
  0xfb   : > { %2693 = vmatmul.msk.bf16.gmra.mxu2 %vm323_vm0, %v3313_v32  ;;  %v3384_v48 = vadd.f32 %v1268_v40, %v1105_v22  ;;  %v224_v32 = vld [vmem:[%s3122_s30 + $0xa0] sm:$0xff]  ;;  %v225_v40 = vld [vmem:[%s3122_s30 + $0xa8] sm:$0xff] }
  0xfc   : > { %2737 = vmatmul.msk.bf16.gmra.mxu0 %vm323_vm0, %v1185_v21  ;;  %2717 = vmatmul.msk.bf16.gmra.mxu3 %vm323_vm0, %v3379_v23  ;;  %v250_v9 = vpack.c.bf16 %v225_v40, %v224_v32  ;;  %v1186_v21 = vpack.c.bf16 %v1161_v44, %v1160_v6  ;;  %v1162_v44 = vld [vmem:[%s3122_s30 + $0xc3] sm:$0xff] }
  0xfe   : > { %v767_v55 = vpop.f32.mrf.mxu2 }
  0xff   : > { %v854_v37 = vadd.f32 %v767_v55, %v552_v29  ;;  %v553_v38 = vpop.f32.mrf.mxu1  ;;  %v1029_v52 = vpop.f32.mrf.mxu3 }
 0x100   : > { %v554_v5 = vadd.f32 %v553_v38, %v3266_v1 }
 0x101   : > { %v1106_v39 = vadd.f32 %v1019_v4, %v854_v37  ;;  %v1273_v50 = vpop.f32.mrf.mxu0 }
 0x103   : > { %v3390_v15 = vadd.f32 %v1271_v27, %v1106_v39  ;;  %v3399_v27 = vpack.c.bf16 %v913_v62, %v912_v12  ;;  %v914_v12 = vld [vmem:[%s3122_s30 + $0xe2] sm:$0xff]  ;;  %v915_v62 = vld [vmem:[%s3122_s30 + $0xea] sm:$0xff] }
 0x106   : > { %v769_v60 = vpop.f32.mrf.mxu2 }
 0x107   : > { %v855_v8 = vadd.f32 %v769_v60, %v554_v5  ;;  %v556_v20 = vpop.f32.mrf.mxu1  ;;  %v1031_v4 = vpop.f32.mrf.mxu3  ;;  %v1163_v60 = vld [vmem:[%s3122_s30 + $0xcb] sm:$0xff] }
 0x108   : > { %v557_v55 = vadd.f32 %v556_v20, %v3280_v13 }
 0x109   : > { %v1107_v22 = vadd.f32 %v1021_v25, %v855_v8  ;;  %v1276_v29 = vpop.f32.mrf.mxu0 }
 0x10a   : > { %2672 = vmatmul.msk.bf16.gmra.mxu1 %vm323_vm0, %v250_v9 }
 0x10b   : > { %2694 = vmatmul.msk.bf16.gmra.mxu2 %vm323_vm0, %v3339_v56  ;;  %v3404_v1 = vadd.f32 %v1273_v50, %v1107_v22  ;;  %v226_v56 = vld [vmem:[%s3122_s30 + $0xb0] sm:$0xff]  ;;  %v227_v50 = vld [vmem:[%s3122_s30 + $0xb8] sm:$0xff] }
 0x10c   : > { %2738 = vmatmul.msk.bf16.gmra.mxu0 %vm323_vm0, %v1186_v21  ;;  %2718 = vmatmul.msk.bf16.gmra.mxu3 %vm323_vm0, %v3399_v27  ;;  %v251_v9 = vpack.c.bf16 %v227_v50, %v226_v56  ;;  %v1187_v21 = vpack.c.bf16 %v1163_v60, %v1162_v44  ;;  %v1164_v60 = vld [vmem:[%s3122_s30 + $0xd3] sm:$0xff] }
 0x10e   : > { %v772_v25 = vpop.f32.mrf.mxu2 }
 0x10f   : > { %v856_v37 = vadd.f32 %v772_v25, %v557_v55  ;;  %v558_v38 = vpop.f32.mrf.mxu1  ;;  %v1034_v40 = vpop.f32.mrf.mxu3 }
 0x110   : > { %v559_v6 = vadd.f32 %v558_v38, %v3295_v18 }
 0x111   : > { %v1108_v39 = vadd.f32 %v1024_v43, %v856_v37  ;;  %v1278_v32 = vpop.f32.mrf.mxu0 }
 0x113   : > { %v3410_v5 = vadd.f32 %v1276_v29, %v1108_v39  ;;  %v3419_v29 = vpack.c.bf16 %v915_v62, %v914_v12  ;;  %v916_v12 = vld [vmem:[%s3122_s30 + $0xf2] sm:$0xff]  ;;  %v917_v62 = vld [vmem:[%s3122_s30 + $0xfa] sm:$0xff] }
 0x116   : > { %v774_v13 = vpop.f32.mrf.mxu2 }
 0x117   : > { %v857_v8 = vadd.f32 %v774_v13, %v559_v6  ;;  %v561_v20 = vpop.f32.mrf.mxu1  ;;  %v1036_v43 = vpop.f32.mrf.mxu3  ;;  %v1165_v13 = vld [vmem:[%s3122_s30 + $0xdb] sm:$0xff] }
 0x118   : > { %v562_v25 = vadd.f32 %v561_v20, %v3309_v30 }
 0x119   : > { %v1109_v22 = vadd.f32 %v1026_v36, %v857_v8  ;;  %v1281_v55 = vpop.f32.mrf.mxu0 }
 0x11a   : > { %2673 = vmatmul.msk.bf16.gmra.mxu1 %vm323_vm0, %v251_v9 }
 0x11b   : > { %2695 = vmatmul.msk.bf16.gmra.mxu2 %vm323_vm0, %v3361_v26  ;;  %v3424_v18 = vadd.f32 %v1278_v32, %v1109_v22  ;;  %v228_v26 = vld [vmem:[%s3122_s30 + $0xc0] sm:$0xff]  ;;  %v229_v32 = vld [vmem:[%s3122_s30 + $0xc8] sm:$0xff] }
 0x11c   : > { %2739 = vmatmul.msk.bf16.gmra.mxu0 %vm323_vm0, %v1187_v21  ;;  %2719 = vmatmul.msk.bf16.gmra.mxu3 %vm323_vm0, %v3419_v29  ;;  %v252_v9 = vpack.c.bf16 %v229_v32, %v228_v26  ;;  %v1188_v21 = vpack.c.bf16 %v1165_v13, %v1164_v60  ;;  %v1166_v13 = vld [vmem:[%s3122_s30 + $0xe3] sm:$0xff] }
 0x11e   : > { %v777_v36 = vpop.f32.mrf.mxu2 }
 0x11f   : > { %v858_v37 = vadd.f32 %v777_v36, %v562_v25  ;;  %v563_v38 = vpop.f32.mrf.mxu1  ;;  %v1039_v50 = vpop.f32.mrf.mxu3 }
 0x120   : > { %v564_v44 = vadd.f32 %v563_v38, %v3325_v35 }
 0x121   : > { %v1110_v39 = vadd.f32 %v1029_v52, %v858_v37  ;;  %v1283_v56 = vpop.f32.mrf.mxu0 }
 0x123   : > { %v3430_v6 = vadd.f32 %v1281_v55, %v1110_v39  ;;  %v3439_v55 = vpack.c.bf16 %v917_v62, %v916_v12  ;;  %v918_v12 = vld [vmem:[%s3122_s30 + $0x102] sm:$0xff]  ;;  %v919_v62 = vld [vmem:[%s3122_s30 + $0x10a] sm:$0xff] }
 0x126   : > { %v779_v30 = vpop.f32.mrf.mxu2 }
 0x127   : > { %v859_v8 = vadd.f32 %v779_v30, %v564_v44  ;;  %v566_v20 = vpop.f32.mrf.mxu1  ;;  %v1041_v52 = vpop.f32.mrf.mxu3  ;;  %v1167_v30 = vld [vmem:[%s3122_s30 + $0xeb] sm:$0xff] }
 0x128   : > { %v567_v36 = vadd.f32 %v566_v20, %v3337_v53 }
 0x129   : > { %v1111_v22 = vadd.f32 %v1031_v4, %v859_v8  ;;  %v1286_v25 = vpop.f32.mrf.mxu0 }
 0x12a   : > { %2674 = vmatmul.msk.bf16.gmra.mxu1 %vm323_vm0, %v252_v9 }
 0x12b   : > { %2696 = vmatmul.msk.bf16.gmra.mxu2 %vm323_vm0, %v3379_v23  ;;  %v3444_v35 = vadd.f32 %v1283_v56, %v1111_v22  ;;  %v230_v23 = vld [vmem:[%s3122_s30 + $0xd0] sm:$0xff]  ;;  %v231_v56 = vld [vmem:[%s3122_s30 + $0xd8] sm:$0xff] }
 0x12c   : > { %2740 = vmatmul.msk.bf16.gmra.mxu0 %vm323_vm0, %v1188_v21  ;;  %2720 = vmatmul.msk.bf16.gmra.mxu3 %vm323_vm0, %v3439_v55  ;;  %v253_v9 = vpack.c.bf16 %v231_v56, %v230_v23  ;;  %v1189_v21 = vpack.c.bf16 %v1167_v30, %v1166_v13  ;;  %v1168_v30 = vld [vmem:[%s3122_s30 + $0xf3] sm:$0xff] }
 0x12e   : > { %v782_v4 = vpop.f32.mrf.mxu2 }
 0x12f   : > { %v860_v37 = vadd.f32 %v782_v4, %v567_v36  ;;  %v568_v38 = vpop.f32.mrf.mxu1  ;;  %v1044_v32 = vpop.f32.mrf.mxu3 }
 0x130   : > { %v569_v60 = vadd.f32 %v568_v38, %v3351_v3 }
 0x131   : > { %v1112_v39 = vadd.f32 %v1034_v40, %v860_v37  ;;  %v1288_v26 = vpop.f32.mrf.mxu0 }
 0x133   : > { %v3450_v44 = vadd.f32 %v1286_v25, %v1112_v39  ;;  %v3459_v25 = vpack.c.bf16 %v919_v62, %v918_v12  ;;  %v920_v12 = vld [vmem:[%s3122_s30 + $0x112] sm:$0xff]  ;;  %v921_v62 = vld [vmem:[%s3122_s30 + $0x11a] sm:$0xff] }
 0x136   : > { %v784_v53 = vpop.f32.mrf.mxu2 }
 0x137   : > { %v861_v8 = vadd.f32 %v784_v53, %v569_v60  ;;  %v571_v20 = vpop.f32.mrf.mxu1  ;;  %v1046_v40 = vpop.f32.mrf.mxu3  ;;  %v1169_v53 = vld [vmem:[%s3122_s30 + $0xfb] sm:$0xff] }
 0x138   : > { %v572_v4 = vadd.f32 %v571_v20, %v3222_v42 }
 0x139   : > { %v1113_v22 = vadd.f32 %v1036_v43, %v861_v8  ;;  %v1291_v36 = vpop.f32.mrf.mxu0 }
 0x13a   : > { %2675 = vmatmul.msk.bf16.gmra.mxu1 %vm323_vm0, %v253_v9 }
 0x13b   : > { %2697 = vmatmul.msk.bf16.gmra.mxu2 %vm323_vm0, %v3399_v27  ;;  %v3464_v3 = vadd.f32 %v1288_v26, %v1113_v22  ;;  %v232_v27 = vld [vmem:[%s3122_s30 + $0xe0] sm:$0xff]  ;;  %v233_v26 = vld [vmem:[%s3122_s30 + $0xe8] sm:$0xff] }
 0x13c   : > { %2741 = vmatmul.msk.bf16.gmra.mxu0 %vm323_vm0, %v1189_v21  ;;  %2721 = vmatmul.msk.bf16.gmra.mxu3 %vm323_vm0, %v3459_v25  ;;  %v254_v9 = vpack.c.bf16 %v233_v26, %v232_v27  ;;  %v1190_v21 = vpack.c.bf16 %v1169_v53, %v1168_v30  ;;  %v1170_v53 = vld [vmem:[%s3122_s30 + $0x103] sm:$0xff] }
 0x13e   : > { %v787_v43 = vpop.f32.mrf.mxu2 }
 0x13f   : > { %v862_v37 = vadd.f32 %v787_v43, %v572_v4  ;;  %v573_v38 = vpop.f32.mrf.mxu1  ;;  %v1049_v56 = vpop.f32.mrf.mxu3 }
 0x140   : > { %v574_v13 = vadd.f32 %v573_v38, %v3235_v47 }
 0x141   : > { %v1114_v39 = vadd.f32 %v1039_v50, %v862_v37  ;;  %v1293_v23 = vpop.f32.mrf.mxu0 }
 0x143   : > { %v3470_v60 = vadd.f32 %v1291_v36, %v1114_v39  ;;  %v3479_v36 = vpack.c.bf16 %v921_v62, %v920_v12  ;;  %v922_v12 = vld [vmem:[%s3122_s30 + $0x122] sm:$0xff]  ;;  %v923_v62 = vld [vmem:[%s3122_s30 + $0x12a] sm:$0xff] }
 0x146   : > { %v789_v42 = vpop.f32.mrf.mxu2 }
 0x147   : > { %v863_v8 = vadd.f32 %v789_v42, %v574_v13  ;;  %v576_v20 = vpop.f32.mrf.mxu1  ;;  %v1051_v50 = vpop.f32.mrf.mxu3  ;;  %v1171_v42 = vld [vmem:[%s3122_s30 + $0x10b] sm:$0xff] }
 0x148   : > { %v577_v43 = vadd.f32 %v576_v20, %v3249_v58 }
 0x149   : > { %v1115_v22 = vadd.f32 %v1041_v52, %v863_v8  ;;  %v1296_v4 = vpop.f32.mrf.mxu0 }
 0x14a   : > { %2676 = vmatmul.msk.bf16.gmra.mxu1 %vm323_vm0, %v254_v9 }
 0x14b   : > { %2698 = vmatmul.msk.bf16.gmra.mxu2 %vm323_vm0, %v3419_v29  ;;  %v3484_v47 = vadd.f32 %v1293_v23, %v1115_v22  ;;  %v234_v29 = vld [vmem:[%s3122_s30 + $0xf0] sm:$0xff]  ;;  %v235_v23 = vld [vmem:[%s3122_s30 + $0xf8] sm:$0xff] }
 0x14c   : > { %2742 = vmatmul.msk.bf16.gmra.mxu0 %vm323_vm0, %v1190_v21  ;;  %2722 = vmatmul.msk.bf16.gmra.mxu3 %vm323_vm0, %v3479_v36  ;;  %v255_v9 = vpack.c.bf16 %v235_v23, %v234_v29  ;;  %v1191_v21 = vpack.c.bf16 %v1171_v42, %v1170_v53  ;;  %v237_v53 = vld [vmem:[%s3122_s30 + $0x108] sm:$0xff]  ;;  %v1172_v42 = vld [vmem:[%s3122_s30 + $0x113] sm:$0xff] }
 0x14e   : > { %v792_v52 = vpop.f32.mrf.mxu2 }
 0x14f   : > { %v864_v37 = vadd.f32 %v792_v52, %v577_v43  ;;  %v578_v38 = vpop.f32.mrf.mxu1  ;;  %v1054_v26 = vpop.f32.mrf.mxu3 }
 0x150   : > { %v579_v30 = vadd.f32 %v578_v38, %v3264_v0 }
 0x151   : > { %v1116_v39 = vadd.f32 %v1044_v32, %v864_v37  ;;  %v1298_v27 = vpop.f32.mrf.mxu0 }
 0x153   : > { %v3490_v13 = vadd.f32 %v1296_v4, %v1116_v39  ;;  %v941_v4 = vpack.c.bf16 %v923_v62, %v922_v12  ;;  %v1896_v12 = vld [vmem:[%s3122_s30 + $0x25] sm:$0xff]  ;;  %v1897_v62 = vld [vmem:[%s3122_s30 + $0x2d] sm:$0xff] }
 0x156   : > { %v794_v58 = vpop.f32.mrf.mxu2 }
 0x157   : > { %v865_v8 = vadd.f32 %v794_v58, %v579_v30  ;;  %v581_v20 = vpop.f32.mrf.mxu1  ;;  %v1056_v32 = vpop.f32.mrf.mxu3  ;;  %v1173_v58 = vld [vmem:[%s3122_s30 + $0x11b] sm:$0xff] }
 0x158   : > { %v582_v52 = vadd.f32 %v581_v20, %v3278_v11 }
 0x159   : > { %v1117_v22 = vadd.f32 %v1046_v40, %v865_v8  ;;  %v1301_v43 = vpop.f32.mrf.mxu0 }
 0x15a   : > { %2677 = vmatmul.msk.bf16.gmra.mxu1 %vm323_vm0, %v255_v9 }
 0x15b   : > { %2699 = vmatmul.msk.bf16.gmra.mxu2 %vm323_vm0, %v3439_v55  ;;  %v3502_v0 = vadd.f32 %v1298_v27, %v1117_v22  ;;  %v236_v55 = vld [vmem:[%s3122_s30 + $0x100] sm:$0xff] }
 0x15c   : > { %2743 = vmatmul.msk.bf16.gmra.mxu0 %vm323_vm0, %v1191_v21  ;;  %2723 = vmatmul.msk.bf16.gmra.mxu3 %vm323_vm0, %v941_v4  ;;  %v256_v9 = vpack.c.bf16 %v237_v53, %v236_v55  ;;  %v1192_v21 = vpack.c.bf16 %v1173_v58, %v1172_v42  ;;  %v1174_v42 = vld [vmem:[%s3122_s30 + $0x123] sm:$0xff]  ;;  %v1175_v58 = vld [vmem:[%s3122_s30 + $0x12b] sm:$0xff] }
 0x15e   : > { %v797_v37 = vpop.f32.mrf.mxu2 }
 0x15f   : > { %v866_v40 = vadd.f32 %v797_v37, %v582_v52  ;;  %v583_v38 = vpop.f32.mrf.mxu1  ;;  %v1059_v23 = vpop.f32.mrf.mxu3 }
 0x160   : > { %v584_v27 = vadd.f32 %v583_v38, %v3293_v17 }
 0x161   : > { %v1118_v39 = vadd.f32 %v1049_v56, %v866_v40  ;;  %v1303_v29 = vpop.f32.mrf.mxu0 }
 0x163   : > { %v3507_v30 = vadd.f32 %v1301_v43, %v1118_v39  ;;  %v1932_v43 = vpack.c.bf16 %v1897_v62, %v1896_v12  ;;  %v1899_v12 = vld [vmem:[%s3122_s30 + $0x3d] sm:$0xff] }
 0x166   : > { %v799_v8 = vpop.f32.mrf.mxu2 }
 0x167   : > { %v867_v11 = vadd.f32 %v799_v8, %v584_v27  ;;  %v586_v20 = vpop.f32.mrf.mxu1  ;;  %v1061_v56 = vpop.f32.mrf.mxu3  ;;  %v239_v27 = vld [vmem:[%s3122_s30 + $0x118] sm:$0xff] }
 0x168   : > { %v587_v52 = vadd.f32 %v586_v20, %v3307_v28  ;;  %v1193_v20 = vpack.c.bf16 %v1175_v58, %v1174_v42  ;;  %v2148_v58 = vld [vmem:[%s3122_s30 + $0x26] sm:$0xff] }
 0x169   : > { %v1119_v22 = vadd.f32 %v1051_v50, %v867_v11  ;;  %v1306_v4 = vpop.f32.mrf.mxu0 }
 0x16a   : > { %2678 = vmatmul.msk.bf16.gmra.mxu1 %vm323_vm0, %v256_v9  ;;  %v1898_v9 = vld [vmem:[%s3122_s30 + $0x35] sm:$0xff] }
 0x16b   : > { %2700 = vmatmul.msk.bf16.gmra.mxu2 %vm323_vm0, %v3459_v25  ;;  %v3519_v17 = vadd.f32 %v1303_v29, %v1119_v22  ;;  %v238_v25 = vld [vmem:[%s3122_s30 + $0x110] sm:$0xff] }
 0x16c   : > { %2744 = vmatmul.msk.bf16.gmra.mxu0 %vm323_vm0, %v1192_v21  ;;  %2794 = vmatmul.msk.bf16.vlgmr.msra.gmra.mxu3 %vm323_vm0, %v1932_v43  ;;  %v257_v11 = vpack.c.bf16 %v239_v27, %v238_v25  ;;  %v1392_v25 = vld [vmem:[%s3122_s30 + $0x14] sm:$0xff]  ;;  %v1644_v27 = vld [vmem:[%s3122_s30 + $0x24] sm:$0xff] }
 0x16e   : > { %v802_v37 = vpop.f32.mrf.mxu2 }
 0x16f   : > { %v868_v50 = vadd.f32 %v802_v37, %v587_v52  ;;  %v588_v40 = vpop.f32.mrf.mxu1  ;;  %v1064_v55 = vpop.f32.mrf.mxu3 }
 0x170   : > { %v589_v29 = vadd.f32 %v588_v40, %v3323_v34 }
 0x171   : > { %v1120_v38 = vadd.f32 %v1054_v26, %v868_v50  ;;  %v1308_v39 = vpop.f32.mrf.mxu0 }
 0x173   : > { %v3524_v53 = vadd.f32 %v1306_v4, %v1120_v38  ;;  %v1933_v4 = vpack.c.bf16 %v1899_v12, %v1898_v9  ;;  %v1900_v12 = vld [vmem:[%s3122_s30 + $0x45] sm:$0xff] }
 0x176   : > { %v804_v8 = vpop.f32.mrf.mxu2 }
 0x177   : > { %v869_v28 = vadd.f32 %v804_v8, %v589_v29  ;;  %v591_v62 = vpop.f32.mrf.mxu1  ;;  %v1066_v22 = vpop.f32.mrf.mxu3  ;;  %v1645_v29 = vld [vmem:[%s3122_s30 + $0x2c] sm:$0xff] }
 0x178   : > { %v1680_v9 = vpack.c.bf16 %v1645_v29, %v1644_v27  ;;  %v1646_v29 = vld [vmem:[%s3122_s30 + $0x34] sm:$0xff] }
 0x179   : > { %v1121_v21 = vadd.f32 %v1056_v32, %v869_v28  ;;  %v1311_v26 = vpop.f32.mrf.mxu0  ;;  %v592_v32 = vadd.f32 %v591_v62, %v3335_v51  ;;  %v2149_v51 = vld [vmem:[%s3122_s30 + $0x2e] sm:$0xff] }
 0x17a   : > { %2679 = vmatmul.msk.bf16.gmra.mxu1 %vm323_vm0, %v257_v11  ;;  %v1901_v62 = vld [vmem:[%s3122_s30 + $0x4d] sm:$0xff] }
 0x17b   : > { %2701 = vmatmul.msk.bf16.gmra.mxu2 %vm323_vm0, %v3479_v36  ;;  %v3536_v34 = vadd.f32 %v1308_v39, %v1121_v21  ;;  %v1393_v39 = vld [vmem:[%s3122_s30 + $0x1c] sm:$0xff] }
 0x17c   : > { %2745 = vmatmul.msk.bf16.gmra.mxu0 %vm323_vm0, %v1193_v20  ;;  %2795 = vmatmul.msk.bf16.gmra.mxu3 %vm323_vm0, %v1933_v4  ;;  %v1428_v11 = vpack.c.bf16 %v1393_v39, %v1392_v25  ;;  %v2184_v20 = vpack.c.bf16 %v2149_v51, %v2148_v58  ;;  %v2150_v58 = vld [vmem:[%s3122_s30 + $0x36] sm:$0xff]  ;;  %v2151_v51 = vld [vmem:[%s3122_s30 + $0x3e] sm:$0xff] }
 0x17e   : > { %v807_v43 = vpop.f32.mrf.mxu2 }
 0x17f   : > { %v870_v52 = vadd.f32 %v807_v43, %v592_v32  ;;  %v593_v37 = vpop.f32.mrf.mxu1  ;;  %v1069_v38 = vpop.f32.mrf.mxu3  ;;  %v1934_v32 = vpack.c.bf16 %v1901_v62, %v1900_v12  ;;  %v1903_v12 = vld [vmem:[%s3122_s30 + $0x5d] sm:$0xff] }
 0x180   : > { %v594_v42 = vadd.f32 %v593_v37, %v3349_v59 }
 0x181   : > { %v1122_v50 = vadd.f32 %v1059_v23, %v870_v52  ;;  %v1313_v40 = vpop.f32.mrf.mxu0 }
 0x183   : > { %v3542_v36 = vadd.f32 %v1311_v26, %v1122_v50 }
 0x186   : > { %v809_v8 = vpop.f32.mrf.mxu2 }
 0x187   : > { %v871_v28 = vadd.f32 %v809_v8, %v594_v42  ;;  %v596_v23 = vpop.f32.mrf.mxu1  ;;  %v1071_v26 = vpop.f32.mrf.mxu3  ;;  %v1647_v42 = vld [vmem:[%s3122_s30 + $0x3c] sm:$0xff] }
 0x188   : > { %v597_v43 = vadd.f32 %v596_v23, %v3231_v46  ;;  %v2185_v23 = vpack.c.bf16 %v2151_v51, %v2150_v58  ;;  %v2153_v58 = vld [vmem:[%s3122_s30 + $0x4e] sm:$0xff] }
 0x189   : > { %v1123_v21 = vadd.f32 %v1061_v56, %v871_v28  ;;  %v1316_v4 = vpop.f32.mrf.mxu0  ;;  %v1681_v28 = vpack.c.bf16 %v1647_v42, %v1646_v29  ;;  %v1648_v29 = vld [vmem:[%s3122_s30 + $0x44] sm:$0xff]  ;;  %v1649_v42 = vld [vmem:[%s3122_s30 + $0x4c] sm:$0xff] }
 0x18a   : > { %2750 = vmatmul.msk.bf16.vlgmr.msra.gmra.mxu1 %vm323_vm0, %v1428_v11  ;;  %v1902_v11 = vld [vmem:[%s3122_s30 + $0x55] sm:$0xff] }
 0x18b   : > { %2772 = vmatmul.msk.bf16.vlgmr.msra.gmra.mxu2 %vm323_vm0, %v1680_v9  ;;  %v3554_v59 = vadd.f32 %v1313_v40, %v1123_v21 }
 0x18c   : > { %2816 = vmatmul.msk.bf16.vlgmr.msra.gmra.mxu0 %vm323_vm0, %v2184_v20  ;;  %2796 = vmatmul.msk.bf16.gmra.mxu3 %vm323_vm0, %v1934_v32 }
 0x18e   : > { %v812_v52 = vpop.f32.mrf.mxu2 }
 0x18f   : > { %v872_v56 = vadd.f32 %v812_v52, %v597_v43  ;;  %v598_v37 = vpop.f32.mrf.mxu1  ;;  %v1074_v39 = vpop.f32.mrf.mxu3 }
 0x190   : > { %v599_v40 = vadd.f32 %v598_v37, %v3245_v54 }
 0x191   : > { %v1124_v50 = vadd.f32 %v1064_v55, %v872_v56  ;;  %v1318_v25 = vpop.f32.mrf.mxu0 }
 0x193   : > { %v3559_v27 = vadd.f32 %v1316_v4, %v1124_v50  ;;  %v1935_v4 = vpack.c.bf16 %v1903_v12, %v1902_v11  ;;  %v1905_v11 = vld [vmem:[%s3122_s30 + $0x6d] sm:$0xff] }
 0x196   : > { %v814_v8 = vpop.f32.mrf.mxu2 }
 0x197   : > { %v873_v46 = vadd.f32 %v814_v8, %v599_v40  ;;  %v601_v62 = vpop.f32.mrf.mxu1  ;;  %v1076_v55 = vpop.f32.mrf.mxu3  ;;  %v2152_v40 = vld [vmem:[%s3122_s30 + $0x46] sm:$0xff]  ;;  %v1682_v8 = vpack.c.bf16 %v1649_v42, %v1648_v29  ;;  %v1650_v29 = vld [vmem:[%s3122_s30 + $0x54] sm:$0xff]  ;;  %v1651_v42 = vld [vmem:[%s3122_s30 + $0x5c] sm:$0xff] }
 0x198   : > { %v602_v32 = vadd.f32 %v601_v62, %v3260_v63  ;;  %v2186_v62 = vpack.c.bf16 %v2153_v58, %v2152_v40  ;;  %v2155_v40 = vld [vmem:[%s3122_s30 + $0x5e] sm:$0xff] }
 0x199   : > { %v1125_v20 = vadd.f32 %v1066_v22, %v873_v46  ;;  %v1321_v21 = vpop.f32.mrf.mxu0  ;;  %v1904_v46 = vld [vmem:[%s3122_s30 + $0x65] sm:$0xff] }
 0x19a   : > { %2751 = vmatmul.msk.bf16.gmra.mxu1 %vm323_vm0, %v1680_v9 }
 0x19b   : > { %2773 = vmatmul.msk.bf16.gmra.mxu2 %vm323_vm0, %v1681_v28  ;;  %v3570_v54 = vadd.f32 %v1318_v25, %v1125_v20 }
 0x19c   : > { %2817 = vmatmul.msk.bf16.gmra.mxu0 %vm323_vm0, %v2185_v23  ;;  %2797 = vmatmul.msk.bf16.gmra.mxu3 %vm323_vm0, %v1935_v4 }
 0x19e   : > { %v817_v43 = vpop.f32.mrf.mxu2 }
 0x19f   : > { %v874_v22 = vadd.f32 %v817_v43, %v602_v32  ;;  %v603_v52 = vpop.f32.mrf.mxu1  ;;  %v1079_v9 = vpop.f32.mrf.mxu3 }
 0x1a0   : > { %v604_v25 = vadd.f32 %v603_v52, %v3274_v7 }
 0x1a1   : > { %v1126_v56 = vadd.f32 %v1069_v38, %v874_v22  ;;  %v1323_v37 = vpop.f32.mrf.mxu0 }
 0x1a3   : > { %v3575_v50 = vadd.f32 %v1321_v21, %v1126_v56  ;;  %v1936_v21 = vpack.c.bf16 %v1905_v11, %v1904_v46  ;;  %v1907_v46 = vld [vmem:[%s3122_s30 + $0x7d] sm:$0xff] }
 0x1a6   : > { %v819_v51 = vpop.f32.mrf.mxu2 }
 0x1a7   : > { %v875_v63 = vadd.f32 %v819_v51, %v604_v25  ;;  %v606_v12 = vpop.f32.mrf.mxu1  ;;  %v1081_v38 = vpop.f32.mrf.mxu3  ;;  %v2154_v25 = vld [vmem:[%s3122_s30 + $0x56] sm:$0xff]  ;;  %v1683_v51 = vpack.c.bf16 %v1651_v42, %v1650_v29  ;;  %v1652_v29 = vld [vmem:[%s3122_s30 + $0x64] sm:$0xff]  ;;  %v1653_v42 = vld [vmem:[%s3122_s30 + $0x6c] sm:$0xff] }
 0x1a8   : > { %v607_v4 = vadd.f32 %v606_v12, %v3289_v16  ;;  %v2187_v12 = vpack.c.bf16 %v2155_v40, %v2154_v25  ;;  %v2157_v25 = vld [vmem:[%s3122_s30 + $0x6e] sm:$0xff] }
 0x1a9   : > { %v1127_v23 = vadd.f32 %v1071_v26, %v875_v63  ;;  %v1326_v20 = vpop.f32.mrf.mxu0  ;;  %v1906_v63 = vld [vmem:[%s3122_s30 + $0x75] sm:$0xff] }
 0x1aa   : > { %2752 = vmatmul.msk.bf16.gmra.mxu1 %vm323_vm0, %v1681_v28 }
 0x1ab   : > { %2774 = vmatmul.msk.bf16.gmra.mxu2 %vm323_vm0, %v1682_v8  ;;  %v3586_v7 = vadd.f32 %v1323_v37, %v1127_v23 }
 0x1ac   : > { %2818 = vmatmul.msk.bf16.gmra.mxu0 %vm323_vm0, %v2186_v62  ;;  %2798 = vmatmul.msk.bf16.gmra.mxu3 %vm323_vm0, %v1936_v21 }
 0x1ae   : > { %v822_v32 = vpop.f32.mrf.mxu2 }
 0x1af   : > { %v876_v26 = vadd.f32 %v822_v32, %v607_v4  ;;  %v608_v43 = vpop.f32.mrf.mxu1  ;;  %v1084_v28 = vpop.f32.mrf.mxu3 }
 0x1b0   : > { %v609_v37 = vadd.f32 %v608_v43, %v3303_v24 }
 0x1b1   : > { %v1128_v22 = vadd.f32 %v1074_v39, %v876_v26  ;;  %v1328_v52 = vpop.f32.mrf.mxu0 }
 0x1b3   : > { %v3591_v56 = vadd.f32 %v1326_v20, %v1128_v22  ;;  %v1937_v20 = vpack.c.bf16 %v1907_v46, %v1906_v63  ;;  %v1909_v63 = vld [vmem:[%s3122_s30 + $0x8d] sm:$0xff] }
 0x1b6   : > { %v824_v58 = vpop.f32.mrf.mxu2 }
 0x1b7   : > { %v877_v16 = vadd.f32 %v824_v58, %v609_v37  ;;  %v611_v11 = vpop.f32.mrf.mxu1  ;;  %v1086_v39 = vpop.f32.mrf.mxu3  ;;  %v2156_v37 = vld [vmem:[%s3122_s30 + $0x66] sm:$0xff]  ;;  %v1684_v58 = vpack.c.bf16 %v1653_v42, %v1652_v29  ;;  %v1654_v29 = vld [vmem:[%s3122_s30 + $0x74] sm:$0xff]  ;;  %v1655_v42 = vld [vmem:[%s3122_s30 + $0x7c] sm:$0xff] }
 0x1b8   : > { %v612_v21 = vadd.f32 %v611_v11, %v3319_v33  ;;  %v2188_v11 = vpack.c.bf16 %v2157_v25, %v2156_v37  ;;  %v2159_v37 = vld [vmem:[%s3122_s30 + $0x7e] sm:$0xff] }
 0x1b9   : > { %v1129_v62 = vadd.f32 %v1076_v55, %v877_v16  ;;  %v1331_v23 = vpop.f32.mrf.mxu0  ;;  %v1908_v16 = vld [vmem:[%s3122_s30 + $0x85] sm:$0xff] }
 0x1ba   : > { %2753 = vmatmul.msk.bf16.gmra.mxu1 %vm323_vm0, %v1682_v8 }
 0x1bb   : > { %2775 = vmatmul.msk.bf16.gmra.mxu2 %vm323_vm0, %v1683_v51  ;;  %v3602_v24 = vadd.f32 %v1328_v52, %v1129_v62 }
 0x1bc   : > { %2819 = vmatmul.msk.bf16.gmra.mxu0 %vm323_vm0, %v2187_v12  ;;  %2799 = vmatmul.msk.bf16.gmra.mxu3 %vm323_vm0, %v1937_v20 }
 0x1be   : > { %v827_v4 = vpop.f32.mrf.mxu2 }
 0x1bf   : > { %v878_v55 = vadd.f32 %v827_v4, %v612_v21  ;;  %v613_v32 = vpop.f32.mrf.mxu1  ;;  %v1089_v8 = vpop.f32.mrf.mxu3 }
 0x1c0   : > { %v614_v52 = vadd.f32 %v613_v32, %v3331_v41 }
 0x1c1   : > { %v1130_v26 = vadd.f32 %v1079_v9, %v878_v55  ;;  %v1333_v43 = vpop.f32.mrf.mxu0 }
 0x1c3   : > { %v3607_v22 = vadd.f32 %v1331_v23, %v1130_v26  ;;  %v1938_v23 = vpack.c.bf16 %v1909_v63, %v1908_v16  ;;  %v1911_v16 = vld [vmem:[%s3122_s30 + $0x9d] sm:$0xff] }
 0x1c6   : > { %v829_v40 = vpop.f32.mrf.mxu2 }
 0x1c7   : > { %v879_v33 = vadd.f32 %v829_v40, %v614_v52  ;;  %v616_v46 = vpop.f32.mrf.mxu1  ;;  %v1091_v9 = vpop.f32.mrf.mxu3  ;;  %v2158_v52 = vld [vmem:[%s3122_s30 + $0x76] sm:$0xff]  ;;  %v1685_v40 = vpack.c.bf16 %v1655_v42, %v1654_v29  ;;  %v1656_v29 = vld [vmem:[%s3122_s30 + $0x84] sm:$0xff]  ;;  %v1657_v42 = vld [vmem:[%s3122_s30 + $0x8c] sm:$0xff] }
 0x1c8   : > { %v617_v20 = vadd.f32 %v616_v46, %v3345_v57  ;;  %v2189_v46 = vpack.c.bf16 %v2159_v37, %v2158_v52  ;;  %v2161_v52 = vld [vmem:[%s3122_s30 + $0x8e] sm:$0xff] }
 0x1c9   : > { %v1131_v12 = vadd.f32 %v1081_v38, %v879_v33  ;;  %v1336_v62 = vpop.f32.mrf.mxu0  ;;  %v1910_v33 = vld [vmem:[%s3122_s30 + $0x95] sm:$0xff] }
 0x1ca   : > { %2754 = vmatmul.msk.bf16.gmra.mxu1 %vm323_vm0, %v1683_v51 }
 0x1cb   : > { %2776 = vmatmul.msk.bf16.gmra.mxu2 %vm323_vm0, %v1684_v58  ;;  %v3618_v41 = vadd.f32 %v1333_v43, %v1131_v12 }
 0x1cc   : > { %2820 = vmatmul.msk.bf16.gmra.mxu0 %vm323_vm0, %v2188_v11  ;;  %2800 = vmatmul.msk.bf16.gmra.mxu3 %vm323_vm0, %v1938_v23 }
 0x1ce   : > { %v832_v21 = vpop.f32.mrf.mxu2 }
 0x1cf   : > { %v880_v38 = vadd.f32 %v832_v21, %v617_v20  ;;  %v618_v4 = vpop.f32.mrf.mxu1  ;;  %v1094_v51 = vpop.f32.mrf.mxu3 }
 0x1d0   : > { %v619_v43 = vadd.f32 %v618_v4, %v3357_v10 }
 0x1d1   : > { %v1132_v55 = vadd.f32 %v1084_v28, %v880_v38  ;;  %v1338_v32 = vpop.f32.mrf.mxu0 }
 0x1d3   : > { %v3623_v26 = vadd.f32 %v1336_v62, %v1132_v55  ;;  %v1939_v62 = vpack.c.bf16 %v1911_v16, %v1910_v33  ;;  %v1913_v33 = vld [vmem:[%s3122_s30 + $0xad] sm:$0xff] }
 0x1d6   : > { %v834_v25 = vpop.f32.mrf.mxu2 }
 0x1d7   : > { %v881_v57 = vadd.f32 %v834_v25, %v619_v43  ;;  %v621_v63 = vpop.f32.mrf.mxu1  ;;  %v1096_v28 = vpop.f32.mrf.mxu3  ;;  %v2160_v43 = vld [vmem:[%s3122_s30 + $0x86] sm:$0xff]  ;;  %v1686_v25 = vpack.c.bf16 %v1657_v42, %v1656_v29  ;;  %v1658_v29 = vld [vmem:[%s3122_s30 + $0x94] sm:$0xff]  ;;  %v1659_v42 = vld [vmem:[%s3122_s30 + $0x9c] sm:$0xff] }
 0x1d8   : > { %v622_v23 = vadd.f32 %v621_v63, %v3239_v49  ;;  %v2190_v63 = vpack.c.bf16 %v2161_v52, %v2160_v43  ;;  %v2163_v43 = vld [vmem:[%s3122_s30 + $0x9e] sm:$0xff] }
 0x1d9   : > { %v1133_v11 = vadd.f32 %v1086_v39, %v881_v57  ;;  %v1341_v12 = vpop.f32.mrf.mxu0  ;;  %v1912_v57 = vld [vmem:[%s3122_s30 + $0xa5] sm:$0xff] }
 0x1da   : > { %2755 = vmatmul.msk.bf16.gmra.mxu1 %vm323_vm0, %v1684_v58 }
 0x1db   : > { %2777 = vmatmul.msk.bf16.gmra.mxu2 %vm323_vm0, %v1685_v40  ;;  %v3634_v10 = vadd.f32 %v1338_v32, %v1133_v11 }
 0x1dc   : > { %2821 = vmatmul.msk.bf16.gmra.mxu0 %vm323_vm0, %v2189_v46  ;;  %2801 = vmatmul.msk.bf16.gmra.mxu3 %vm323_vm0, %v1939_v62 }
 0x1de   : > { %v837_v20 = vpop.f32.mrf.mxu2 }
 0x1df   : > { %v882_v39 = vadd.f32 %v837_v20, %v622_v23  ;;  %v623_v21 = vpop.f32.mrf.mxu1  ;;  %v1099_v58 = vpop.f32.mrf.mxu3 }
 0x1e0   : > { %v624_v32 = vadd.f32 %v623_v21, %v3253_v61 }
 0x1e1   : > { %v1134_v38 = vadd.f32 %v1089_v8, %v882_v39  ;;  %v1343_v4 = vpop.f32.mrf.mxu0 }
 0x1e3   : > { %v3639_v55 = vadd.f32 %v1341_v12, %v1134_v38  ;;  %v1940_v12 = vpack.c.bf16 %v1913_v33, %v1912_v57  ;;  %v1915_v57 = vld [vmem:[%s3122_s30 + $0xbd] sm:$0xff] }
 0x1e6   : > { %v839_v37 = vpop.f32.mrf.mxu2 }
 0x1e7   : > { %v883_v49 = vadd.f32 %v839_v37, %v624_v32  ;;  %v626_v16 = vpop.f32.mrf.mxu1  ;;  %v1101_v8 = vpop.f32.mrf.mxu3  ;;  %v2162_v32 = vld [vmem:[%s3122_s30 + $0x96] sm:$0xff]  ;;  %v1687_v37 = vpack.c.bf16 %v1659_v42, %v1658_v29  ;;  %v1660_v29 = vld [vmem:[%s3122_s30 + $0xa4] sm:$0xff] }
 0x1e8   : > { %v627_v62 = vadd.f32 %v626_v16, %v3268_v2  ;;  %v2191_v16 = vpack.c.bf16 %v2163_v43, %v2162_v32  ;;  %v2165_v32 = vld [vmem:[%s3122_s30 + $0xae] sm:$0xff] }
 0x1e9   : > { %v1135_v46 = vadd.f32 %v1091_v9, %v883_v49  ;;  %v1346_v11 = vpop.f32.mrf.mxu0  ;;  %v1914_v49 = vld [vmem:[%s3122_s30 + $0xb5] sm:$0xff] }
 0x1ea   : > { %2756 = vmatmul.msk.bf16.gmra.mxu1 %vm323_vm0, %v1685_v40 }
 0x1eb   : > { %2778 = vmatmul.msk.bf16.gmra.mxu2 %vm323_vm0, %v1686_v25  ;;  %v3650_v61 = vadd.f32 %v1343_v4, %v1135_v46 }
 0x1ec   : > { %2822 = vmatmul.msk.bf16.gmra.mxu0 %vm323_vm0, %v2190_v63  ;;  %2802 = vmatmul.msk.bf16.gmra.mxu3 %vm323_vm0, %v1940_v12 }
 0x1ee   : > { %v842_v23 = vpop.f32.mrf.mxu2 }
 0x1ef   : > { %v884_v9 = vadd.f32 %v842_v23, %v627_v62  ;;  %v628_v20 = vpop.f32.mrf.mxu1  ;;  %v2022_v40 = vpop.f32.mrf.mxu3 }
 0x1f0   : > { %v629_v4 = vadd.f32 %v628_v20, %v3282_v14 }
 0x1f1   : > { %v1136_v39 = vadd.f32 %v1094_v51, %v884_v9  ;;  %v1348_v21 = vpop.f32.mrf.mxu0 }
 0x1f3   : > { %v3655_v38 = vadd.f32 %v1346_v11, %v1136_v39  ;;  %v1941_v11 = vpack.c.bf16 %v1915_v57, %v1914_v49  ;;  %v1917_v49 = vld [vmem:[%s3122_s30 + $0xcd] sm:$0xff] }
 0x1f6   : > { %v844_v52 = vpop.f32.mrf.mxu2 }
 0x1f7   : > { %v885_v2 = vadd.f32 %v844_v52, %v629_v4  ;;  %v631_v33 = vpop.f32.mrf.mxu1  ;;  %v2024_v51 = vpop.f32.mrf.mxu3  ;;  %v2164_v4 = vld [vmem:[%s3122_s30 + $0xa6] sm:$0xff] }
 0x1f8   : > { %v632_v12 = vadd.f32 %v631_v33, %v3297_v19  ;;  %v2192_v33 = vpack.c.bf16 %v2165_v32, %v2164_v4 }
 0x1f9   : > { %v1137_v63 = vadd.f32 %v1096_v28, %v885_v2  ;;  %v1351_v46 = vpop.f32.mrf.mxu0  ;;  %v1916_v2 = vld [vmem:[%s3122_s30 + $0xc5] sm:$0xff] }
 0x1fa   : > { %2757 = vmatmul.msk.bf16.gmra.mxu1 %vm323_vm0, %v1686_v25 }
 0x1fb   : > { %2779 = vmatmul.msk.bf16.gmra.mxu2 %vm323_vm0, %v1687_v37  ;;  %v3666_v14 = vadd.f32 %v1348_v21, %v1137_v63  ;;  %v1661_v21 = vld [vmem:[%s3122_s30 + $0xac] sm:$0xff] }
 0x1fc   : > { %2823 = vmatmul.msk.bf16.gmra.mxu0 %vm323_vm0, %v2191_v16  ;;  %2803 = vmatmul.msk.bf16.gmra.mxu3 %vm323_vm0, %v1941_v11  ;;  %v1688_v52 = vpack.c.bf16 %v1661_v21, %v1660_v29  ;;  %v1663_v29 = vld [vmem:[%s3122_s30 + $0xbc] sm:$0xff] }
 0x1fd   : > { %v2166_v21 = vld [vmem:[%s3122_s30 + $0xb6] sm:$0xff] }
 0x1fe   : > { %v847_v62 = vpop.f32.mrf.mxu2 }
 0x1ff   : > { %v886_v28 = vadd.f32 %v847_v62, %v632_v12  ;;  %v633_v23 = vpop.f32.mrf.mxu1  ;;  %v3671_v25 = vpop.f32.mrf.mxu3 }
 0x200   : > { %v634_v42 = vadd.f32 %v633_v23, %v3311_v31 }
 0x201   : > { %v1138_v9 = vadd.f32 %v1099_v58, %v886_v28  ;;  %v1353_v20 = vpop.f32.mrf.mxu0 }
 0x203   : > { %v3673_v39 = vadd.f32 %v1351_v46, %v1138_v9  ;;  %v1942_v46 = vpack.c.bf16 %v1917_v49, %v1916_v2  ;;  %v1662_v9 = vld [vmem:[%s3122_s30 + $0xb4] sm:$0xff]  ;;  %v1919_v49 = vld [vmem:[%s3122_s30 + $0xdd] sm:$0xff] }
 0x204   : > { %v1918_v2 = vld [vmem:[%s3122_s30 + $0xd5] sm:$0xff] }
 0x206   : > { %v849_v19 = vpop.f32.mrf.mxu2 }
 0x207   : > { %v887_v43 = vadd.f32 %v849_v19, %v634_v42  ;;  %v1518_v57 = vpop.f32.mrf.mxu1  ;;  %v3682_v63 = vpop.f32.mrf.mxu3  ;;  %v2167_v42 = vld [vmem:[%s3122_s30 + $0xbe] sm:$0xff] }
 0x208   : > { %v1608_v11 = vadd.f32 %v1518_v57, %v3370_v45  ;;  %v3698_v45 = vld [vmem:[#allocation4] ss:$0 sm:$0xff] }
 0x209   : > { %v1139_v16 = vadd.f32 %v1101_v8, %v887_v43  ;;  %v2274_v58 = vpop.f32.mrf.mxu0  ;;  %v1689_v43 = vpack.c.bf16 %v1663_v29, %v1662_v9 }
 0x20a   : > { %2758 = vmatmul.msk.bf16.gmra.mxu1 %vm323_vm0, %v1687_v37 }
 0x20b   : > { %2780 = vmatmul.msk.bf16.gmra.mxu2 %vm323_vm0, %v1688_v52  ;;  %v3686_v31 = vadd.f32 %v1353_v20, %v1139_v16 }
 0x20c   : > { %2824 = vmatmul.msk.bf16.gmra.mxu0 %vm323_vm0, %v2192_v33  ;;  %2804 = vmatmul.msk.bf16.gmra.mxu3 %vm323_vm0, %v1942_v46  ;;  %v2193_v33 = vpack.c.bf16 %v2167_v42, %v2166_v21  ;;  %v1664_v21 = vld [vmem:[%s3122_s30 + $0xc4] sm:$0xff]  ;;  %v1665_v42 = vld [vmem:[%s3122_s30 + $0xcc] sm:$0xff] }
 0x20e   : > { %v1770_v12 = vpop.f32.mrf.mxu2 }
 0x20f   : > { %v1860_v8 = vadd.f32 %v1770_v12, %v1608_v11  ;;  %v1520_v62 = vpop.f32.mrf.mxu1  ;;  %v3691_v23 = vpop.f32.mrf.mxu3  ;;  %v1943_v11 = vpack.c.bf16 %v1919_v49, %v1918_v2 }
 0x210   : > { %v1609_v20 = vadd.f32 %v1520_v62, %v3384_v48 }
 0x211   : > { %v2276_v28 = vpop.f32.mrf.mxu0  ;;  %v2112_v37 = vadd.f32 %v2022_v40, %v1860_v8 }
 0x213   : > { %v2364_v32 = vadd.f32 %v2274_v58, %v2112_v37 }
 0x215   : > { %v2404_v48 = vadd.f32 %v3698_v45, %v2364_v32  ;;  %v2168_v32 = vld [vmem:[%s3122_s30 + $0xc6] sm:$0xff] }
 0x216   : > { %v1772_v4 = vpop.f32.mrf.mxu2 }
 0x217   : > { %v1861_v19 = vadd.f32 %v1772_v4, %v1609_v20  ;;  %v1523_v57 = vpop.f32.mrf.mxu1  ;;  %v3702_v40 = vpop.f32.mrf.mxu3  ;;  %v2440_v62 = vmax.f32 %v2404_v48, 0.0 }
 0x219   : > { %v2113_v16 = vadd.f32 %v2024_v51, %v1861_v19  ;;  %v2279_v46 = vpop.f32.mrf.mxu0  ;;  %v1610_v51 = vadd.f32 %v1523_v57, %v3390_v15  ;;  %v2169_v19 = vld [vmem:[%s3122_s30 + $0xce] sm:$0xff] }
 0x21a   : > { %2759 = vmatmul.msk.bf16.gmra.mxu1 %vm323_vm0, %v1688_v52 }
 0x21b   : > { %v2365_v12 = vadd.f32 %v2276_v28, %v2113_v16  ;;  %2781 = vmatmul.msk.bf16.gmra.mxu2 %vm323_vm0, %v1689_v43  ;;  %v1920_v16 = vld [vmem:[%s3122_s30 + $0xe5] sm:$0xff] }
 0x21c   : > { %2825 = vmatmul.msk.bf16.gmra.mxu0 %vm323_vm0, %v2193_v33  ;;  %2805 = vmatmul.msk.bf16.gmra.mxu3 %vm323_vm0, %v1943_v11  ;;  %v1690_v33 = vpack.c.bf16 %v1665_v42, %v1664_v21  ;;  %v1921_v11 = vld [vmem:[%s3122_s30 + $0xed] sm:$0xff] }
 0x21d   : > { %v2405_v58 = vadd.f32 %v3698_v45, %v2365_v12  ;;  %v2194_v12 = vpack.c.bf16 %v2169_v19, %v2168_v32  ;;  %v1667_v32 = vld [vmem:[%s3122_s30 + $0xdc] sm:$0xff] }
 0x21e   : > { %v1775_v8 = vpop.f32.mrf.mxu2  ;;  %v2170_v19 = vld [vmem:[%s3122_s30 + $0xd6] sm:$0xff] }
 0x21f   : > { %v2441_v28 = vmax.f32 %v2405_v58, 0.0  ;;  %v1862_v37 = vadd.f32 %v1775_v8, %v1610_v51  ;;  %v1525_v52 = vpop.f32.mrf.mxu1  ;;  %v3717_v15 = vpop.f32.mrf.mxu3 }
 0x220   : > { %v1611_v4 = vadd.f32 %v1525_v52, %v3404_v1 }
 0x221   : > { %v2848_v9 = vpack.c.bf16 %v2441_v28, %v2440_v62  ;;  %v2281_v29 = vpop.f32.mrf.mxu0  ;;  %v2114_v20 = vadd.f32 %v3671_v25, %v1862_v37  ;;  %v1944_v25 = vpack.c.bf16 %v1921_v11, %v1920_v16 }
 0x223   : > { %2849 = vst [vmem:[%s3715_s7] sm:$0xff] %v2848_v9   ;;  %v2366_v49 = vadd.f32 %v2279_v46, %v2114_v20 }
 0x225   : > { %v2406_v62 = vadd.f32 %v3698_v45, %v2366_v49 }
 0x226   : > { %v1777_v2 = vpop.f32.mrf.mxu2 }
 0x227   : > { %v1863_v57 = vadd.f32 %v1777_v2, %v1611_v4  ;;  %v1528_v48 = vpop.f32.mrf.mxu1  ;;  %v3729_v8 = vpop.f32.mrf.mxu3  ;;  %v2442_v37 = vmax.f32 %v2406_v62, 0.0  ;;  %v1666_v4 = vld [vmem:[%s3122_s30 + $0xd4] sm:$0xff]  ;;  %v2171_v2 = vld [vmem:[%s3122_s30 + $0xde] sm:$0xff] }
 0x228   : > { %v1691_v11 = vpack.c.bf16 %v1667_v32, %v1666_v4  ;;  %v1668_v4 = vld [vmem:[%s3122_s30 + $0xe4] sm:$0xff]  ;;  %v1669_v32 = vld [vmem:[%s3122_s30 + $0xec] sm:$0xff] }
 0x229   : > { %v2115_v58 = vadd.f32 %v3682_v63, %v1863_v57  ;;  %v2284_v51 = vpop.f32.mrf.mxu0  ;;  %v1612_v63 = vadd.f32 %v1528_v48, %v3410_v5  ;;  %v1922_v48 = vld [vmem:[%s3122_s30 + $0xf5] sm:$0xff] }
 0x22a   : > { %2760 = vmatmul.msk.bf16.gmra.mxu1 %vm323_vm0, %v1689_v43 }
 0x22b   : > { %v2367_v1 = vadd.f32 %v2281_v29, %v2115_v58  ;;  %2782 = vmatmul.msk.bf16.gmra.mxu2 %vm323_vm0, %v1690_v33 }
 0x22c   : > { %2826 = vmatmul.msk.bf16.gmra.mxu0 %vm323_vm0, %v2194_v12  ;;  %2806 = vmatmul.msk.bf16.gmra.mxu3 %vm323_vm0, %v1944_v25  ;;  %v1923_v12 = vld [vmem:[%s3122_s30 + $0xfd] sm:$0xff]  ;;  %v2195_v25 = vpack.c.bf16 %v2171_v2, %v2170_v19  ;;  %v2173_v19 = vld [vmem:[%s3122_s30 + $0xee] sm:$0xff] }
 0x22d   : > { %v2407_v46 = vadd.f32 %v3698_v45, %v2367_v1 }
 0x22e   : > { %v1780_v28 = vpop.f32.mrf.mxu2 }
 0x22f   : > { %v2443_v52 = vmax.f32 %v2407_v46, 0.0  ;;  %v1864_v9 = vadd.f32 %v1780_v28, %v1612_v63  ;;  %v1530_v43 = vpop.f32.mrf.mxu1  ;;  %v3738_v21 = vpop.f32.mrf.mxu3 }
 0x230   : > { %v1613_v5 = vadd.f32 %v1530_v43, %v3424_v18 }
 0x231   : > { %v2853_v29 = vpack.c.bf16 %v2443_v52, %v2442_v37  ;;  %v2286_v20 = vpop.f32.mrf.mxu0  ;;  %v2116_v42 = vadd.f32 %v3691_v23, %v1864_v9  ;;  %v1945_v23 = vpack.c.bf16 %v1923_v12, %v1922_v48  ;;  %v1924_v48 = vld [vmem:[%s3122_s30 + $0x105] sm:$0xff]  ;;  %v1925_v12 = vld [vmem:[%s3122_s30 + $0x10d] sm:$0xff] }
 0x233   : > { %2935 = vst [vmem:[%s3715_s7 + $0x8] sm:$0xff] %v2853_v29   ;;  %v2368_v57 = vadd.f32 %v2284_v51, %v2116_v42 }
 0x235   : > { %v2408_v63 = vadd.f32 %v3698_v45, %v2368_v57 }
 0x236   : > { %v1782_v49 = vpop.f32.mrf.mxu2 }
 0x237   : > { %v1865_v16 = vadd.f32 %v1782_v49, %v1613_v5  ;;  %v1533_v58 = vpop.f32.mrf.mxu1  ;;  %v3750_v46 = vpop.f32.mrf.mxu3  ;;  %v2444_v37 = vmax.f32 %v2408_v63, 0.0  ;;  %v2172_v5 = vld [vmem:[%s3122_s30 + $0xe6] sm:$0xff] }
 0x239   : > { %v2117_v62 = vadd.f32 %v3702_v40, %v1865_v16  ;;  %v2289_v1 = vpop.f32.mrf.mxu0  ;;  %v1614_v40 = vadd.f32 %v1533_v58, %v3430_v6  ;;  %v1692_v16 = vpack.c.bf16 %v1669_v32, %v1668_v4  ;;  %v2174_v4 = vld [vmem:[%s3122_s30 + $0xf6] sm:$0xff]  ;;  %v2175_v32 = vld [vmem:[%s3122_s30 + $0xfe] sm:$0xff] }
 0x23a   : > { %2761 = vmatmul.msk.bf16.gmra.mxu1 %vm323_vm0, %v1690_v33 }
 0x23b   : > { %v2369_v18 = vadd.f32 %v2286_v20, %v2117_v62  ;;  %2783 = vmatmul.msk.bf16.gmra.mxu2 %vm323_vm0, %v1691_v11 }
 0x23c   : > { %2827 = vmatmul.msk.bf16.gmra.mxu0 %vm323_vm0, %v2195_v25  ;;  %2807 = vmatmul.msk.bf16.gmra.mxu3 %vm323_vm0, %v1945_v23  ;;  %v2196_v25 = vpack.c.bf16 %v2173_v19, %v2172_v5 }
 0x23d   : > { %v2409_v51 = vadd.f32 %v3698_v45, %v2369_v18 }
 0x23e   : > { %v1785_v28 = vpop.f32.mrf.mxu2 }
 0x23f   : > { %v2445_v52 = vmax.f32 %v2409_v51, 0.0  ;;  %v1866_v9 = vadd.f32 %v1785_v28, %v1614_v40  ;;  %v1535_v33 = vpop.f32.mrf.mxu1  ;;  %v3759_v20 = vpop.f32.mrf.mxu3 }
 0x240   : > { %v1615_v6 = vadd.f32 %v1535_v33, %v3444_v35 }
 0x241   : > { %v2858_v43 = vpack.c.bf16 %v2445_v52, %v2444_v37  ;;  %v2291_v29 = vpop.f32.mrf.mxu0  ;;  %v2118_v42 = vadd.f32 %v3717_v15, %v1866_v9  ;;  %v1946_v15 = vpack.c.bf16 %v1925_v12, %v1924_v48  ;;  %v2197_v12 = vpack.c.bf16 %v2175_v32, %v2174_v4  ;;  %v1928_v32 = vld [vmem:[%s3122_s30 + $0x125] sm:$0xff] }
 0x243   : > { %2936 = vst [vmem:[%s3715_s7 + $0x10] sm:$0xff] %v2858_v43   ;;  %v2370_v49 = vadd.f32 %v2289_v1, %v2118_v42  ;;  %v1671_v42 = vld [vmem:[%s3122_s30 + $0xfc] sm:$0xff] }
 0x245   : > { %v2410_v18 = vadd.f32 %v3698_v45, %v2370_v49  ;;  %v1926_v49 = vld [vmem:[%s3122_s30 + $0x115] sm:$0xff] }
 0x246   : > { %v1787_v2 = vpop.f32.mrf.mxu2 }
 0x247   : > { %v1867_v57 = vadd.f32 %v1787_v2, %v1615_v6  ;;  %v1538_v58 = vpop.f32.mrf.mxu1  ;;  %v3771_v63 = vpop.f32.mrf.mxu3  ;;  %v2446_v40 = vmax.f32 %v2410_v18, 0.0 }
 0x249   : > { %v2119_v62 = vadd.f32 %v3729_v8, %v1867_v57  ;;  %v2294_v23 = vpop.f32.mrf.mxu0  ;;  %v1616_v8 = vadd.f32 %v1538_v58, %v3450_v44  ;;  %v1927_v57 = vld [vmem:[%s3122_s30 + $0x11d] sm:$0xff] }
 0x24a   : > { %2762 = vmatmul.msk.bf16.gmra.mxu1 %vm323_vm0, %v1691_v11 }
 0x24b   : > { %v2371_v35 = vadd.f32 %v2291_v29, %v2119_v62  ;;  %2784 = vmatmul.msk.bf16.gmra.mxu2 %vm323_vm0, %v1692_v16  ;;  %v1670_v29 = vld [vmem:[%s3122_s30 + $0xf4] sm:$0xff] }
 0x24c   : > { %2828 = vmatmul.msk.bf16.gmra.mxu0 %vm323_vm0, %v2196_v25  ;;  %2808 = vmatmul.msk.bf16.gmra.mxu3 %vm323_vm0, %v1946_v15  ;;  %v1693_v2 = vpack.c.bf16 %v1671_v42, %v1670_v29 }
 0x24d   : > { %v2411_v1 = vadd.f32 %v3698_v45, %v2371_v35 }
 0x24e   : > { %v1790_v51 = vpop.f32.mrf.mxu2 }
 0x24f   : > { %v2447_v28 = vmax.f32 %v2411_v1, 0.0  ;;  %v1868_v37 = vadd.f32 %v1790_v51, %v1616_v8  ;;  %v1540_v11 = vpop.f32.mrf.mxu1  ;;  %v3780_v33 = vpop.f32.mrf.mxu3 }
 0x250   : > { %v1617_v44 = vadd.f32 %v1540_v11, %v3464_v3  ;;  %v1672_v11 = vld [vmem:[%s3122_s30 + $0x104] sm:$0xff] }
 0x251   : > { %v2863_v52 = vpack.c.bf16 %v2447_v28, %v2446_v40  ;;  %v2296_v9 = vpop.f32.mrf.mxu0  ;;  %v2120_v43 = vadd.f32 %v3738_v21, %v1868_v37  ;;  %v1947_v21 = vpack.c.bf16 %v1927_v57, %v1926_v49 }
 0x253   : > { %2937 = vst [vmem:[%s3715_s7 + $0x18] sm:$0xff] %v2863_v52   ;;  %v2372_v5 = vadd.f32 %v2294_v23, %v2120_v43  ;;  %v1673_v52 = vld [vmem:[%s3122_s30 + $0x10c] sm:$0xff] }
 0x254   : > { %v2177_v43 = vld [vmem:[%s3122_s30 + $0x10e] sm:$0xff]  ;;  %v1694_v4 = vpack.c.bf16 %v1673_v52, %v1672_v11 }
 0x255   : > { %v2412_v15 = vadd.f32 %v3698_v45, %v2372_v5 }
 0x256   : > { %v1792_v6 = vpop.f32.mrf.mxu2 }
 0x257   : > { %v1869_v19 = vadd.f32 %v1792_v6, %v1617_v44  ;;  %v1543_v48 = vpop.f32.mrf.mxu1  ;;  %v3792_v62 = vpop.f32.mrf.mxu3  ;;  %v2448_v35 = vmax.f32 %v2412_v15, 0.0  ;;  %v1929_v6 = vld [vmem:[%s3122_s30 + $0x12d] sm:$0xff] }
 0x259   : > { %v2121_v58 = vadd.f32 %v3750_v46, %v1869_v19  ;;  %v2299_v25 = vpop.f32.mrf.mxu0  ;;  %v1618_v46 = vadd.f32 %v1543_v48, %v3470_v60 }
 0x25a   : > { %2763 = vmatmul.msk.bf16.gmra.mxu1 %vm323_vm0, %v1692_v16 }
 0x25b   : > { %v2373_v3 = vadd.f32 %v2296_v9, %v2121_v58  ;;  %2785 = vmatmul.msk.bf16.gmra.mxu2 %vm323_vm0, %v1693_v2  ;;  %v2176_v9 = vld [vmem:[%s3122_s30 + $0x106] sm:$0xff] }
 0x25c   : > { %2829 = vmatmul.msk.bf16.gmra.mxu0 %vm323_vm0, %v2197_v12  ;;  %2809 = vmatmul.msk.bf16.gmra.mxu3 %vm323_vm0, %v1947_v21  ;;  %v2198_v19 = vpack.c.bf16 %v2177_v43, %v2176_v9  ;;  %v1931_v9 = vld [vmem:[%s3122_s30 + $0x13d] sm:$0xff] }
 0x25d   : > { %v2413_v23 = vadd.f32 %v3698_v45, %v2373_v3 }
 0x25e   : > { %v1795_v18 = vpop.f32.mrf.mxu2 }
 0x25f   : > { %v2449_v1 = vmax.f32 %v2413_v23, 0.0  ;;  %v1870_v8 = vadd.f32 %v1795_v18, %v1618_v46  ;;  %v1545_v16 = vpop.f32.mrf.mxu1  ;;  %v3801_v28 = vpop.f32.mrf.mxu3 }
 0x260   : > { %v1619_v60 = vadd.f32 %v1545_v16, %v3484_v47  ;;  %v2178_v16 = vld [vmem:[%s3122_s30 + $0x116] sm:$0xff] }
 0x261   : > { %v2868_v51 = vpack.c.bf16 %v2449_v1, %v2448_v35  ;;  %v2301_v40 = vpop.f32.mrf.mxu0  ;;  %v2122_v37 = vadd.f32 %v3759_v20, %v1870_v8  ;;  %v1948_v20 = vpack.c.bf16 %v1929_v6, %v1928_v32  ;;  %v1674_v1 = vld [vmem:[%s3122_s30 + $0x114] sm:$0xff]  ;;  %v1675_v8 = vld [vmem:[%s3122_s30 + $0x11c] sm:$0xff] }
 0x262   : > { %v1695_v52 = vpack.c.bf16 %v1675_v8, %v1674_v1 }
 0x263   : > { %2938 = vst [vmem:[%s3715_s7 + $0x20] sm:$0xff] %v2868_v51   ;;  %v2374_v42 = vadd.f32 %v2299_v25, %v2122_v37  ;;  %v2179_v51 = vld [vmem:[%s3122_s30 + $0x11e] sm:$0xff] }
 0x265   : > { %v2414_v12 = vadd.f32 %v3698_v45, %v2374_v42 }
 0x266   : > { %v1797_v29 = vpop.f32.mrf.mxu2 }
 0x267   : > { %v1871_v44 = vadd.f32 %v1797_v29, %v1619_v60  ;;  %v1548_v5 = vpop.f32.mrf.mxu1  ;;  %v3813_v48 = vpop.f32.mrf.mxu3  ;;  %v2450_v21 = vmax.f32 %v2414_v12, 0.0  ;;  %v1930_v60 = vld [vmem:[%s3122_s30 + $0x135] sm:$0xff]  ;;  %v2199_v29 = vpack.c.bf16 %v2179_v51, %v2178_v16 }
 0x268   : > { %v1949_v6 = vpack.c.bf16 %v1931_v9, %v1930_v60 }
 0x269   : > { %v2123_v49 = vadd.f32 %v3771_v63, %v1871_v44  ;;  %v2304_v57 = vpop.f32.mrf.mxu0  ;;  %v1620_v63 = vadd.f32 %v1548_v5, %v3490_v13 }
 0x26a   : > { %2764 = vmatmul.msk.bf16.gmra.mxu1 %vm323_vm0, %v1693_v2 }
 0x26b   : > { %v2375_v47 = vadd.f32 %v2301_v40, %v2123_v49  ;;  %2786 = vmatmul.msk.bf16.gmra.mxu2 %vm323_vm0, %v1694_v4 }
 0x26c   : > { %2830 = vmatmul.msk.bf16.gmra.mxu0 %vm323_vm0, %v2198_v19  ;;  %2810 = vmatmul.msk.bf16.gmra.mxu3 %vm323_vm0, %v1948_v20 }
 0x26d   : > { %v2415_v58 = vadd.f32 %v3698_v45, %v2375_v47 }
 0x26e   : > { %v1800_v25 = vpop.f32.mrf.mxu2 }
 0x26f   : > { %v2451_v15 = vmax.f32 %v2415_v58, 0.0  ;;  %v1872_v3 = vadd.f32 %v1800_v25, %v1620_v63  ;;  %v1550_v2 = vpop.f32.mrf.mxu1  ;;  %v3822_v18 = vpop.f32.mrf.mxu3  ;;  %v1676_v25 = vld [vmem:[%s3122_s30 + $0x124] sm:$0xff] }
 0x270   : > { %v1621_v13 = vadd.f32 %v1550_v2, %v3502_v0 }
 0x271   : > { %v2873_v23 = vpack.c.bf16 %v2451_v15, %v2450_v21  ;;  %v2306_v46 = vpop.f32.mrf.mxu0  ;;  %v2124_v35 = vadd.f32 %v3780_v33, %v1872_v3  ;;  %v1677_v21 = vld [vmem:[%s3122_s30 + $0x12c] sm:$0xff] }
 0x272   : > { %v2181_v3 = vld [vmem:[%s3122_s30 + $0x12e] sm:$0xff] }
 0x273   : > { %2939 = vst [vmem:[%s3715_s7 + $0x28] sm:$0xff] %v2873_v23   ;;  %v2376_v37 = vadd.f32 %v2304_v57, %v2124_v35  ;;  %v1696_v35 = vpack.c.bf16 %v1677_v21, %v1676_v25 }
 0x275   : > { %v2416_v33 = vadd.f32 %v3698_v45, %v2376_v37 }
 0x276   : > { %v1802_v40 = vpop.f32.mrf.mxu2 }
 0x277   : > { %v1873_v11 = vadd.f32 %v1802_v40, %v1621_v13  ;;  %v1553_v43 = vpop.f32.mrf.mxu1  ;;  %v2064_v32 = vpop.f32.mrf.mxu3  ;;  %v2452_v49 = vmax.f32 %v2416_v33, 0.0  ;;  %v1679_v33 = vld [vmem:[%s3122_s30 + $0x13c] sm:$0xff] }
 0x279   : > { %v2125_v42 = vadd.f32 %v3792_v62, %v1873_v11  ;;  %v2309_v44 = vpop.f32.mrf.mxu0  ;;  %v1622_v62 = vadd.f32 %v1553_v43, %v3507_v30  ;;  %v2180_v30 = vld [vmem:[%s3122_s30 + $0x126] sm:$0xff] }
 0x27a   : > { %2765 = vmatmul.msk.bf16.gmra.mxu1 %vm323_vm0, %v1694_v4  ;;  %v2200_v8 = vpack.c.bf16 %v2181_v3, %v2180_v30 }
 0x27b   : > { %v2377_v5 = vadd.f32 %v2306_v46, %v2125_v42  ;;  %2787 = vmatmul.msk.bf16.gmra.mxu2 %vm323_vm0, %v1695_v52 }
 0x27c   : > { %2831 = vmatmul.msk.bf16.gmra.mxu0 %vm323_vm0, %v2199_v29  ;;  %2811 = vmatmul.msk.bf16.gmra.mxu3 %vm323_vm0, %v1949_v6  ;;  %v1678_v6 = vld [vmem:[%s3122_s30 + $0x134] sm:$0xff] }
 0x27d   : > { %v2417_v0 = vadd.f32 %v3698_v45, %v2377_v5 }
 0x27e   : > { %v1805_v19 = vpop.f32.mrf.mxu2 }
 0x27f   : > { %v2453_v57 = vmax.f32 %v2417_v0, 0.0  ;;  %v1874_v20 = vadd.f32 %v1805_v19, %v1622_v62  ;;  %v1555_v12 = vpop.f32.mrf.mxu1  ;;  %v3841_v58 = vpop.f32.mrf.mxu3  ;;  %v2182_v0 = vld [vmem:[%s3122_s30 + $0x136] sm:$0xff]  ;;  %v2183_v62 = vld [vmem:[%s3122_s30 + $0x13e] sm:$0xff] }
 0x280   : > { %v1623_v15 = vadd.f32 %v1555_v12, %v3519_v17  ;;  %v2201_v12 = vpack.c.bf16 %v2183_v62, %v2182_v0 }
 0x281   : > { %v2878_v4 = vpack.c.bf16 %v2453_v57, %v2452_v49  ;;  %v2311_v47 = vpop.f32.mrf.mxu0  ;;  %v2126_v63 = vadd.f32 %v3801_v28, %v1874_v20  ;;  %v1697_v57 = vpack.c.bf16 %v1679_v33, %v1678_v6 }
 0x283   : > { %2940 = vst [vmem:[%s3715_s7 + $0x30] sm:$0xff] %v2878_v4   ;;  %v2378_v23 = vadd.f32 %v2309_v44, %v2126_v63 }
 0x285   : > { %v2418_v40 = vadd.f32 %v3698_v45, %v2378_v23 }
 0x286   : > { %v1807_v2 = vpop.f32.mrf.mxu2 }
 0x287   : > { %v1875_v46 = vadd.f32 %v1807_v2, %v1623_v15  ;;  %v1558_v1 = vpop.f32.mrf.mxu1  ;;  %v2069_v51 = vpop.f32.mrf.mxu3  ;;  %v2454_v11 = vmax.f32 %v2418_v40, 0.0 }
 0x289   : > { %v2127_v13 = vadd.f32 %v3813_v48, %v1875_v46  ;;  %v2314_v16 = vpop.f32.mrf.mxu0  ;;  %v1624_v48 = vadd.f32 %v1558_v1, %v3524_v53 }
 0x28a   : > { %2766 = vmatmul.msk.bf16.gmra.mxu1 %vm323_vm0, %v1695_v52 }
 0x28b   : > { %v2379_v28 = vadd.f32 %v2311_v47, %v2127_v13  ;;  %2788 = vmatmul.msk.bf16.gmra.mxu2 %vm323_vm0, %v1696_v35 }
 0x28c   : > { %2832 = vmatmul.msk.bf16.gmra.mxu0 %vm323_vm0, %v2200_v8 }
 0x28d   : > { %v2419_v17 = vadd.f32 %v3698_v45, %v2379_v28 }
 0x28e   : > { %v1810_v37 = vpop.f32.mrf.mxu2 }
 0x28f   : > { %v2455_v60 = vmax.f32 %v2419_v17, 0.0  ;;  %v1876_v9 = vadd.f32 %v1810_v37, %v1624_v48  ;;  %v1560_v43 = vpop.f32.mrf.mxu1  ;;  %v2072_v44 = vpop.f32.mrf.mxu3 }
 0x290   : > { %v1625_v5 = vadd.f32 %v1560_v43, %v3536_v34 }
 0x291   : > { %v2883_v29 = vpack.c.bf16 %v2455_v60, %v2454_v11  ;;  %v2316_v42 = vpop.f32.mrf.mxu0  ;;  %v2128_v52 = vadd.f32 %v3822_v18, %v1876_v9 }
 0x293   : > { %2941 = vst [vmem:[%s3715_s7 + $0x38] sm:$0xff] %v2883_v29   ;;  %v2380_v49 = vadd.f32 %v2314_v16, %v2128_v52 }
 0x295   : > { %v2420_v63 = vadd.f32 %v3698_v45, %v2380_v49 }
 0x296   : > { %v1812_v19 = vpop.f32.mrf.mxu2 }
 0x297   : > { %v1877_v53 = vadd.f32 %v1812_v19, %v1625_v5  ;;  %v1563_v20 = vpop.f32.mrf.mxu1  ;;  %v2074_v34 = vpop.f32.mrf.mxu3  ;;  %v2456_v30 = vmax.f32 %v2420_v63, 0.0 }
 0x298   : > { %v1626_v21 = vadd.f32 %v1563_v20, %v3542_v36 }
 0x299   : > { %v2129_v4 = vadd.f32 %v2064_v32, %v1877_v53  ;;  %v2319_v47 = vpop.f32.mrf.mxu0 }
 0x29a   : > { %2767 = vmatmul.msk.bf16.gmra.mxu1 %vm323_vm0, %v1696_v35 }
 0x29b   : > { %v2381_v25 = vadd.f32 %v2316_v42, %v2129_v4  ;;  %2789 = vmatmul.msk.bf16.gmra.mxu2 %vm323_vm0, %v1697_v57 }
 0x29c   : > { %2833 = vmatmul.msk.bf16.gmra.mxu0 %vm323_vm0, %v2201_v12 }
 0x29d   : > { %v2421_v18 = vadd.f32 %v3698_v45, %v2381_v25 }
 0x29e   : > { %v1815_v15 = vpop.f32.mrf.mxu2 }
 0x29f   : > { %v2457_v3 = vmax.f32 %v2421_v18, 0.0  ;;  %v1878_v32 = vadd.f32 %v1815_v15, %v1626_v21  ;;  %v1565_v2 = vpop.f32.mrf.mxu1  ;;  %v2077_v13 = vpop.f32.mrf.mxu3 }
 0x2a0   : > { %v1627_v35 = vadd.f32 %v1565_v2, %v3554_v59 }
 0x2a1   : > { %v2888_v23 = vpack.c.bf16 %v2457_v3, %v2456_v30  ;;  %v2321_v46 = vpop.f32.mrf.mxu0  ;;  %v2130_v1 = vadd.f32 %v3841_v58, %v1878_v32 }
 0x2a3   : > { %2942 = vst [vmem:[%s3715_s7 + $0x40] sm:$0xff] %v2888_v23   ;;  %v2382_v16 = vadd.f32 %v2319_v47, %v2130_v1 }
 0x2a5   : > { %v2422_v48 = vadd.f32 %v3698_v45, %v2382_v16 }
 0x2a6   : > { %v1817_v8 = vpop.f32.mrf.mxu2 }
 0x2a7   : > { %v1879_v40 = vadd.f32 %v1817_v8, %v1627_v35  ;;  %v1568_v28 = vpop.f32.mrf.mxu1  ;;  %v2458_v43 = vmax.f32 %v2422_v48, 0.0  ;;  %v2079_v42 = vpop.f32.mrf.mxu3 }
 0x2a8   : > { %v1628_v60 = vadd.f32 %v1568_v28, %v3559_v27 }
 0x2a9   : > { %v2131_v17 = vadd.f32 %v2069_v51, %v1879_v40  ;;  %v2324_v36 = vpop.f32.mrf.mxu0 }
 0x2ab   : > { %v2383_v37 = vadd.f32 %v2321_v46, %v2131_v17 }
 0x2ad   : > { %v2423_v11 = vadd.f32 %v3698_v45, %v2383_v37 }
 0x2ae   : > { %v1820_v9 = vpop.f32.mrf.mxu2 }
 0x2af   : > { %v2459_v58 = vmax.f32 %v2423_v11, 0.0  ;;  %v1880_v29 = vadd.f32 %v1820_v9, %v1628_v60  ;;  %v1570_v59 = vpop.f32.mrf.mxu1  ;;  %v2082_v27 = vpop.f32.mrf.mxu3 }
 0x2b0   : > { %v1629_v51 = vadd.f32 %v1570_v59, %v3570_v54 }
 0x2b1   : > { %v2893_v52 = vpack.c.bf16 %v2459_v58, %v2458_v43  ;;  %v2326_v6 = vpop.f32.mrf.mxu0  ;;  %v2132_v33 = vadd.f32 %v2072_v44, %v1880_v29 }
 0x2b3   : > { %2943 = vst [vmem:[%s3715_s7 + $0x48] sm:$0xff] %v2893_v52   ;;  %v2384_v0 = vadd.f32 %v2324_v36, %v2132_v33 }
 0x2b5   : > { %v2424_v57 = vadd.f32 %v3698_v45, %v2384_v0 }
 0x2b6   : > { %v1822_v5 = vpop.f32.mrf.mxu2 }
 0x2b7   : > { %v1881_v62 = vadd.f32 %v1822_v5, %v1629_v51  ;;  %v1573_v19 = vpop.f32.mrf.mxu1  ;;  %v2460_v63 = vmax.f32 %v2424_v57, 0.0  ;;  %v2084_v30 = vpop.f32.mrf.mxu3 }
 0x2b8   : > { %v1630_v4 = vadd.f32 %v1573_v19, %v3575_v50 }
 0x2b9   : > { %v2133_v49 = vadd.f32 %v2074_v34, %v1881_v62  ;;  %v2329_v53 = vpop.f32.mrf.mxu0 }
 0x2bb   : > { %v2385_v20 = vadd.f32 %v2326_v6, %v2133_v49 }
 0x2bd   : > { %v2425_v12 = vadd.f32 %v3698_v45, %v2385_v20 }
 0x2be   : > { %v1825_v47 = vpop.f32.mrf.mxu2 }
 0x2bf   : > { %v2461_v44 = vmax.f32 %v2425_v12, 0.0  ;;  %v1882_v25 = vadd.f32 %v1825_v47, %v1630_v4  ;;  %v1575_v54 = vpop.f32.mrf.mxu1  ;;  %v2087_v28 = vpop.f32.mrf.mxu3 }
 0x2c0   : > { %v1631_v34 = vadd.f32 %v1575_v54, %v3586_v7 }
 0x2c1   : > { %v2898_v18 = vpack.c.bf16 %v2461_v44, %v2460_v63  ;;  %v2331_v21 = vpop.f32.mrf.mxu0  ;;  %v2134_v15 = vadd.f32 %v2077_v13, %v1882_v25 }
 0x2c3   : > { %2944 = vst [vmem:[%s3715_s7 + $0x50] sm:$0xff] %v2898_v18   ;;  %v2386_v32 = vadd.f32 %v2329_v53, %v2134_v15 }
 0x2c5   : > { %v2426_v50 = vadd.f32 %v3698_v45, %v2386_v32 }
 0x2c6   : > { %v1827_v3 = vpop.f32.mrf.mxu2 }
 0x2c7   : > { %v1883_v2 = vadd.f32 %v1827_v3, %v1631_v34  ;;  %v1578_v23 = vpop.f32.mrf.mxu1  ;;  %v2462_v13 = vmax.f32 %v2426_v50, 0.0  ;;  %v2089_v59 = vpop.f32.mrf.mxu3 }
 0x2c8   : > { %v1632_v16 = vadd.f32 %v1578_v23, %v3591_v56 }
 0x2c9   : > { %v2135_v46 = vadd.f32 %v2079_v42, %v1883_v2  ;;  %v2334_v1 = vpop.f32.mrf.mxu0 }
 0x2cb   : > { %v2387_v35 = vadd.f32 %v2331_v21, %v2135_v46 }
 0x2cd   : > { %v2427_v8 = vadd.f32 %v3698_v45, %v2387_v35 }
 0x2ce   : > { %v1830_v40 = vpop.f32.mrf.mxu2 }
 0x2cf   : > { %v2463_v17 = vmax.f32 %v2427_v8, 0.0  ;;  %v1884_v36 = vadd.f32 %v1830_v40, %v1632_v16  ;;  %v1580_v7 = vpop.f32.mrf.mxu1 }
 0x2d0   : > { %v1633_v60 = vadd.f32 %v1580_v7, %v3602_v24 }
 0x2d1   : > { %v2903_v48 = vpack.c.bf16 %v2463_v17, %v2462_v13  ;;  %v2336_v37 = vpop.f32.mrf.mxu0  ;;  %v2136_v11 = vadd.f32 %v2082_v27, %v1884_v36  ;;  %v2092_v27 = vpop.f32.mrf.mxu3 }
 0x2d3   : > { %2945 = vst [vmem:[%s3715_s7 + $0x58] sm:$0xff] %v2903_v48   ;;  %v2388_v43 = vadd.f32 %v2334_v1, %v2136_v11 }
 0x2d5   : > { %v2428_v52 = vadd.f32 %v3698_v45, %v2388_v43 }
 0x2d6   : > { %v1832_v9 = vpop.f32.mrf.mxu2 }
 0x2d7   : > { %v1885_v58 = vadd.f32 %v1832_v9, %v1633_v60  ;;  %v1583_v29 = vpop.f32.mrf.mxu1  ;;  %v2464_v0 = vmax.f32 %v2428_v52, 0.0 }
 0x2d8   : > { %v1634_v51 = vadd.f32 %v1583_v29, %v3607_v22 }
 0x2d9   : > { %v2137_v42 = vadd.f32 %v2084_v30, %v1885_v58  ;;  %v2339_v56 = vpop.f32.mrf.mxu0  ;;  %v2094_v18 = vpop.f32.mrf.mxu3 }
 0x2db   : > { %v2389_v6 = vadd.f32 %v2336_v37, %v2137_v42 }
 0x2dd   : > { %v2429_v33 = vadd.f32 %v3698_v45, %v2389_v6 }
 0x2de   : > { %v1835_v5 = vpop.f32.mrf.mxu2 }
 0x2df   : > { %v2465_v62 = vmax.f32 %v2429_v33, 0.0  ;;  %v1886_v19 = vadd.f32 %v1835_v5, %v1634_v51  ;;  %v1585_v24 = vpop.f32.mrf.mxu1 }
 0x2e0   : > { %v1635_v20 = vadd.f32 %v1585_v24, %v3618_v41 }
 0x2e1   : > { %v2908_v49 = vpack.c.bf16 %v2465_v62, %v2464_v0  ;;  %v2341_v53 = vpop.f32.mrf.mxu0  ;;  %v2138_v57 = vadd.f32 %v2087_v28, %v1886_v19  ;;  %v2097_v35 = vpop.f32.mrf.mxu3 }
 0x2e3   : > { %2946 = vst [vmem:[%s3715_s7 + $0x60] sm:$0xff] %v2908_v49   ;;  %v2390_v4 = vadd.f32 %v2339_v56, %v2138_v57 }
 0x2e5   : > { %v2430_v22 = vadd.f32 %v3698_v45, %v2390_v4 }
 0x2e6   : > { %v1837_v12 = vpop.f32.mrf.mxu2 }
 0x2e7   : > { %v1887_v47 = vadd.f32 %v1837_v12, %v1635_v20  ;;  %v1588_v63 = vpop.f32.mrf.mxu1  ;;  %v2466_v34 = vmax.f32 %v2430_v22, 0.0 }
 0x2e8   : > { %v1636_v15 = vadd.f32 %v1588_v63, %v3623_v26 }
 0x2e9   : > { %v2139_v44 = vadd.f32 %v2089_v59, %v1887_v47  ;;  %v2344_v25 = vpop.f32.mrf.mxu0  ;;  %v2099_v9 = vpop.f32.mrf.mxu3 }
 0x2eb   : > { %v2391_v54 = vadd.f32 %v2341_v53, %v2139_v44 }
 0x2ed   : > { %v2431_v21 = vadd.f32 %v3698_v45, %v2391_v54 }
 0x2ee   : > { %v1840_v30 = vpop.f32.mrf.mxu2 }
 0x2ef   : > { %v2467_v3 = vmax.f32 %v2431_v21, 0.0  ;;  %v1888_v32 = vadd.f32 %v1840_v30, %v1636_v15  ;;  %v1590_v41 = vpop.f32.mrf.mxu1 }
 0x2f0   : > { %v1637_v1 = vadd.f32 %v1590_v41, %v3634_v10 }
 0x2f1   : > { %v2913_v2 = vpack.c.bf16 %v2467_v3, %v2466_v34  ;;  %v2346_v23 = vpop.f32.mrf.mxu0  ;;  %v2140_v46 = vadd.f32 %v2092_v27, %v1888_v32  ;;  %v2102_v51 = vpop.f32.mrf.mxu3 }
 0x2f3   : > { %2947 = vst [vmem:[%s3715_s7 + $0x68] sm:$0xff] %v2913_v2   ;;  %v2392_v8 = vadd.f32 %v2344_v25, %v2140_v46 }
 0x2f5   : > { %v2432_v26 = vadd.f32 %v3698_v45, %v2392_v8 }
 0x2f6   : > { %v1842_v50 = vpop.f32.mrf.mxu2 }
 0x2f7   : > { %v1889_v16 = vadd.f32 %v1842_v50, %v1637_v1  ;;  %v1593_v40 = vpop.f32.mrf.mxu1  ;;  %v2468_v37 = vmax.f32 %v2432_v26, 0.0 }
 0x2f8   : > { %v1638_v7 = vadd.f32 %v1593_v40, %v3639_v55 }
 0x2f9   : > { %v2141_v28 = vadd.f32 %v2094_v18, %v1889_v16  ;;  %v2349_v13 = vpop.f32.mrf.mxu0  ;;  %v2104_v12 = vpop.f32.mrf.mxu3 }
 0x2fb   : > { %v2393_v17 = vadd.f32 %v2346_v23, %v2141_v28 }
 0x2fd   : > { %v2433_v36 = vadd.f32 %v3698_v45, %v2393_v17 }
 0x2fe   : > { %v1845_v48 = vpop.f32.mrf.mxu2 }
 0x2ff   : > { %v2469_v11 = vmax.f32 %v2433_v36, 0.0  ;;  %v1890_v60 = vadd.f32 %v1845_v48, %v1638_v7  ;;  %v1595_v10 = vpop.f32.mrf.mxu1 }
 0x300   : > { %v1639_v59 = vadd.f32 %v1595_v10, %v3650_v61 }
 0x301   : > { %v2918_v43 = vpack.c.bf16 %v2469_v11, %v2468_v37  ;;  %v2351_v58 = vpop.f32.mrf.mxu0  ;;  %v2142_v29 = vadd.f32 %v2097_v35, %v1890_v60  ;;  %v2107_v30 = vpop.f32.mrf.mxu3 }
 0x303   : > { %2948 = vst [vmem:[%s3715_s7 + $0x70] sm:$0xff] %v2918_v43   ;;  %v2394_v56 = vadd.f32 %v2349_v13, %v2142_v29 }
 0x305   : > { %v2434_v55 = vadd.f32 %v3698_v45, %v2394_v56 }
 0x306   : > { %v1847_v42 = vpop.f32.mrf.mxu2 }
 0x307   : > { %v1891_v52 = vadd.f32 %v1847_v42, %v1639_v59  ;;  %v1598_v6 = vpop.f32.mrf.mxu1  ;;  %v2470_v49 = vmax.f32 %v2434_v55, 0.0 }
 0x308   : > { %v1640_v19 = vadd.f32 %v1598_v6, %v3655_v38 }
 0x309   : > { %v2143_v33 = vadd.f32 %v2099_v9, %v1891_v52  ;;  %v2354_v0 = vpop.f32.mrf.mxu0  ;;  %v2109_v16 = vpop.f32.mrf.mxu3 }
 0x30b   : > { %v2395_v5 = vadd.f32 %v2351_v58, %v2143_v33 }
 0x30d   : > { %v2435_v62 = vadd.f32 %v3698_v45, %v2395_v5 }
 0x30e   : > { %v1850_v24 = vpop.f32.mrf.mxu2 }
 0x30f   : > { %v2471_v53 = vmax.f32 %v2435_v62, 0.0  ;;  %v1892_v27 = vadd.f32 %v1850_v24, %v1640_v19  ;;  %v1600_v61 = vpop.f32.mrf.mxu1 }
 0x310   : > { %v1641_v4 = vadd.f32 %v1600_v61, %v3666_v14 }
 0x311   : > { %v2923_v57 = vpack.c.bf16 %v2471_v53, %v2470_v49  ;;  %v2144_v20 = vadd.f32 %v2102_v51, %v1892_v27  ;;  %v2356_v47 = vpop.f32.mrf.mxu0 }
 0x313   : > { %2949 = vst [vmem:[%s3715_s7 + $0x78] sm:$0xff] %v2923_v57   ;;  %v2396_v44 = vadd.f32 %v2354_v0, %v2144_v20 }
 0x315   : > { %v2436_v38 = vadd.f32 %v3698_v45, %v2396_v44 }
 0x316   : > { %v1852_v63 = vpop.f32.mrf.mxu2 }
 0x317   : > { %v1893_v25 = vadd.f32 %v1852_v63, %v1641_v4  ;;  %v1603_v22 = vpop.f32.mrf.mxu1  ;;  %v2472_v3 = vmax.f32 %v2436_v38, 0.0 }
 0x318   : > { %v1642_v15 = vadd.f32 %v1603_v22, %v3673_v39 }
 0x319   : > { %v2145_v54 = vadd.f32 %v2104_v12, %v1893_v25  ;;  %v2359_v14 = vpop.f32.mrf.mxu0 }
 0x31b   : > { %v2397_v18 = vadd.f32 %v2356_v47, %v2145_v54 }
 0x31d   : > { %v2437_v21 = vadd.f32 %v3698_v45, %v2397_v18 }
 0x31e   : > { %v1855_v34 = vpop.f32.mrf.mxu2 }
 0x31f   : > { %v2473_v32 = vmax.f32 %v2437_v21, 0.0  ;;  %v1894_v41 = vadd.f32 %v1855_v34, %v1642_v15  ;;  %v1605_v23 = vpop.f32.mrf.mxu1 }
 0x320   : > { %v1643_v1 = vadd.f32 %v1605_v23, %v3686_v31 }
 0x321   : > { %v2928_v2 = vpack.c.bf16 %v2473_v32, %v2472_v3  ;;  %v2146_v46 = vadd.f32 %v2107_v30, %v1894_v41  ;;  %v2361_v28 = vpop.f32.mrf.mxu0 }
 0x323   : > { %2950 = vst [vmem:[%s3715_s7 + $0x80] sm:$0xff] %v2928_v2   ;;  %v2398_v35 = vadd.f32 %v2359_v14, %v2146_v46 }
 0x325   : > { %v2438_v39 = vadd.f32 %v3698_v45, %v2398_v35 }
 0x326   : > { %v1857_v50 = vpop.f32.mrf.mxu2 }
 0x327   : > { %v1895_v8 = vadd.f32 %v1857_v50, %v1643_v1  ;;  %v2474_v17 = vmax.f32 %v2438_v39, 0.0 }
 0x329   : > { %v2147_v40 = vadd.f32 %v2109_v16, %v1895_v8 }
 0x32b   : > { %v2399_v13 = vadd.f32 %v2361_v28, %v2147_v40 }
 0x32d   : > { %v2439_v26 = vadd.f32 %v3698_v45, %v2399_v13 }
 0x32f   : > { %v2475_v36 = vmax.f32 %v2439_v26, 0.0 }
 0x331   : > { %v2933_v7 = vpack.c.bf16 %v2475_v36, %v2474_v17 }
 0x333   : > { %2951 = vst [vmem:[%s3715_s7 + $0x88] sm:$0xff] %v2933_v7  }
 0x334 PF: > { %s15_s12 = sadd.s32 1, %s3063_s12  }
 0x335   : > { %p12_p7 = scmp.ge.s32.totalorder %s15_s12, 4  }
 0x337   :  { %14 = sbr.rel (!%p12_p7) target bundleno = 2 (0x2), region = 79 }
 0x33c   :  { %2569 = vsyncpa [#allocation3], 1 }
 0x33d   :  { %2571 = vsyncpa [#allocation3 + $0x1], 1 }
 0x33e   :  { %2572 = vsyncpa [#allocation5], 1 }

// kernel: a_call__.5
= control target key start
LH: loop header
LB: loop body
LE: loop exit
PB: predicated region body
PF: predicated region fallthrough
CT: control target
= control target key end

     0   :  { %s1027_s9 = smov 0   ;;  %s1170_s0 = inlined_call_operand.vmem [shape: bf16[8,16,256], index: 0, kind: input, shape index: {}]   ;;  %s1171_s1 = inlined_call_operand.vmem [shape: bf16[8,16,256], index: 1, kind: input, shape index: {}]   ;;  %s1172_s2 = inlined_call_operand.vmem [shape: bf16[8,16,256], index: 2, kind: output, shape index: {}]  }
   0x1 LB: > { %s857_s10 = sadd.s32 4294967295, %s1010_s9   ;;  %p861_p0 = scmp.ge.s32.totalorder %s1010_s9, 1  ;;  %s1010_s9 = sphi %s1027_s9, %s12_s9  }
   0x2   : > { %p126_p1 = scmp.lt.s32.totalorder %s1010_s9, 3 }
   0x4   : > { %p127_p2 = pnand %p861_p0, %p126_p1 }
   0x5   : > { %s862_s11 = sshll.u32 (!%p127_p2), %s857_s10, 2 }
   0x6   : > { %130 = sbr.rel (%p127_p2) target bundleno = 593 (0x251), region = 28  ;;  %p157_p3 = scmp.lt.s32.totalorder (!%p127_p2), %s862_s11, 7 }
   0xb   : > { %s1174_s11 = smov (!%p157_p3, %s862_s11), 7  ;;  %vm394_vm0 = vcmask 130048  }
   0xc   : > { %s1035_s12 = sshll.u32 %s1174_s11, 4 }
   0xd   : > { %s1041_s15 = scalar_lea.vmem %s1171_s1, %s1035_s12  ;;  %s1047_s18 = scalar_lea.vmem %s1170_s0, %s1035_s12 }
   0xe   : > { %v881_v0 = vld [vmem:[%s1041_s15] sm:$0xf]  ;;  %v957_v1 = vld [vmem:[%s1041_s15 + $0x4] sm:$0xf0]  ;;  %v956_v2 = vld [vmem:[%s1041_s15 + $0x4] sm:$0xf]  ;;  %s1157_s21 = scalar_lea.vmem %s1172_s2, %s1035_s12 }
   0xf   : > { %v882_v3 = vor.u32 %v957_v1, %v881_v0  ;;  %v883_v4 = vld [vmem:[%s1041_s15 + $0x8] sm:$0xf0]  ;;  %v897_v5 = vld [vmem:[%s1041_s15 + $0x10] sm:$0xf]  ;;  %v959_v6 = vld [vmem:[%s1041_s15 + $0x14] sm:$0xf0] }
  0x10   : > { %v886_v7 = vor.u32 %v956_v2, %v883_v4  ;;  %v898_v8 = vor.u32 %v959_v6, %v897_v5  ;;  %v958_v9 = vld [vmem:[%s1041_s15 + $0x14] sm:$0xf]  ;;  %v899_v10 = vld [vmem:[%s1041_s15 + $0x18] sm:$0xf0]  ;;  %v873_v11 = vld [vmem:[%s1047_s18] sm:$0xf] }
  0x11   : > { %221 = vmatpush.bf16.xpose.msra.mxu0 %v882_v3  ;;  %v902_v12 = vor.u32 %v958_v9, %v899_v10  ;;  %v949_v13 = vld [vmem:[%s1047_s18 + $0x4] sm:$0xf0]  ;;  %v948_v14 = vld [vmem:[%s1047_s18 + $0x4] sm:$0xf]  ;;  %v875_v15 = vld [vmem:[%s1047_s18 + $0x8] sm:$0xf0] }
  0x12   : > { %235 = vmatpush.bf16.xpose.msra.mxu1 %v886_v7  ;;  %269 = vmatpush.bf16.xpose.msra.mxu2 %v898_v8  ;;  %v889_v16 = vld [vmem:[%s1047_s18 + $0x10] sm:$0xf]  ;;  %v951_v17 = vld [vmem:[%s1047_s18 + $0x14] sm:$0xf0]  ;;  %v950_v18 = vld [vmem:[%s1047_s18 + $0x14] sm:$0xf]  ;;  %v874_v22 = vor.u32 %v949_v13, %v873_v11  ;;  %v878_v27 = vor.u32 %v948_v14, %v875_v15 }
  0x13   : > { %283 = vmatpush.bf16.xpose.msra.mxu3 %v902_v12  ;;  %v891_v19 = vld [vmem:[%s1047_s18 + $0x18] sm:$0xf0]  ;;  %v929_v20 = vld [vmem:[%s1041_s15 + $0x30] sm:$0xf]  ;;  %v963_v21 = vld [vmem:[%s1041_s15 + $0x34] sm:$0xf0]  ;;  %v890_v28 = vor.u32 %v951_v17, %v889_v16 }
  0x14   : > { %v930_v23 = vor.u32 %v963_v21, %v929_v20  ;;  %v962_v24 = vld [vmem:[%s1041_s15 + $0x34] sm:$0xf]  ;;  %v931_v25 = vld [vmem:[%s1041_s15 + $0x38] sm:$0xf0]  ;;  %v913_v26 = vld [vmem:[%s1041_s15 + $0x20] sm:$0xf]  ;;  %v894_v33 = vor.u32 %v950_v18, %v891_v19 }
  0x15   : > { %v934_v29 = vor.u32 %v962_v24, %v931_v25  ;;  %v961_v30 = vld [vmem:[%s1041_s15 + $0x24] sm:$0xf0]  ;;  %v960_v31 = vld [vmem:[%s1041_s15 + $0x24] sm:$0xf]  ;;  %v915_v32 = vld [vmem:[%s1041_s15 + $0x28] sm:$0xf0] }
  0x16   : > { %v914_v34 = vor.u32 %v961_v30, %v913_v26  ;;  %v918_v35 = vor.u32 %v960_v31, %v915_v32  ;;  %v905_v36 = vld [vmem:[%s1047_s18 + $0x20] sm:$0xf]  ;;  %v953_v37 = vld [vmem:[%s1047_s18 + $0x24] sm:$0xf0]  ;;  %v952_v38 = vld [vmem:[%s1047_s18 + $0x24] sm:$0xf] }
  0x17   : > { %v907_v39 = vld [vmem:[%s1047_s18 + $0x28] sm:$0xf0]  ;;  %v921_v40 = vld [vmem:[%s1047_s18 + $0x30] sm:$0xf]  ;;  %v955_v41 = vld [vmem:[%s1047_s18 + $0x34] sm:$0xf0]  ;;  %v906_v44 = vor.u32 %v953_v37, %v905_v36 }
  0x18   : > { %222 = vmatmul.bf16.vlgmr.msra.gmra.mxu0 %v874_v22  ;;  %v954_v42 = vld [vmem:[%s1047_s18 + $0x34] sm:$0xf]  ;;  %v923_v43 = vld [vmem:[%s1047_s18 + $0x38] sm:$0xf0]  ;;  %v910_v45 = vor.u32 %v952_v38, %v907_v39  ;;  %v922_v46 = vor.u32 %v955_v41, %v921_v40 }
  0x19   : > { %236 = vmatmul.bf16.vlgmr.msra.gmra.mxu1 %v878_v27  ;;  %270 = vmatmul.bf16.vlgmr.msra.gmra.mxu2 %v890_v28  ;;  %v926_v47 = vor.u32 %v954_v42, %v923_v43 }
  0x1a   : > { %365 = vmatpush.bf16.xpose.msrb.mxu2 %v930_v23  ;;  %331 = vmatpush.bf16.xpose.msrb.mxu1 %v918_v35 }
  0x1b   : > { %379 = vmatpush.bf16.xpose.msrb.mxu3 %v934_v29  ;;  %317 = vmatpush.bf16.xpose.msrb.mxu0 %v914_v34 }
  0x1c   : > { %284 = vmatmul.bf16.vlgmr.msra.gmra.mxu3 %v894_v33 }
  0x28   : > { %318 = vmatmul.bf16.vlgmr.msrb.gmra.mxu0 %v906_v44 }
  0x29   : > { %332 = vmatmul.bf16.vlgmr.msrb.gmra.mxu1 %v910_v45  ;;  %366 = vmatmul.bf16.vlgmr.msrb.gmra.mxu2 %v922_v46 }
  0x2c   : > { %380 = vmatmul.bf16.vlgmr.msrb.gmra.mxu3 %v926_v47 }
  0x95   : > { %v223_v48 = vpop.f32.mrf.mxu0 }
  0x96   : > { %v237_v49 = vpop.f32.mrf.mxu1 }
  0x97   : > { %v238_v50 = vadd.f32 %v237_v49, %v223_v48 }
  0x99   : > { %v386_v51 = vmul.f32 0.25, %v238_v50 }
  0x9b   : > { %v395_v52 = vsel %vm394_vm0, %v386_v51, -inf }
  0x9c   : > { %v271_v53 = vpop.f32.mrf.mxu2  ;;  %396 = vmax.xlane.f32.xlu1 %v395_v52 }
  0x9d   : > { %v225_v55 = vpop.f32.mrf.mxu0 }
  0x9e   : > { %v239_v57 = vpop.f32.mrf.mxu1 }
  0x9f   : > { %v285_v54 = vpop.f32.mrf.mxu3  ;;  %v240_v58 = vadd.f32 %v239_v57, %v225_v55 }
  0xa0   : > { %v286_v56 = vadd.f32 %v285_v54, %v271_v53 }
  0xa1   : > { %v387_v60 = vmul.f32 0.25, %v240_v58 }
  0xa2   : > { %v388_v59 = vmul.f32 0.25, %v286_v56 }
  0xa3   : > { %v398_v62 = vsel %vm394_vm0, %v387_v60, -inf }
  0xa4   : > { %v401_v61 = vsel %vm394_vm0, %v388_v59, -inf  ;;  %v273_v63 = vpop.f32.mrf.mxu2  ;;  %399 = vmax.xlane.f32.xlu1 %v398_v62 }
  0xa5   : > { %402 = vmax.xlane.f32.xlu0 %v401_v61  ;;  %v319_v1 = vpop.f32.mrf.mxu0 }
  0xa6   : > { %v333_v3 = vpop.f32.mrf.mxu1 }
  0xa7   : > { %v287_v0 = vpop.f32.mrf.mxu3  ;;  %v334_v5 = vadd.f32 %v333_v3, %v319_v1  ;;  %v181_v1 = vld [vmem:[%s1047_s18 + $0x18] sm:$0xff] }
  0xa8   : > { %v288_v2 = vadd.f32 %v287_v0, %v273_v63  ;;  %v180_v0 = vld [vmem:[%s1047_s18 + $0x10] sm:$0xff]  ;;  %v189_v3 = vld [vmem:[%s1041_s15 + $0x18] sm:$0xff] }
  0xa9   : > { %v390_v7 = vmul.f32 0.25, %v334_v5  ;;  %v496_v5 = vunpack.c.h.bf16 %v180_v0 }
  0xaa   : > { %v389_v4 = vmul.f32 0.25, %v288_v2  ;;  %v188_v2 = vld [vmem:[%s1041_s15 + $0x10] sm:$0xff] }
  0xab   : > { %v407_v15 = vsel %vm394_vm0, %v390_v7, -inf }
  0xac   : > { %v404_v6 = vsel %vm394_vm0, %v389_v4, -inf  ;;  %v367_v8 = vpop.f32.mrf.mxu2 }
  0xad   : > { %405 = vmax.xlane.f32.xlu0 %v404_v6  ;;  %v321_v10 = vpop.f32.mrf.mxu0  ;;  %v497_v6 = vunpack.c.l.bf16 %v181_v1 }
  0xae   : > { %v335_v12 = vpop.f32.mrf.mxu1 }
  0xaf   : > { %v381_v9 = vpop.f32.mrf.mxu3  ;;  %v336_v13 = vadd.f32 %v335_v12, %v321_v10  ;;  %v511_v10 = vunpack.c.l.bf16 %v188_v2  ;;  %v513_v12 = vunpack.c.l.bf16 %v189_v3 }
  0xb0   : > { %v382_v11 = vadd.f32 %v381_v9, %v367_v8  ;;  %v178_v8 = vld [vmem:[%s1047_s18] sm:$0xff]  ;;  %v179_v9 = vld [vmem:[%s1047_s18 + $0x8] sm:$0xff] }
  0xb1   : > { %v391_v16 = vmul.f32 0.25, %v336_v13  ;;  %v514_v13 = vunpack.c.h.bf16 %v189_v3 }
  0xb2   : > { %v392_v14 = vmul.f32 0.25, %v382_v11  ;;  %v512_v11 = vunpack.c.h.bf16 %v188_v2 }
  0xb3   : > { %v410_v18 = vsel %vm394_vm0, %v391_v16, -inf }
  0xb4   : > { %v413_v17 = vsel %vm394_vm0, %v392_v14, -inf  ;;  %v369_v19 = vpop.f32.mrf.mxu2  ;;  %411 = vmax.xlane.f32.xlu1 %v410_v18  ;;  %v493_v18 = vunpack.c.l.bf16 %v179_v9 }
  0xb5   : > { %414 = vmax.xlane.f32.xlu2 %v413_v17  ;;  %408 = vmax.xlane.f32.xlu0 %v407_v15  ;;  %v187_v15 = vld [vmem:[%s1041_s15 + $0x8] sm:$0xff]  ;;  %v492_v17 = vunpack.c.h.bf16 %v178_v8 }
  0xb7   : > { %v383_v20 = vpop.f32.mrf.mxu3 }
  0xb8   : > { %v384_v21 = vadd.f32 %v383_v20, %v369_v19  ;;  %v494_v19 = vunpack.c.h.bf16 %v179_v9 }
  0xba   : > { %v393_v22 = vmul.f32 0.25, %v384_v21  ;;  %v528_v21 = vadd.f32 %v512_v11, %v496_v5 }
  0xbc   : > { %v416_v23 = vsel %vm394_vm0, %v393_v22, -inf }
  0xbd   : > { %417 = vmax.xlane.f32.xlu2 %v416_v23 }
 0x10f   : > { %v397_v24 = vpop.xlane.xlu1 %396 }
 0x110   : > { %v419_v25 = vsub.f32 %v386_v51, %v397_v24 }
 0x112   : > { %v427_v26 = vmul.f32 1.442695, %v419_v25 }
 0x114   : > { %972 = vpow2.f32 %v427_v26  ;;  %v509_v26 = vunpack.c.l.bf16 %v187_v15 }
 0x117   : > { %v400_v29 = vpop.xlane.xlu1 %399 }
 0x118   : > { %v403_v27 = vpop.xlane.xlu0 %402  ;;  %v420_v31 = vsub.f32 %v387_v60, %v400_v29 }
 0x119   : > { %v421_v28 = vsub.f32 %v388_v59, %v403_v27  ;;  %v510_v27 = vunpack.c.h.bf16 %v187_v15 }
 0x11a   : > { %v1089_v32 = vpop.eup %972  ;;  %v429_v34 = vmul.f32 1.442695, %v420_v31 }
 0x11b   : > { %v431_v30 = vmul.f32 1.442695, %v421_v28  ;;  %v443_v33 = vsel %vm394_vm0, %v1089_v32, 0.0 }
 0x11c   : > { %444 = vadd.xlane.f32.xlu1 %v443_v33  ;;  %v525_v33 = vadd.f32 %v509_v26, %v493_v18 }
 0x11d   : > { %974 = vpow2.f32 %v431_v30 }
 0x11e   : > { %976 = vpow2.f32 %v429_v34  ;;  %v526_v34 = vadd.f32 %v510_v27, %v494_v19  ;;  %v183_v19 = vld [vmem:[%s1047_s18 + $0x28] sm:$0xff] }
 0x11f   : > { %v191_v27 = vld [vmem:[%s1041_s15 + $0x28] sm:$0xff] }
 0x120   : > { %v406_v35 = vpop.xlane.xlu0 %405 }
 0x121   : > { %v422_v36 = vsub.f32 %v389_v4, %v406_v35  ;;  %v495_v4 = vunpack.c.l.bf16 %v180_v0 }
 0x123   : > { %v1093_v37 = vpop.eup %974  ;;  %v433_v38 = vmul.f32 1.442695, %v422_v36  ;;  %v527_v20 = vadd.f32 %v511_v10, %v495_v4 }
 0x124   : > { %v449_v39 = vsel %vm394_vm0, %v1093_v37, 0.0  ;;  %v1097_v42 = vpop.eup %976 }
 0x125   : > { %978 = vpow2.f32 %v433_v38  ;;  %450 = vadd.xlane.f32.xlu2 %v449_v39  ;;  %v446_v51 = vsel %vm394_vm0, %v1097_v42, 0.0  ;;  %v541_v28 = vpack.c.bf16 %v528_v21, %v527_v20 }
 0x127   : > { %v412_v45 = vpop.xlane.xlu1 %411  ;;  %v551_v35 = vunpack.c.l.bf16 %v541_v28  ;;  %v552_v36 = vunpack.c.h.bf16 %v541_v28 }
 0x128   : > { %v415_v40 = vpop.xlane.xlu2 %414  ;;  %v409_v41 = vpop.xlane.xlu0 %408  ;;  %v424_v49 = vsub.f32 %v391_v16, %v412_v45  ;;  %v491_v16 = vunpack.c.l.bf16 %v178_v8  ;;  %v192_v8 = vld [vmem:[%s1041_s15 + $0x30] sm:$0xff] }
 0x129   : > { %v425_v43 = vsub.f32 %v392_v14, %v415_v40  ;;  %v423_v44 = vsub.f32 %v390_v7, %v409_v41  ;;  %v498_v7 = vunpack.c.h.bf16 %v181_v1  ;;  %v186_v14 = vld [vmem:[%s1041_s15] sm:$0xff]  ;;  %v540_v41 = vpack.c.bf16 %v526_v34, %v525_v33 }
 0x12a   : > { %v437_v52 = vmul.f32 1.442695, %v424_v49  ;;  %v507_v24 = vunpack.c.l.bf16 %v186_v14  ;;  %v508_v25 = vunpack.c.h.bf16 %v186_v14  ;;  %v182_v14 = vld [vmem:[%s1047_s18 + $0x20] sm:$0xff]  ;;  %v501_v33 = vunpack.c.l.bf16 %v183_v19 }
 0x12b   : > { %v1099_v46 = vpop.eup %978  ;;  %v439_v47 = vmul.f32 1.442695, %v425_v43  ;;  %v435_v48 = vmul.f32 1.442695, %v423_v44  ;;  %v530_v23 = vadd.f32 %v514_v13, %v498_v7  ;;  %v567_v43 = vmul.f32 0.5, %v551_v35  ;;  %v185_v7 = vld [vmem:[%s1047_s18 + $0x38] sm:$0xff] }
 0x12c   : > { %v452_v50 = vsel %vm394_vm0, %v1099_v46, 0.0  ;;  %v523_v30 = vadd.f32 %v507_v24, %v491_v16  ;;  %v524_v31 = vadd.f32 %v508_v25, %v492_v17  ;;  %v568_v44 = vmul.f32 0.5, %v552_v36  ;;  %v193_v13 = vld [vmem:[%s1041_s15 + $0x38] sm:$0xff]  ;;  %v190_v24 = vld [vmem:[%s1041_s15 + $0x20] sm:$0xff] }
 0x12d   : > { %980 = vpow2.f32 %v439_v47  ;;  %453 = vadd.xlane.f32.xlu0 %v452_v50  ;;  %447 = vadd.xlane.f32.xlu2 %v446_v51  ;;  %v549_v50 = vunpack.c.l.bf16 %v540_v41  ;;  %v550_v51 = vunpack.c.h.bf16 %v540_v41  ;;  %v505_v17 = vunpack.c.l.bf16 %v185_v7 }
 0x12e   : > { %982 = vpow2.f32 %v435_v48  ;;  %v539_v40 = vpack.c.bf16 %v524_v31, %v523_v30  ;;  %v506_v18 = vunpack.c.h.bf16 %v185_v7  ;;  %v521_v25 = vunpack.c.l.bf16 %v193_v13 }
 0x12f   : > { %984 = vpow2.f32 %v437_v52  ;;  %v581_v52 = vpack.c.bf16 %v568_v44, %v567_v43  ;;  %v522_v26 = vunpack.c.h.bf16 %v193_v13  ;;  %v499_v28 = vunpack.c.l.bf16 %v182_v14 }
 0x130   : > { %v418_v53 = vpop.xlane.xlu2 %417  ;;  %v547_v48 = vunpack.c.l.bf16 %v539_v40  ;;  %v548_v49 = vunpack.c.h.bf16 %v539_v40  ;;  %v500_v31 = vunpack.c.h.bf16 %v182_v14  ;;  %v537_v34 = vadd.f32 %v521_v25, %v505_v17 }
 0x131   : > { %v426_v54 = vsub.f32 %v393_v22, %v418_v53  ;;  %v529_v22 = vadd.f32 %v513_v12, %v497_v6  ;;  %v641_v0 = vunpack.c.h.b16 %v581_v52  ;;  %v184_v6 = vld [vmem:[%s1047_s18 + $0x30] sm:$0xff]  ;;  %v538_v35 = vadd.f32 %v522_v26, %v506_v18 }
 0x132   : > { %v503_v15 = vunpack.c.l.bf16 %v184_v6  ;;  %v504_v16 = vunpack.c.h.bf16 %v184_v6  ;;  %v502_v36 = vunpack.c.h.bf16 %v183_v19  ;;  %v516_v40 = vunpack.c.h.bf16 %v190_v24 }
 0x133   : > { %v1105_v55 = vpop.eup %980  ;;  %v441_v56 = vmul.f32 1.442695, %v426_v54  ;;  %v542_v29 = vpack.c.bf16 %v530_v23, %v529_v22  ;;  %v563_v54 = vmul.f32 0.5, %v547_v48  ;;  %v519_v22 = vunpack.c.l.bf16 %v192_v8 }
 0x134   : > { %v1107_v57 = vpop.eup %982  ;;  %v461_v58 = vsel %vm394_vm0, %v1105_v55, 0.0  ;;  %v520_v23 = vunpack.c.h.bf16 %v192_v8  ;;  %v517_v41 = vunpack.c.l.bf16 %v191_v27  ;;  %v518_v43 = vunpack.c.h.bf16 %v191_v27 }
 0x135   : > { %986 = vpow2.f32 %v441_v56  ;;  %462 = vadd.xlane.f32.xlu0 %v461_v58  ;;  %v455_v59 = vsel %vm394_vm0, %v1107_v57, 0.0  ;;  %v1113_v60 = vpop.eup %984  ;;  %v553_v38 = vunpack.c.l.bf16 %v542_v29  ;;  %v554_v39 = vunpack.c.h.bf16 %v542_v29 }
 0x136   : > { %456 = vadd.xlane.f32.xlu2 %v455_v59  ;;  %v458_v63 = vsel %vm394_vm0, %v1113_v60, 0.0  ;;  %v564_v56 = vmul.f32 0.5, %v548_v49  ;;  %v565_v58 = vmul.f32 0.5, %v549_v50  ;;  %v566_v59 = vmul.f32 0.5, %v550_v51 }
 0x137   : > { %v569_v45 = vmul.f32 0.5, %v553_v38  ;;  %v570_v47 = vmul.f32 0.5, %v554_v39  ;;  %v535_v29 = vadd.f32 %v519_v22, %v503_v15  ;;  %v536_v30 = vadd.f32 %v520_v23, %v504_v16 }
 0x138   : > { %v579_v2 = vpack.c.bf16 %v564_v56, %v563_v54  ;;  %v580_v3 = vpack.c.bf16 %v566_v59, %v565_v58  ;;  %v515_v38 = vunpack.c.l.bf16 %v190_v24  ;;  %v546_v44 = vpack.c.bf16 %v538_v35, %v537_v34 }
 0x139   : > { %v582_v53 = vpack.c.bf16 %v570_v47, %v569_v45  ;;  %v545_v39 = vpack.c.bf16 %v536_v30, %v535_v29  ;;  %v532_v50 = vadd.f32 %v516_v40, %v500_v31  ;;  %v533_v51 = vadd.f32 %v517_v41, %v501_v33 }
 0x13a   : > { %v594_v9 = vunpack.c.l.b16 %v579_v2  ;;  %v596_v10 = vunpack.c.l.b16 %v580_v3  ;;  %v595_v11 = vunpack.c.h.b16 %v579_v2  ;;  %v597_v12 = vunpack.c.h.b16 %v580_v3 }
 0x13b   : > { %v1115_v61 = vpop.eup %986  ;;  %v643_v1 = vunpack.c.h.b16 %v582_v53  ;;  %v531_v45 = vadd.f32 %v515_v38, %v499_v28  ;;  %v559_v48 = vunpack.c.l.bf16 %v545_v39  ;;  %v560_v49 = vunpack.c.h.bf16 %v545_v39 }
 0x13c   : > { %v464_v62 = vsel %vm394_vm0, %v1115_v61, 0.0  ;;  %v598_v20 = vpack.c.b16 %v596_v10, %v594_v9  ;;  %v599_v21 = vpack.c.b16 %v597_v12, %v595_v11  ;;  %v534_v54 = vadd.f32 %v518_v43, %v502_v36 }
 0x13d   : > { %465 = vadd.xlane.f32.xlu1 %v464_v62  ;;  %459 = vadd.xlane.f32.xlu0 %v458_v63  ;;  %v640_v62 = vunpack.c.l.b16 %v581_v52  ;;  %v642_v63 = vunpack.c.l.b16 %v582_v53  ;;  %v645_v5 = vpack.c.b16 %v643_v1, %v641_v0  ;;  %v561_v52 = vunpack.c.l.bf16 %v546_v44 }
 0x13e   : > { %612 = vmatpush.bf16.msra.mxu0 %v598_v20  ;;  %626 = vmatpush.bf16.msra.mxu1 %v599_v21  ;;  %v562_v53 = vunpack.c.h.bf16 %v546_v44  ;;  %v575_v58 = vmul.f32 0.5, %v559_v48  ;;  %v576_v59 = vmul.f32 0.5, %v560_v49  ;;  %v544_v2 = vpack.c.bf16 %v534_v54, %v533_v51 }
 0x13f   : > { %v644_v4 = vpack.c.b16 %v642_v63, %v640_v62  ;;  %672 = vmatpush.bf16.msra.mxu3 %v645_v5  ;;  %v543_v62 = vpack.c.bf16 %v532_v50, %v531_v45  ;;  %v577_v63 = vmul.f32 0.5, %v561_v52 }
 0x140   : > { %v578_v0 = vmul.f32 0.5, %v562_v53  ;;  %v585_v1 = vpack.c.bf16 %v576_v59, %v575_v58  ;;  %v557_v8 = vunpack.c.l.bf16 %v544_v2  ;;  %v558_v9 = vunpack.c.h.bf16 %v544_v2 }
 0x141   : > { %658 = vmatpush.bf16.msra.mxu2 %v644_v4  ;;  %v555_v3 = vunpack.c.l.bf16 %v543_v62  ;;  %v556_v4 = vunpack.c.h.bf16 %v543_v62 }
 0x142   : > { %v586_v5 = vpack.c.bf16 %v578_v0, %v577_v63  ;;  %v732_v6 = vunpack.c.l.b16 %v585_v1  ;;  %v733_v7 = vunpack.c.h.b16 %v585_v1  ;;  %v573_v14 = vmul.f32 0.5, %v557_v8 }
 0x143   : > { %v571_v12 = vmul.f32 0.5, %v555_v3  ;;  %v572_v13 = vmul.f32 0.5, %v556_v4  ;;  %v574_v15 = vmul.f32 0.5, %v558_v9 }
 0x144   : > { %v734_v10 = vunpack.c.l.b16 %v586_v5  ;;  %v735_v11 = vunpack.c.h.b16 %v586_v5 }
 0x145   : > { %v583_v21 = vpack.c.bf16 %v572_v13, %v571_v12  ;;  %v584_v22 = vpack.c.bf16 %v574_v15, %v573_v14 }
 0x146   : > { %v736_v17 = vpack.c.b16 %v734_v10, %v732_v6  ;;  %v737_v18 = vpack.c.b16 %v735_v11, %v733_v7 }
 0x147   : > { %v686_v24 = vunpack.c.l.b16 %v583_v21  ;;  %v688_v25 = vunpack.c.l.b16 %v584_v22  ;;  %v687_v26 = vunpack.c.h.b16 %v583_v21  ;;  %v689_v27 = vunpack.c.h.b16 %v584_v22 }
 0x148   : > { %750 = vmatpush.bf16.msrb.mxu2 %v736_v17  ;;  %764 = vmatpush.bf16.msrb.mxu3 %v737_v18 }
 0x149   : > { %v690_v29 = vpack.c.b16 %v688_v25, %v686_v24  ;;  %v691_v31 = vpack.c.b16 %v689_v27, %v687_v26 }
 0x14b   : > { %704 = vmatpush.bf16.msrb.mxu0 %v690_v29  ;;  %718 = vmatpush.bf16.msrb.mxu1 %v691_v31 }
 0x18f   : > { %v445_v47 = vpop.xlane.xlu1 %444 }
 0x190   : > { %988 = vrcp.f32 %v445_v47 }
 0x196   : > { %v989_v16 = vpop.eup %988 }
 0x197   : > { %v475_v30 = vmul.f32 %v989_v16, %v1089_v32 }
 0x198   : > { %v451_v56 = vpop.xlane.xlu2 %450 }
 0x199   : > { %990 = vrcp.f32 %v451_v56  ;;  %v483_v39 = vpack.c.bf16 %v475_v30, %v475_v30 }
 0x19b   : > { %v589_v32 = vunpack.c.l.b16 %v483_v39 }
 0x19f   : > { %v991_v23 = vpop.eup %990 }
 0x1a0   : > { %v454_v19 = vpop.xlane.xlu0 %453  ;;  %v448_v20 = vpop.xlane.xlu2 %447  ;;  %v477_v28 = vmul.f32 %v991_v23, %v1093_v37 }
 0x1a1   : > { %992 = vrcp.f32 %v454_v19 }
 0x1a2   : > { %994 = vrcp.f32 %v448_v20  ;;  %v485_v35 = vpack.c.bf16 %v477_v28, %v477_v28 }
 0x1a4   : > { %v635_v37 = vunpack.c.l.b16 %v485_v35 }
 0x1a7   : > { %v993_v33 = vpop.eup %992 }
 0x1a8   : > { %v995_v34 = vpop.eup %994  ;;  %v478_v36 = vmul.f32 %v993_v33, %v1099_v46  ;;  %v463_v38 = vpop.xlane.xlu0 %462 }
 0x1a9   : > { %v476_v40 = vmul.f32 %v995_v34, %v1097_v42  ;;  %v457_v41 = vpop.xlane.xlu2 %456 }
 0x1aa   : > { %v486_v43 = vpack.c.bf16 %v478_v36, %v478_v36  ;;  %996 = vrcp.f32 %v457_v41 }
 0x1ab   : > { %v484_v44 = vpack.c.bf16 %v476_v40, %v476_v40  ;;  %998 = vrcp.f32 %v463_v38 }
 0x1ac   : > { %v636_v45 = vunpack.c.l.b16 %v486_v43 }
 0x1ad   : > { %v590_v47 = vunpack.c.l.b16 %v484_v44 }
 0x1ae   : > { %v637_v48 = vpack.c.b16 %v636_v45, %v635_v37 }
 0x1af   : > { %v591_v49 = vpack.c.b16 %v590_v47, %v589_v32 }
 0x1b0   : > { %937 = vmatmul.msk.bf16.vlgmr.msra.gmra.mxu2 %vm394_vm0, %v637_v48  ;;  %938 = vmatmul.msk.bf16.vlgmr.msra.gmra.mxu3 %vm394_vm0, %v637_v48  ;;  %v460_v46 = vpop.xlane.xlu0 %459  ;;  %v466_v50 = vpop.xlane.xlu1 %465 }
 0x1b1   : > { %v997_v51 = vpop.eup %996  ;;  %1000 = vrcp.f32 %v460_v46  ;;  %935 = vmatmul.msk.bf16.vlgmr.msra.gmra.mxu0 %vm394_vm0, %v591_v49  ;;  %936 = vmatmul.msk.bf16.vlgmr.msra.gmra.mxu1 %vm394_vm0, %v591_v49 }
 0x1b2   : > { %v999_v42 = vpop.eup %998  ;;  %1002 = vrcp.f32 %v466_v50  ;;  %v479_v52 = vmul.f32 %v997_v51, %v1107_v57 }
 0x1b3   : > { %v481_v53 = vmul.f32 %v999_v42, %v1105_v55 }
 0x1b4   : > { %v487_v58 = vpack.c.bf16 %v479_v52, %v479_v52 }
 0x1b5   : > { %v489_v62 = vpack.c.bf16 %v481_v53, %v481_v53 }
 0x1b6   : > { %v681_v2 = vunpack.c.l.b16 %v487_v58 }
 0x1b7   : > { %v1001_v54 = vpop.eup %1000  ;;  %v727_v4 = vunpack.c.l.b16 %v489_v62 }
 0x1b8   : > { %v1003_v56 = vpop.eup %1002  ;;  %v480_v59 = vmul.f32 %v1001_v54, %v1113_v60 }
 0x1b9   : > { %v482_v63 = vmul.f32 %v1003_v56, %v1115_v61 }
 0x1ba   : > { %v488_v0 = vpack.c.bf16 %v480_v59, %v480_v59 }
 0x1bb   : > { %v490_v1 = vpack.c.bf16 %v482_v63, %v482_v63 }
 0x1bc   : > { %v682_v3 = vunpack.c.l.b16 %v488_v0 }
 0x1bd   : > { %v728_v5 = vunpack.c.l.b16 %v490_v1 }
 0x1be   : > { %v683_v6 = vpack.c.b16 %v682_v3, %v681_v2 }
 0x1bf   : > { %v729_v7 = vpack.c.b16 %v728_v5, %v727_v4 }
 0x1c1   : > { %939 = vmatmul.msk.bf16.vlgmr.msrb.gmra.mxu0 %vm394_vm0, %v683_v6  ;;  %940 = vmatmul.msk.bf16.vlgmr.msrb.gmra.mxu1 %vm394_vm0, %v683_v6 }
 0x1c2   : > { %941 = vmatmul.msk.bf16.vlgmr.msrb.gmra.mxu2 %vm394_vm0, %v729_v7  ;;  %942 = vmatmul.msk.bf16.vlgmr.msrb.gmra.mxu3 %vm394_vm0, %v729_v7 }
 0x22e   : > { %v614_v55 = vpop.f32.mrf.mxu0  ;;  %v628_v57 = vpop.f32.mrf.mxu1 }
 0x22f   : > { %v771_v60 = vpack.c.bf16 %v628_v57, %v614_v55 }
 0x231   : > { %779 = vst [vmem:[%s1157_s21] sm:$0xff] %v771_v60 }
 0x233   : > { %v660_v61 = vpop.f32.mrf.mxu2  ;;  %v674_v8 = vpop.f32.mrf.mxu3 }
 0x234   : > { %v773_v9 = vpack.c.bf16 %v674_v8, %v660_v61 }
 0x236   : > { %781 = vst [vmem:[%s1157_s21 + $0x10] sm:$0xff] %v773_v9  ;;  %v616_v10 = vpop.f32.mrf.mxu0  ;;  %v630_v11 = vpop.f32.mrf.mxu1 }
 0x237   : > { %v772_v12 = vpack.c.bf16 %v630_v11, %v616_v10 }
 0x239   : > { %780 = vst [vmem:[%s1157_s21 + $0x8] sm:$0xff] %v772_v12 }
 0x23b   : > { %v662_v13 = vpop.f32.mrf.mxu2  ;;  %v676_v14 = vpop.f32.mrf.mxu3 }
 0x23c   : > { %v774_v15 = vpack.c.bf16 %v676_v14, %v662_v13 }
 0x23e   : > { %782 = vst [vmem:[%s1157_s21 + $0x18] sm:$0xff] %v774_v15  ;;  %v706_v16 = vpop.f32.mrf.mxu0  ;;  %v720_v17 = vpop.f32.mrf.mxu1 }
 0x23f   : > { %v775_v18 = vpack.c.bf16 %v720_v17, %v706_v16 }
 0x241   : > { %783 = vst [vmem:[%s1157_s21 + $0x20] sm:$0xff] %v775_v18 }
 0x245   : > { %v752_v19 = vpop.f32.mrf.mxu2  ;;  %v766_v20 = vpop.f32.mrf.mxu3 }
 0x246   : > { %v777_v21 = vpack.c.bf16 %v766_v20, %v752_v19  ;;  %v708_v22 = vpop.f32.mrf.mxu0  ;;  %v722_v23 = vpop.f32.mrf.mxu1 }
 0x247   : > { %v776_v24 = vpack.c.bf16 %v722_v23, %v708_v22 }
 0x248   : > { %785 = vst [vmem:[%s1157_s21 + $0x30] sm:$0xff] %v777_v21 }
 0x249   : > { %784 = vst [vmem:[%s1157_s21 + $0x28] sm:$0xff] %v776_v24 }
 0x24d   : > { %v754_v25 = vpop.f32.mrf.mxu2  ;;  %v768_v26 = vpop.f32.mrf.mxu3 }
 0x24e   : > { %v778_v27 = vpack.c.bf16 %v768_v26, %v754_v25 }
 0x250   : > { %786 = vst [vmem:[%s1157_s21 + $0x38] sm:$0xff] %v778_v27 }
 0x251 PF: > { %s12_s9 = sadd.s32 1, %s1010_s9  }
 0x252   : > { %p9_p4 = scmp.ge.s32.totalorder %s12_s9, 4  }
 0x254   :  { %11 = sbr.rel (!%p9_p4) target bundleno = 1 (0x1), region = 61 }

// kernel: a_call__.6
= control target key start
LH: loop header
LB: loop body
LE: loop exit
PB: predicated region body
PF: predicated region fallthrough
CT: control target
= control target key end

     0   :  { %s854_s12 = smov 0   ;;  %s1027_s0 = inlined_call_operand.vmem [shape: bf16[512,64], index: 0, kind: input, shape index: {}]   ;;  %s1028_s1 = inlined_call_operand.vmem [shape: bf16[64,16], index: 1, kind: input, shape index: {}]   ;;  %s1029_s2 = inlined_call_operand.vmem [shape: f32[1,16], index: 2, kind: input, shape index: {}]   ;;  %s1030_s3 = inlined_call_operand.vmem [shape: bf16[512,16], index: 3, kind: output, shape index: {}]  }
   0x1 LB: > { %s678_s13 = sadd.s32 4294967295, %s832_s12   ;;  %p682_p0 = scmp.ge.s32.totalorder %s832_s12, 1  ;;  %s832_s12 = sphi %s854_s12, %s13_s12  }
   0x2   : > { %p138_p1 = scmp.lt.s32.totalorder %s832_s12, 3 }
   0x4   : > { %p139_p2 = pnand %p682_p0, %p138_p1 }
   0x5   : > { %s683_s16 = sshll.u32 (!%p139_p2), %s678_s13, 5 }
   0x6   : > { %142 = sbr.rel (%p139_p2) target bundleno = 223 (0xdf), region = 32  ;;  %p163_p3 = scmp.lt.s32.totalorder (!%p139_p2), %s683_s16, 63 }
   0xb   : > { %v804_v0 = vld [vmem:[%s1028_s1 + $0x18] sm:$0xff]  ;;  %v803_v1 = vld [vmem:[%s1028_s1 + $0x10] sm:$0xff]  ;;  %s1032_s16 = smov (!%p163_p3, %s683_s16), 63  ;;  %v802_v2 = vld [vmem:[%s1028_s1 + $0x8] sm:$0xff]  ;;  %vm319_vm0 = vcmask 523264   ;;  %vm589_vm3 = vcmask 125952  }
   0xc   : > { %372 = vmatpush.bf16.msra.mxu0 %v804_v0  ;;  %805 = vmatpush.bf16.msra.mxu1 %v804_v0  ;;  %s684_s21 = sshll.u32 %s1032_s16, 2  ;;  %v801_v3 = vld [vmem:[%s1028_s1] sm:$0xff] }
   0xd   : > { %806 = vmatpush.bf16.msra.mxu2 %v804_v0  ;;  %807 = vmatpush.bf16.msra.mxu3 %v804_v0  ;;  %s882_s26 = scalar_lea.vmem %s1027_s0, %s684_s21  ;;  %v919_v20 = vld [vmem:[%s1029_s2] ss:$0 sm:$0xff]  ;;  %s928_s4 = scalar_lea.vmem %s1030_s3, %s684_s21 }
   0xe   : > { %v785_v4 = vld [vmem:[%s882_s26] sm:$0xff]  ;;  %v786_v8 = vld [vmem:[%s882_s26 + $0x8] sm:$0xff]  ;;  %v787_v12 = vld [vmem:[%s882_s26 + $0x10] sm:$0xff] }
   0xf   : > { %v789_v5 = vld [vmem:[%s882_s26 + $0x20] sm:$0xff]  ;;  %v790_v9 = vld [vmem:[%s882_s26 + $0x28] sm:$0xff]  ;;  %v791_v13 = vld [vmem:[%s882_s26 + $0x30] sm:$0xff] }
  0x10   : > { %373 = vmatpush.bf16.msra.mxu0 %v803_v1  ;;  %808 = vmatpush.bf16.msra.mxu1 %v803_v1  ;;  %v793_v6 = vld [vmem:[%s882_s26 + $0x40] sm:$0xff]  ;;  %v794_v10 = vld [vmem:[%s882_s26 + $0x48] sm:$0xff]  ;;  %v795_v14 = vld [vmem:[%s882_s26 + $0x50] sm:$0xff] }
  0x11   : > { %809 = vmatpush.bf16.msra.mxu2 %v803_v1  ;;  %810 = vmatpush.bf16.msra.mxu3 %v803_v1  ;;  %v797_v7 = vld [vmem:[%s882_s26 + $0x60] sm:$0xff]  ;;  %v798_v11 = vld [vmem:[%s882_s26 + $0x68] sm:$0xff]  ;;  %v799_v15 = vld [vmem:[%s882_s26 + $0x70] sm:$0xff] }
  0x12   : > { %v788_v16 = vld [vmem:[%s882_s26 + $0x18] sm:$0xff] }
  0x13   : > { %v792_v17 = vld [vmem:[%s882_s26 + $0x38] sm:$0xff] }
  0x14   : > { %374 = vmatpush.bf16.msra.mxu0 %v802_v2  ;;  %811 = vmatpush.bf16.msra.mxu1 %v802_v2  ;;  %v796_v18 = vld [vmem:[%s882_s26 + $0x58] sm:$0xff] }
  0x15   : > { %812 = vmatpush.bf16.msra.mxu2 %v802_v2  ;;  %813 = vmatpush.bf16.msra.mxu3 %v802_v2  ;;  %v800_v19 = vld [vmem:[%s882_s26 + $0x78] sm:$0xff] }
  0x18   : > { %375 = vmatpush.bf16.msra.mxu0 %v801_v3  ;;  %814 = vmatpush.bf16.msra.mxu1 %v801_v3 }
  0x19   : > { %815 = vmatpush.bf16.msra.mxu2 %v801_v3  ;;  %816 = vmatpush.bf16.msra.mxu3 %v801_v3 }
  0x1b   : > { %767 = vmatmul.msk.bf16.vlgmr.msra.gmra.mxu0 %vm319_vm0, %v785_v4  ;;  %771 = vmatmul.msk.bf16.vlgmr.msra.gmra.mxu1 %vm319_vm0, %v789_v5 }
  0x1c   : > { %775 = vmatmul.msk.bf16.vlgmr.msra.gmra.mxu2 %vm319_vm0, %v793_v6  ;;  %779 = vmatmul.msk.bf16.vlgmr.msra.gmra.mxu3 %vm319_vm0, %v797_v7 }
  0x2b   : > { %768 = vmatmul.msk.bf16.gmra.mxu0 %vm319_vm0, %v786_v8  ;;  %772 = vmatmul.msk.bf16.gmra.mxu1 %vm319_vm0, %v790_v9 }
  0x2c   : > { %776 = vmatmul.msk.bf16.gmra.mxu2 %vm319_vm0, %v794_v10  ;;  %780 = vmatmul.msk.bf16.gmra.mxu3 %vm319_vm0, %v798_v11 }
  0x3b   : > { %769 = vmatmul.msk.bf16.gmra.mxu0 %vm319_vm0, %v787_v12  ;;  %773 = vmatmul.msk.bf16.gmra.mxu1 %vm319_vm0, %v791_v13 }
  0x3c   : > { %777 = vmatmul.msk.bf16.gmra.mxu2 %vm319_vm0, %v795_v14  ;;  %781 = vmatmul.msk.bf16.gmra.mxu3 %vm319_vm0, %v799_v15 }
  0x4b   : > { %770 = vmatmul.msk.bf16.gmra.mxu0 %vm319_vm0, %v788_v16  ;;  %774 = vmatmul.msk.bf16.gmra.mxu1 %vm319_vm0, %v792_v17 }
  0x4c   : > { %778 = vmatmul.msk.bf16.gmra.mxu2 %vm319_vm0, %v796_v18  ;;  %782 = vmatmul.msk.bf16.gmra.mxu3 %vm319_vm0, %v800_v19 }
  0x98   : > { %v377_v21 = vpop.f32.mrf.mxu0  ;;  %v397_v22 = vpop.f32.mrf.mxu1 }
  0x99   : > { %vm457_vm1 = vcmp.ge.f32.partialorder %v377_v21, 0.0  ;;  %v493_v23 = vmul.f32 %v919_v20, %v377_v21  ;;  %vm465_vm2 = vcmp.ge.f32.partialorder %v397_v22, 0.0  ;;  %v501_v24 = vmul.f32 %v919_v20, %v397_v22 }
  0x9b   : > { %v525_v25 = vsel %vm457_vm1, %v377_v21, %v493_v23  ;;  %v533_v26 = vsel %vm465_vm2, %v397_v22, %v501_v24 }
  0x9c   : > { %v557_v27 = vpack.c.bf16 %v525_v25, %v525_v25  ;;  %v565_v28 = vpack.c.bf16 %v533_v26, %v533_v26 }
  0x9e   : > { %590 = vst.msk [vmem:[%s928_s4] sm:$0xf] %vm589_vm3, %v557_v27 }
  0x9f   : > { %598 = vst.msk [vmem:[%s928_s4 + $0x20] sm:$0xf] %vm589_vm3, %v565_v28  ;;  %v417_v29 = vpop.f32.mrf.mxu2  ;;  %v437_v30 = vpop.f32.mrf.mxu3 }
  0xa0   : > { %vm473_vm4 = vcmp.ge.f32.partialorder %v417_v29, 0.0  ;;  %v509_v31 = vmul.f32 %v919_v20, %v417_v29  ;;  %vm481_vm5 = vcmp.ge.f32.partialorder %v437_v30, 0.0  ;;  %v517_v32 = vmul.f32 %v919_v20, %v437_v30  ;;  %v379_v33 = vpop.f32.mrf.mxu0  ;;  %v399_v34 = vpop.f32.mrf.mxu1 }
  0xa1   : > { %vm458_vm6 = vcmp.ge.f32.partialorder %v379_v33, 0.0  ;;  %v494_v35 = vmul.f32 %v919_v20, %v379_v33  ;;  %vm466_vm7 = vcmp.ge.f32.partialorder %v399_v34, 0.0  ;;  %v502_v36 = vmul.f32 %v919_v20, %v399_v34 }
  0xa2   : > { %v541_v37 = vsel %vm473_vm4, %v417_v29, %v509_v31  ;;  %v549_v38 = vsel %vm481_vm5, %v437_v30, %v517_v32 }
  0xa3   : > { %v573_v39 = vpack.c.bf16 %v541_v37, %v541_v37  ;;  %v581_v40 = vpack.c.bf16 %v549_v38, %v549_v38  ;;  %v526_v41 = vsel %vm458_vm6, %v379_v33, %v494_v35  ;;  %v534_v42 = vsel %vm466_vm7, %v399_v34, %v502_v36 }
  0xa4   : > { %v558_v43 = vpack.c.bf16 %v526_v41, %v526_v41  ;;  %v566_v44 = vpack.c.bf16 %v534_v42, %v534_v42 }
  0xa5   : > { %606 = vst.msk [vmem:[%s928_s4 + $0x40] sm:$0xf] %vm589_vm3, %v573_v39 }
  0xa6   : > { %614 = vst.msk [vmem:[%s928_s4 + $0x60] sm:$0xf] %vm589_vm3, %v581_v40 }
  0xa7   : > { %591 = vst.msk [vmem:[%s928_s4 + $0x4] sm:$0xf] %vm589_vm3, %v558_v43  ;;  %v419_v45 = vpop.f32.mrf.mxu2  ;;  %v439_v46 = vpop.f32.mrf.mxu3 }
  0xa8   : > { %599 = vst.msk [vmem:[%s928_s4 + $0x24] sm:$0xf] %vm589_vm3, %v566_v44  ;;  %vm474_vm8 = vcmp.ge.f32.partialorder %v419_v45, 0.0  ;;  %v510_v47 = vmul.f32 %v919_v20, %v419_v45  ;;  %vm482_vm9 = vcmp.ge.f32.partialorder %v439_v46, 0.0  ;;  %v518_v48 = vmul.f32 %v919_v20, %v439_v46  ;;  %v382_v49 = vpop.f32.mrf.mxu0  ;;  %v402_v50 = vpop.f32.mrf.mxu1 }
  0xa9   : > { %vm459_vm10 = vcmp.ge.f32.partialorder %v382_v49, 0.0  ;;  %v495_v51 = vmul.f32 %v919_v20, %v382_v49  ;;  %vm467_vm11 = vcmp.ge.f32.partialorder %v402_v50, 0.0  ;;  %v503_v52 = vmul.f32 %v919_v20, %v402_v50 }
  0xaa   : > { %v542_v53 = vsel %vm474_vm8, %v419_v45, %v510_v47  ;;  %v550_v54 = vsel %vm482_vm9, %v439_v46, %v518_v48 }
  0xab   : > { %v574_v55 = vpack.c.bf16 %v542_v53, %v542_v53  ;;  %v582_v56 = vpack.c.bf16 %v550_v54, %v550_v54  ;;  %v527_v57 = vsel %vm459_vm10, %v382_v49, %v495_v51  ;;  %v535_v58 = vsel %vm467_vm11, %v402_v50, %v503_v52 }
  0xac   : > { %v559_v59 = vpack.c.bf16 %v527_v57, %v527_v57  ;;  %v567_v60 = vpack.c.bf16 %v535_v58, %v535_v58 }
  0xad   : > { %607 = vst.msk [vmem:[%s928_s4 + $0x44] sm:$0xf] %vm589_vm3, %v574_v55 }
  0xae   : > { %615 = vst.msk [vmem:[%s928_s4 + $0x64] sm:$0xf] %vm589_vm3, %v582_v56 }
  0xaf   : > { %592 = vst.msk [vmem:[%s928_s4 + $0x8] sm:$0xf] %vm589_vm3, %v559_v59  ;;  %v422_v61 = vpop.f32.mrf.mxu2  ;;  %v442_v62 = vpop.f32.mrf.mxu3 }
  0xb0   : > { %600 = vst.msk [vmem:[%s928_s4 + $0x28] sm:$0xf] %vm589_vm3, %v567_v60  ;;  %vm475_vm12 = vcmp.ge.f32.partialorder %v422_v61, 0.0  ;;  %v511_v63 = vmul.f32 %v919_v20, %v422_v61  ;;  %vm483_vm13 = vcmp.ge.f32.partialorder %v442_v62, 0.0  ;;  %v519_v0 = vmul.f32 %v919_v20, %v442_v62  ;;  %v384_v1 = vpop.f32.mrf.mxu0  ;;  %v404_v2 = vpop.f32.mrf.mxu1 }
  0xb1   : > { %vm460_vm14 = vcmp.ge.f32.partialorder %v384_v1, 0.0  ;;  %v496_v3 = vmul.f32 %v919_v20, %v384_v1  ;;  %vm468_vm15 = vcmp.ge.f32.partialorder %v404_v2, 0.0  ;;  %v504_v4 = vmul.f32 %v919_v20, %v404_v2 }
  0xb2   : > { %v543_v5 = vsel %vm475_vm12, %v422_v61, %v511_v63  ;;  %v551_v6 = vsel %vm483_vm13, %v442_v62, %v519_v0 }
  0xb3   : > { %v575_v7 = vpack.c.bf16 %v543_v5, %v543_v5  ;;  %v583_v8 = vpack.c.bf16 %v551_v6, %v551_v6  ;;  %v528_v9 = vsel %vm460_vm14, %v384_v1, %v496_v3  ;;  %v536_v10 = vsel %vm468_vm15, %v404_v2, %v504_v4 }
  0xb4   : > { %v560_v11 = vpack.c.bf16 %v528_v9, %v528_v9  ;;  %v568_v12 = vpack.c.bf16 %v536_v10, %v536_v10 }
  0xb5   : > { %608 = vst.msk [vmem:[%s928_s4 + $0x48] sm:$0xf] %vm589_vm3, %v575_v7 }
  0xb6   : > { %616 = vst.msk [vmem:[%s928_s4 + $0x68] sm:$0xf] %vm589_vm3, %v583_v8 }
  0xb7   : > { %593 = vst.msk [vmem:[%s928_s4 + $0xc] sm:$0xf] %vm589_vm3, %v560_v11  ;;  %v424_v13 = vpop.f32.mrf.mxu2  ;;  %v444_v14 = vpop.f32.mrf.mxu3 }
  0xb8   : > { %601 = vst.msk [vmem:[%s928_s4 + $0x2c] sm:$0xf] %vm589_vm3, %v568_v12  ;;  %vm476_vm0 = vcmp.ge.f32.partialorder %v424_v13, 0.0  ;;  %v512_v15 = vmul.f32 %v919_v20, %v424_v13  ;;  %vm484_vm1 = vcmp.ge.f32.partialorder %v444_v14, 0.0  ;;  %v520_v16 = vmul.f32 %v919_v20, %v444_v14  ;;  %v387_v17 = vpop.f32.mrf.mxu0  ;;  %v407_v18 = vpop.f32.mrf.mxu1 }
  0xb9   : > { %vm461_vm2 = vcmp.ge.f32.partialorder %v387_v17, 0.0  ;;  %v497_v19 = vmul.f32 %v919_v20, %v387_v17  ;;  %vm469_vm4 = vcmp.ge.f32.partialorder %v407_v18, 0.0  ;;  %v505_v21 = vmul.f32 %v919_v20, %v407_v18 }
  0xba   : > { %v544_v22 = vsel %vm476_vm0, %v424_v13, %v512_v15  ;;  %v552_v23 = vsel %vm484_vm1, %v444_v14, %v520_v16 }
  0xbb   : > { %v576_v24 = vpack.c.bf16 %v544_v22, %v544_v22  ;;  %v584_v25 = vpack.c.bf16 %v552_v23, %v552_v23  ;;  %v529_v26 = vsel %vm461_vm2, %v387_v17, %v497_v19  ;;  %v537_v27 = vsel %vm469_vm4, %v407_v18, %v505_v21 }
  0xbc   : > { %v561_v28 = vpack.c.bf16 %v529_v26, %v529_v26  ;;  %v569_v29 = vpack.c.bf16 %v537_v27, %v537_v27 }
  0xbd   : > { %609 = vst.msk [vmem:[%s928_s4 + $0x4c] sm:$0xf] %vm589_vm3, %v576_v24 }
  0xbe   : > { %617 = vst.msk [vmem:[%s928_s4 + $0x6c] sm:$0xf] %vm589_vm3, %v584_v25 }
  0xbf   : > { %594 = vst.msk [vmem:[%s928_s4 + $0x10] sm:$0xf] %vm589_vm3, %v561_v28  ;;  %v427_v30 = vpop.f32.mrf.mxu2  ;;  %v447_v31 = vpop.f32.mrf.mxu3 }
  0xc0   : > { %602 = vst.msk [vmem:[%s928_s4 + $0x30] sm:$0xf] %vm589_vm3, %v569_v29  ;;  %vm477_vm5 = vcmp.ge.f32.partialorder %v427_v30, 0.0  ;;  %v513_v32 = vmul.f32 %v919_v20, %v427_v30  ;;  %vm485_vm6 = vcmp.ge.f32.partialorder %v447_v31, 0.0  ;;  %v521_v33 = vmul.f32 %v919_v20, %v447_v31  ;;  %v389_v34 = vpop.f32.mrf.mxu0  ;;  %v409_v35 = vpop.f32.mrf.mxu1 }
  0xc1   : > { %vm462_vm7 = vcmp.ge.f32.partialorder %v389_v34, 0.0  ;;  %v498_v36 = vmul.f32 %v919_v20, %v389_v34  ;;  %vm470_vm8 = vcmp.ge.f32.partialorder %v409_v35, 0.0  ;;  %v506_v37 = vmul.f32 %v919_v20, %v409_v35 }
  0xc2   : > { %v545_v38 = vsel %vm477_vm5, %v427_v30, %v513_v32  ;;  %v553_v39 = vsel %vm485_vm6, %v447_v31, %v521_v33 }
  0xc3   : > { %v577_v40 = vpack.c.bf16 %v545_v38, %v545_v38  ;;  %v585_v41 = vpack.c.bf16 %v553_v39, %v553_v39  ;;  %v530_v42 = vsel %vm462_vm7, %v389_v34, %v498_v36  ;;  %v538_v43 = vsel %vm470_vm8, %v409_v35, %v506_v37 }
  0xc4   : > { %v562_v44 = vpack.c.bf16 %v530_v42, %v530_v42  ;;  %v570_v45 = vpack.c.bf16 %v538_v43, %v538_v43 }
  0xc5   : > { %610 = vst.msk [vmem:[%s928_s4 + $0x50] sm:$0xf] %vm589_vm3, %v577_v40 }
  0xc6   : > { %618 = vst.msk [vmem:[%s928_s4 + $0x70] sm:$0xf] %vm589_vm3, %v585_v41 }
  0xc7   : > { %595 = vst.msk [vmem:[%s928_s4 + $0x14] sm:$0xf] %vm589_vm3, %v562_v44  ;;  %v429_v46 = vpop.f32.mrf.mxu2  ;;  %v449_v47 = vpop.f32.mrf.mxu3 }
  0xc8   : > { %603 = vst.msk [vmem:[%s928_s4 + $0x34] sm:$0xf] %vm589_vm3, %v570_v45  ;;  %vm478_vm9 = vcmp.ge.f32.partialorder %v429_v46, 0.0  ;;  %v514_v48 = vmul.f32 %v919_v20, %v429_v46  ;;  %vm486_vm10 = vcmp.ge.f32.partialorder %v449_v47, 0.0  ;;  %v522_v49 = vmul.f32 %v919_v20, %v449_v47  ;;  %v392_v50 = vpop.f32.mrf.mxu0  ;;  %v412_v51 = vpop.f32.mrf.mxu1 }
  0xc9   : > { %vm463_vm11 = vcmp.ge.f32.partialorder %v392_v50, 0.0  ;;  %v499_v52 = vmul.f32 %v919_v20, %v392_v50  ;;  %vm471_vm12 = vcmp.ge.f32.partialorder %v412_v51, 0.0  ;;  %v507_v53 = vmul.f32 %v919_v20, %v412_v51 }
  0xca   : > { %v546_v54 = vsel %vm478_vm9, %v429_v46, %v514_v48  ;;  %v554_v55 = vsel %vm486_vm10, %v449_v47, %v522_v49 }
  0xcb   : > { %v578_v56 = vpack.c.bf16 %v546_v54, %v546_v54  ;;  %v586_v57 = vpack.c.bf16 %v554_v55, %v554_v55  ;;  %v531_v58 = vsel %vm463_vm11, %v392_v50, %v499_v52  ;;  %v539_v59 = vsel %vm471_vm12, %v412_v51, %v507_v53 }
  0xcc   : > { %v563_v60 = vpack.c.bf16 %v531_v58, %v531_v58  ;;  %v571_v61 = vpack.c.bf16 %v539_v59, %v539_v59 }
  0xcd   : > { %611 = vst.msk [vmem:[%s928_s4 + $0x54] sm:$0xf] %vm589_vm3, %v578_v56 }
  0xce   : > { %619 = vst.msk [vmem:[%s928_s4 + $0x74] sm:$0xf] %vm589_vm3, %v586_v57 }
  0xcf   : > { %596 = vst.msk [vmem:[%s928_s4 + $0x18] sm:$0xf] %vm589_vm3, %v563_v60  ;;  %v432_v62 = vpop.f32.mrf.mxu2  ;;  %v452_v63 = vpop.f32.mrf.mxu3 }
  0xd0   : > { %604 = vst.msk [vmem:[%s928_s4 + $0x38] sm:$0xf] %vm589_vm3, %v571_v61  ;;  %vm479_vm13 = vcmp.ge.f32.partialorder %v432_v62, 0.0  ;;  %v515_v0 = vmul.f32 %v919_v20, %v432_v62  ;;  %vm487_vm14 = vcmp.ge.f32.partialorder %v452_v63, 0.0  ;;  %v523_v1 = vmul.f32 %v919_v20, %v452_v63  ;;  %v394_v2 = vpop.f32.mrf.mxu0  ;;  %v414_v3 = vpop.f32.mrf.mxu1 }
  0xd1   : > { %vm464_vm15 = vcmp.ge.f32.partialorder %v394_v2, 0.0  ;;  %v500_v4 = vmul.f32 %v919_v20, %v394_v2  ;;  %vm472_vm0 = vcmp.ge.f32.partialorder %v414_v3, 0.0  ;;  %v508_v5 = vmul.f32 %v919_v20, %v414_v3 }
  0xd2   : > { %v547_v6 = vsel %vm479_vm13, %v432_v62, %v515_v0  ;;  %v555_v7 = vsel %vm487_vm14, %v452_v63, %v523_v1 }
  0xd3   : > { %v579_v8 = vpack.c.bf16 %v547_v6, %v547_v6  ;;  %v587_v9 = vpack.c.bf16 %v555_v7, %v555_v7  ;;  %v532_v10 = vsel %vm464_vm15, %v394_v2, %v500_v4  ;;  %v540_v11 = vsel %vm472_vm0, %v414_v3, %v508_v5 }
  0xd4   : > { %v564_v12 = vpack.c.bf16 %v532_v10, %v532_v10  ;;  %v572_v13 = vpack.c.bf16 %v540_v11, %v540_v11 }
  0xd5   : > { %612 = vst.msk [vmem:[%s928_s4 + $0x58] sm:$0xf] %vm589_vm3, %v579_v8 }
  0xd6   : > { %620 = vst.msk [vmem:[%s928_s4 + $0x78] sm:$0xf] %vm589_vm3, %v587_v9 }
  0xd7   : > { %597 = vst.msk [vmem:[%s928_s4 + $0x1c] sm:$0xf] %vm589_vm3, %v564_v12  ;;  %v434_v14 = vpop.f32.mrf.mxu2  ;;  %v454_v15 = vpop.f32.mrf.mxu3 }
  0xd8   : > { %605 = vst.msk [vmem:[%s928_s4 + $0x3c] sm:$0xf] %vm589_vm3, %v572_v13  ;;  %vm480_vm1 = vcmp.ge.f32.partialorder %v434_v14, 0.0  ;;  %v516_v16 = vmul.f32 %v919_v20, %v434_v14  ;;  %vm488_vm2 = vcmp.ge.f32.partialorder %v454_v15, 0.0  ;;  %v524_v17 = vmul.f32 %v919_v20, %v454_v15 }
  0xda   : > { %v548_v18 = vsel %vm480_vm1, %v434_v14, %v516_v16  ;;  %v556_v19 = vsel %vm488_vm2, %v454_v15, %v524_v17 }
  0xdb   : > { %v580_v21 = vpack.c.bf16 %v548_v18, %v548_v18  ;;  %v588_v22 = vpack.c.bf16 %v556_v19, %v556_v19 }
  0xdd   : > { %613 = vst.msk [vmem:[%s928_s4 + $0x5c] sm:$0xf] %vm589_vm3, %v580_v21 }
  0xde   : > { %621 = vst.msk [vmem:[%s928_s4 + $0x7c] sm:$0xf] %vm589_vm3, %v588_v22 }
  0xdf PF: > { %s13_s12 = sadd.s32 1, %s832_s12  }
  0xe0   : > { %p10_p4 = scmp.ge.s32.totalorder %s13_s12, 4  }
  0xe2   :  { %12 = sbr.rel (!%p10_p4) target bundleno = 1 (0x1), region = 62 }

// kernel: a_call__.7
= control target key start
LH: loop header
LB: loop body
LE: loop exit
PB: predicated region body
PF: predicated region fallthrough
CT: control target
= control target key end

     0   :  { %s773_s12 = smov 0   ;;  %s916_s0 = inlined_call_operand.vmem [shape: bf16[512,16], index: 0, kind: input, shape index: {}]   ;;  %s917_s1 = inlined_call_operand.vmem [shape: bf16[16,16], index: 1, kind: input, shape index: {}]   ;;  %s918_s2 = inlined_call_operand.vmem [shape: f32[1,16], index: 2, kind: input, shape index: {}]   ;;  %s919_s3 = inlined_call_operand.vmem [shape: f32[512,16], index: 3, kind: output, shape index: {}]  }
   0x1 LB: > { %s621_s13 = sadd.s32 4294967295, %s751_s12   ;;  %p625_p0 = scmp.ge.s32.totalorder %s751_s12, 1  ;;  %s751_s12 = sphi %s773_s12, %s13_s12  }
   0x2   : > { %p138_p1 = scmp.lt.s32.totalorder %s751_s12, 3 }
   0x4   : > { %p139_p2 = pnand %p625_p0, %p138_p1 }
   0x5   : > { %s626_s16 = sshll.u32 (!%p139_p2), %s621_s13, 5 }
   0x6   : > { %142 = sbr.rel (%p139_p2) target bundleno = 210 (0xd2), region = 32  ;;  %p163_p3 = scmp.lt.s32.totalorder (!%p139_p2), %s626_s16, 63 }
   0xb   : > { %v732_v0 = vld [vmem:[%s917_s1] sm:$0xff]  ;;  %s921_s16 = smov (!%p163_p3, %s626_s16), 63  ;;  %vm295_vm0 = vcmask 130048  }
   0xc   : > { %351 = vmatpush.bf16.msra.mxu0 %v732_v0  ;;  %733 = vmatpush.bf16.msra.mxu1 %v732_v0  ;;  %s627_s17 = sshll.u32 %s921_s16, 2  ;;  %v809_v17 = vld [vmem:[%s918_s2] ss:$0 sm:$0xff]  ;;  %s629_s23 = sshll.u32 %s921_s16, 3 }
   0xd   : > { %734 = vmatpush.bf16.msra.mxu2 %v732_v0  ;;  %735 = vmatpush.bf16.msra.mxu3 %v732_v0  ;;  %s166_s20 = scalar_lea.vmem %s916_s0, %s627_s17  ;;  %s815_s26 = scalar_lea.vmem %s919_s3, %s629_s23 }
   0xe   : > { %v716_v1 = vld [vmem:[%s166_s20] sm:$0xff]  ;;  %v717_v5 = vld [vmem:[%s166_s20 + $0x8] sm:$0xff]  ;;  %v718_v9 = vld [vmem:[%s166_s20 + $0x10] sm:$0xff] }
   0xf   : > { %v720_v2 = vld [vmem:[%s166_s20 + $0x20] sm:$0xff]  ;;  %698 = vmatmul.msk.bf16.vlgmr.msra.gmra.mxu0 %vm295_vm0, %v716_v1  ;;  %v721_v6 = vld [vmem:[%s166_s20 + $0x28] sm:$0xff]  ;;  %v722_v10 = vld [vmem:[%s166_s20 + $0x30] sm:$0xff] }
  0x10   : > { %v724_v3 = vld [vmem:[%s166_s20 + $0x40] sm:$0xff]  ;;  %702 = vmatmul.msk.bf16.vlgmr.msra.gmra.mxu1 %vm295_vm0, %v720_v2  ;;  %v725_v7 = vld [vmem:[%s166_s20 + $0x48] sm:$0xff]  ;;  %v726_v11 = vld [vmem:[%s166_s20 + $0x50] sm:$0xff] }
  0x11   : > { %v728_v4 = vld [vmem:[%s166_s20 + $0x60] sm:$0xff]  ;;  %706 = vmatmul.msk.bf16.vlgmr.msra.gmra.mxu2 %vm295_vm0, %v724_v3  ;;  %v729_v8 = vld [vmem:[%s166_s20 + $0x68] sm:$0xff]  ;;  %v730_v12 = vld [vmem:[%s166_s20 + $0x70] sm:$0xff] }
  0x12   : > { %710 = vmatmul.msk.bf16.vlgmr.msra.gmra.mxu3 %vm295_vm0, %v728_v4  ;;  %v719_v13 = vld [vmem:[%s166_s20 + $0x18] sm:$0xff] }
  0x13   : > { %v723_v14 = vld [vmem:[%s166_s20 + $0x38] sm:$0xff] }
  0x14   : > { %v727_v15 = vld [vmem:[%s166_s20 + $0x58] sm:$0xff] }
  0x15   : > { %v731_v16 = vld [vmem:[%s166_s20 + $0x78] sm:$0xff] }
  0x1f   : > { %699 = vmatmul.msk.bf16.gmra.mxu0 %vm295_vm0, %v717_v5 }
  0x20   : > { %703 = vmatmul.msk.bf16.gmra.mxu1 %vm295_vm0, %v721_v6 }
  0x21   : > { %707 = vmatmul.msk.bf16.gmra.mxu2 %vm295_vm0, %v725_v7 }
  0x22   : > { %711 = vmatmul.msk.bf16.gmra.mxu3 %vm295_vm0, %v729_v8 }
  0x2f   : > { %700 = vmatmul.msk.bf16.gmra.mxu0 %vm295_vm0, %v718_v9 }
  0x30   : > { %704 = vmatmul.msk.bf16.gmra.mxu1 %vm295_vm0, %v722_v10 }
  0x31   : > { %708 = vmatmul.msk.bf16.gmra.mxu2 %vm295_vm0, %v726_v11 }
  0x32   : > { %712 = vmatmul.msk.bf16.gmra.mxu3 %vm295_vm0, %v730_v12 }
  0x3f   : > { %701 = vmatmul.msk.bf16.gmra.mxu0 %vm295_vm0, %v719_v13 }
  0x40   : > { %705 = vmatmul.msk.bf16.gmra.mxu1 %vm295_vm0, %v723_v14 }
  0x41   : > { %709 = vmatmul.msk.bf16.gmra.mxu2 %vm295_vm0, %v727_v15 }
  0x42   : > { %713 = vmatmul.msk.bf16.gmra.mxu3 %vm295_vm0, %v731_v16 }
  0x8c   : > { %v353_v18 = vpop.f32.mrf.mxu0 }
  0x8d   : > { %v373_v19 = vpop.f32.mrf.mxu1  ;;  %vm433_vm1 = vcmp.ge.f32.partialorder %v353_v18, 0.0  ;;  %v469_v20 = vmul.f32 %v809_v17, %v353_v18 }
  0x8e   : > { %vm441_vm2 = vcmp.ge.f32.partialorder %v373_v19, 0.0  ;;  %v477_v21 = vmul.f32 %v809_v17, %v373_v19 }
  0x8f   : > { %v501_v22 = vsel %vm433_vm1, %v353_v18, %v469_v20 }
  0x90   : > { %v509_v23 = vsel %vm441_vm2, %v373_v19, %v477_v21  ;;  %533 = vst.msk [vmem:[%s815_s26] sm:$0xff] %vm295_vm0, %v501_v22 }
  0x91   : > { %541 = vst.msk [vmem:[%s815_s26 + $0x40] sm:$0xff] %vm295_vm0, %v509_v23 }
  0x94   : > { %v393_v24 = vpop.f32.mrf.mxu2  ;;  %v355_v28 = vpop.f32.mrf.mxu0 }
  0x95   : > { %v413_v25 = vpop.f32.mrf.mxu3  ;;  %vm449_vm3 = vcmp.ge.f32.partialorder %v393_v24, 0.0  ;;  %v485_v26 = vmul.f32 %v809_v17, %v393_v24  ;;  %v375_v29 = vpop.f32.mrf.mxu1  ;;  %vm434_vm5 = vcmp.ge.f32.partialorder %v355_v28, 0.0  ;;  %v470_v30 = vmul.f32 %v809_v17, %v355_v28 }
  0x96   : > { %vm457_vm4 = vcmp.ge.f32.partialorder %v413_v25, 0.0  ;;  %v493_v27 = vmul.f32 %v809_v17, %v413_v25  ;;  %vm442_vm6 = vcmp.ge.f32.partialorder %v375_v29, 0.0  ;;  %v478_v31 = vmul.f32 %v809_v17, %v375_v29 }
  0x97   : > { %v517_v32 = vsel %vm449_vm3, %v393_v24, %v485_v26  ;;  %v502_v34 = vsel %vm434_vm5, %v355_v28, %v470_v30 }
  0x98   : > { %v525_v33 = vsel %vm457_vm4, %v413_v25, %v493_v27  ;;  %549 = vst.msk [vmem:[%s815_s26 + $0x80] sm:$0xff] %vm295_vm0, %v517_v32  ;;  %v510_v35 = vsel %vm442_vm6, %v375_v29, %v478_v31 }
  0x99   : > { %557 = vst.msk [vmem:[%s815_s26 + $0xc0] sm:$0xff] %vm295_vm0, %v525_v33 }
  0x9a   : > { %534 = vst.msk [vmem:[%s815_s26 + $0x8] sm:$0xff] %vm295_vm0, %v502_v34 }
  0x9b   : > { %542 = vst.msk [vmem:[%s815_s26 + $0x48] sm:$0xff] %vm295_vm0, %v510_v35 }
  0x9c   : > { %v395_v36 = vpop.f32.mrf.mxu2  ;;  %v358_v40 = vpop.f32.mrf.mxu0 }
  0x9d   : > { %v415_v37 = vpop.f32.mrf.mxu3  ;;  %vm450_vm7 = vcmp.ge.f32.partialorder %v395_v36, 0.0  ;;  %v486_v38 = vmul.f32 %v809_v17, %v395_v36  ;;  %v378_v41 = vpop.f32.mrf.mxu1  ;;  %vm435_vm9 = vcmp.ge.f32.partialorder %v358_v40, 0.0  ;;  %v471_v42 = vmul.f32 %v809_v17, %v358_v40 }
  0x9e   : > { %vm458_vm8 = vcmp.ge.f32.partialorder %v415_v37, 0.0  ;;  %v494_v39 = vmul.f32 %v809_v17, %v415_v37  ;;  %vm443_vm10 = vcmp.ge.f32.partialorder %v378_v41, 0.0  ;;  %v479_v43 = vmul.f32 %v809_v17, %v378_v41 }
  0x9f   : > { %v518_v44 = vsel %vm450_vm7, %v395_v36, %v486_v38  ;;  %v503_v46 = vsel %vm435_vm9, %v358_v40, %v471_v42 }
  0xa0   : > { %v526_v45 = vsel %vm458_vm8, %v415_v37, %v494_v39  ;;  %550 = vst.msk [vmem:[%s815_s26 + $0x88] sm:$0xff] %vm295_vm0, %v518_v44  ;;  %v511_v47 = vsel %vm443_vm10, %v378_v41, %v479_v43 }
  0xa1   : > { %558 = vst.msk [vmem:[%s815_s26 + $0xc8] sm:$0xff] %vm295_vm0, %v526_v45 }
  0xa2   : > { %535 = vst.msk [vmem:[%s815_s26 + $0x10] sm:$0xff] %vm295_vm0, %v503_v46 }
  0xa3   : > { %543 = vst.msk [vmem:[%s815_s26 + $0x50] sm:$0xff] %vm295_vm0, %v511_v47 }
  0xa4   : > { %v398_v48 = vpop.f32.mrf.mxu2  ;;  %v360_v52 = vpop.f32.mrf.mxu0 }
  0xa5   : > { %v418_v49 = vpop.f32.mrf.mxu3  ;;  %vm451_vm11 = vcmp.ge.f32.partialorder %v398_v48, 0.0  ;;  %v487_v50 = vmul.f32 %v809_v17, %v398_v48  ;;  %v380_v53 = vpop.f32.mrf.mxu1  ;;  %vm436_vm13 = vcmp.ge.f32.partialorder %v360_v52, 0.0  ;;  %v472_v54 = vmul.f32 %v809_v17, %v360_v52 }
  0xa6   : > { %vm459_vm12 = vcmp.ge.f32.partialorder %v418_v49, 0.0  ;;  %v495_v51 = vmul.f32 %v809_v17, %v418_v49  ;;  %vm444_vm14 = vcmp.ge.f32.partialorder %v380_v53, 0.0  ;;  %v480_v55 = vmul.f32 %v809_v17, %v380_v53 }
  0xa7   : > { %v519_v56 = vsel %vm451_vm11, %v398_v48, %v487_v50  ;;  %v504_v58 = vsel %vm436_vm13, %v360_v52, %v472_v54 }
  0xa8   : > { %v527_v57 = vsel %vm459_vm12, %v418_v49, %v495_v51  ;;  %551 = vst.msk [vmem:[%s815_s26 + $0x90] sm:$0xff] %vm295_vm0, %v519_v56  ;;  %v512_v59 = vsel %vm444_vm14, %v380_v53, %v480_v55 }
  0xa9   : > { %559 = vst.msk [vmem:[%s815_s26 + $0xd0] sm:$0xff] %vm295_vm0, %v527_v57 }
  0xaa   : > { %536 = vst.msk [vmem:[%s815_s26 + $0x18] sm:$0xff] %vm295_vm0, %v504_v58 }
  0xab   : > { %544 = vst.msk [vmem:[%s815_s26 + $0x58] sm:$0xff] %vm295_vm0, %v512_v59 }
  0xac   : > { %v400_v60 = vpop.f32.mrf.mxu2  ;;  %v363_v0 = vpop.f32.mrf.mxu0 }
  0xad   : > { %v420_v61 = vpop.f32.mrf.mxu3  ;;  %vm452_vm15 = vcmp.ge.f32.partialorder %v400_v60, 0.0  ;;  %v488_v62 = vmul.f32 %v809_v17, %v400_v60  ;;  %v383_v1 = vpop.f32.mrf.mxu1  ;;  %vm437_vm2 = vcmp.ge.f32.partialorder %v363_v0, 0.0  ;;  %v473_v2 = vmul.f32 %v809_v17, %v363_v0 }
  0xae   : > { %vm460_vm1 = vcmp.ge.f32.partialorder %v420_v61, 0.0  ;;  %v496_v63 = vmul.f32 %v809_v17, %v420_v61  ;;  %vm445_vm3 = vcmp.ge.f32.partialorder %v383_v1, 0.0  ;;  %v481_v3 = vmul.f32 %v809_v17, %v383_v1 }
  0xaf   : > { %v520_v4 = vsel %vm452_vm15, %v400_v60, %v488_v62  ;;  %v505_v6 = vsel %vm437_vm2, %v363_v0, %v473_v2 }
  0xb0   : > { %v528_v5 = vsel %vm460_vm1, %v420_v61, %v496_v63  ;;  %552 = vst.msk [vmem:[%s815_s26 + $0x98] sm:$0xff] %vm295_vm0, %v520_v4  ;;  %v513_v7 = vsel %vm445_vm3, %v383_v1, %v481_v3 }
  0xb1   : > { %560 = vst.msk [vmem:[%s815_s26 + $0xd8] sm:$0xff] %vm295_vm0, %v528_v5 }
  0xb2   : > { %537 = vst.msk [vmem:[%s815_s26 + $0x20] sm:$0xff] %vm295_vm0, %v505_v6 }
  0xb3   : > { %545 = vst.msk [vmem:[%s815_s26 + $0x60] sm:$0xff] %vm295_vm0, %v513_v7 }
  0xb4   : > { %v403_v8 = vpop.f32.mrf.mxu2  ;;  %v365_v12 = vpop.f32.mrf.mxu0 }
  0xb5   : > { %v423_v9 = vpop.f32.mrf.mxu3  ;;  %vm453_vm4 = vcmp.ge.f32.partialorder %v403_v8, 0.0  ;;  %v489_v10 = vmul.f32 %v809_v17, %v403_v8  ;;  %v385_v13 = vpop.f32.mrf.mxu1  ;;  %vm438_vm6 = vcmp.ge.f32.partialorder %v365_v12, 0.0  ;;  %v474_v14 = vmul.f32 %v809_v17, %v365_v12 }
  0xb6   : > { %vm461_vm5 = vcmp.ge.f32.partialorder %v423_v9, 0.0  ;;  %v497_v11 = vmul.f32 %v809_v17, %v423_v9  ;;  %vm446_vm7 = vcmp.ge.f32.partialorder %v385_v13, 0.0  ;;  %v482_v15 = vmul.f32 %v809_v17, %v385_v13 }
  0xb7   : > { %v521_v16 = vsel %vm453_vm4, %v403_v8, %v489_v10  ;;  %v506_v19 = vsel %vm438_vm6, %v365_v12, %v474_v14 }
  0xb8   : > { %v529_v18 = vsel %vm461_vm5, %v423_v9, %v497_v11  ;;  %553 = vst.msk [vmem:[%s815_s26 + $0xa0] sm:$0xff] %vm295_vm0, %v521_v16  ;;  %v514_v20 = vsel %vm446_vm7, %v385_v13, %v482_v15 }
  0xb9   : > { %561 = vst.msk [vmem:[%s815_s26 + $0xe0] sm:$0xff] %vm295_vm0, %v529_v18 }
  0xba   : > { %538 = vst.msk [vmem:[%s815_s26 + $0x28] sm:$0xff] %vm295_vm0, %v506_v19 }
  0xbb   : > { %546 = vst.msk [vmem:[%s815_s26 + $0x68] sm:$0xff] %vm295_vm0, %v514_v20 }
  0xbc   : > { %v405_v21 = vpop.f32.mrf.mxu2  ;;  %v368_v25 = vpop.f32.mrf.mxu0 }
  0xbd   : > { %v425_v22 = vpop.f32.mrf.mxu3  ;;  %vm454_vm8 = vcmp.ge.f32.partialorder %v405_v21, 0.0  ;;  %v490_v23 = vmul.f32 %v809_v17, %v405_v21  ;;  %v388_v26 = vpop.f32.mrf.mxu1  ;;  %vm439_vm10 = vcmp.ge.f32.partialorder %v368_v25, 0.0  ;;  %v475_v27 = vmul.f32 %v809_v17, %v368_v25 }
  0xbe   : > { %vm462_vm9 = vcmp.ge.f32.partialorder %v425_v22, 0.0  ;;  %v498_v24 = vmul.f32 %v809_v17, %v425_v22  ;;  %vm447_vm11 = vcmp.ge.f32.partialorder %v388_v26, 0.0  ;;  %v483_v28 = vmul.f32 %v809_v17, %v388_v26 }
  0xbf   : > { %v522_v29 = vsel %vm454_vm8, %v405_v21, %v490_v23  ;;  %v507_v31 = vsel %vm439_vm10, %v368_v25, %v475_v27 }
  0xc0   : > { %v530_v30 = vsel %vm462_vm9, %v425_v22, %v498_v24  ;;  %554 = vst.msk [vmem:[%s815_s26 + $0xa8] sm:$0xff] %vm295_vm0, %v522_v29  ;;  %v515_v32 = vsel %vm447_vm11, %v388_v26, %v483_v28 }
  0xc1   : > { %562 = vst.msk [vmem:[%s815_s26 + $0xe8] sm:$0xff] %vm295_vm0, %v530_v30 }
  0xc2   : > { %539 = vst.msk [vmem:[%s815_s26 + $0x30] sm:$0xff] %vm295_vm0, %v507_v31 }
  0xc3   : > { %547 = vst.msk [vmem:[%s815_s26 + $0x70] sm:$0xff] %vm295_vm0, %v515_v32 }
  0xc4   : > { %v408_v33 = vpop.f32.mrf.mxu2  ;;  %v370_v37 = vpop.f32.mrf.mxu0 }
  0xc5   : > { %v428_v34 = vpop.f32.mrf.mxu3  ;;  %vm455_vm12 = vcmp.ge.f32.partialorder %v408_v33, 0.0  ;;  %v491_v35 = vmul.f32 %v809_v17, %v408_v33  ;;  %v390_v38 = vpop.f32.mrf.mxu1  ;;  %vm440_vm14 = vcmp.ge.f32.partialorder %v370_v37, 0.0  ;;  %v476_v39 = vmul.f32 %v809_v17, %v370_v37 }
  0xc6   : > { %vm463_vm13 = vcmp.ge.f32.partialorder %v428_v34, 0.0  ;;  %v499_v36 = vmul.f32 %v809_v17, %v428_v34  ;;  %vm448_vm15 = vcmp.ge.f32.partialorder %v390_v38, 0.0  ;;  %v484_v40 = vmul.f32 %v809_v17, %v390_v38 }
  0xc7   : > { %v523_v41 = vsel %vm455_vm12, %v408_v33, %v491_v35  ;;  %v508_v43 = vsel %vm440_vm14, %v370_v37, %v476_v39 }
  0xc8   : > { %v531_v42 = vsel %vm463_vm13, %v428_v34, %v499_v36  ;;  %555 = vst.msk [vmem:[%s815_s26 + $0xb0] sm:$0xff] %vm295_vm0, %v523_v41  ;;  %v516_v44 = vsel %vm448_vm15, %v390_v38, %v484_v40 }
  0xc9   : > { %563 = vst.msk [vmem:[%s815_s26 + $0xf0] sm:$0xff] %vm295_vm0, %v531_v42 }
  0xca   : > { %540 = vst.msk [vmem:[%s815_s26 + $0x38] sm:$0xff] %vm295_vm0, %v508_v43 }
  0xcb   : > { %548 = vst.msk [vmem:[%s815_s26 + $0x78] sm:$0xff] %vm295_vm0, %v516_v44 }
  0xcc   : > { %v410_v45 = vpop.f32.mrf.mxu2 }
  0xcd   : > { %v430_v46 = vpop.f32.mrf.mxu3  ;;  %vm456_vm1 = vcmp.ge.f32.partialorder %v410_v45, 0.0  ;;  %v492_v47 = vmul.f32 %v809_v17, %v410_v45 }
  0xce   : > { %vm464_vm2 = vcmp.ge.f32.partialorder %v430_v46, 0.0  ;;  %v500_v48 = vmul.f32 %v809_v17, %v430_v46 }
  0xcf   : > { %v524_v49 = vsel %vm456_vm1, %v410_v45, %v492_v47 }
  0xd0   : > { %v532_v50 = vsel %vm464_vm2, %v430_v46, %v500_v48  ;;  %556 = vst.msk [vmem:[%s815_s26 + $0xb8] sm:$0xff] %vm295_vm0, %v524_v49 }
  0xd1   : > { %564 = vst.msk [vmem:[%s815_s26 + $0xf8] sm:$0xff] %vm295_vm0, %v532_v50 }
  0xd2 PF: > { %s13_s12 = sadd.s32 1, %s751_s12  }
  0xd3   : > { %p10_p4 = scmp.ge.s32.totalorder %s13_s12, 4  }
  0xd5   :  { %12 = sbr.rel (!%p10_p4) target bundleno = 1 (0x1), region = 62 }

</bundles_post_ra>
